<compile_context>
chip_gen: v5e
topology: v5e:2x2
jax: 0.10.0
libtpu: 0.0.40
codegen_flags: <defaults>
</compile_context>

<pallas_src>
import functools

import jax
import jax.numpy as jnp
from jax import lax
from jax.experimental import pallas as pl
from jax.experimental.pallas import tpu as pltpu


# ----------------------------------------------------------------------------
# Small helpers
# ----------------------------------------------------------------------------
def _round_up(x, m):
    return ((x + m - 1) // m) * m


def _pick_vmem_limit():
    """Per-generation scoped-VMEM limit (~physical minus headroom, capped)."""
    try:
        cap = pltpu.get_tpu_info().vmem_capacity_bytes
    except Exception:
        cap = 64 << 20              # conservative: v7x physical per-core VMEM
    return int(min(100 << 20, max(32 << 20, cap - (12 << 20))))


def _fold_bn(bn, eps=1e-5):
    """Inference-mode BatchNorm -> per-channel (scale, shift)."""
    scale = bn["gamma"] / jnp.sqrt(bn["var"] + eps)
    shift = bn["beta"] - bn["mean"] * scale
    return scale, shift


def _block_stride(stage_idx, block_idx):
    return 2 if (stage_idx > 0 and block_idx == 0) else 1


# ----------------------------------------------------------------------------
# Pallas kernel: fused  out = [relu]( W @ X_taps + bias [+ residual] )
# ----------------------------------------------------------------------------
def _fused_conv_gemm_kernel(*refs, apply_relu, add_residual):
    if add_residual:
        x_ref, w_ref, b_ref, r_ref, o_ref = refs
    else:
        x_ref, w_ref, b_ref, o_ref = refs

    # [Cout, K] @ [K, tile_p] on the MXU, f32 accumulation.
    y = jnp.dot(w_ref[...], x_ref[0], preferred_element_type=jnp.float32)
    y = y + b_ref[...]                      # folded-BN bias, f32
    if add_residual:
        y = y + r_ref[0]                    # shortcut, f32
    if apply_relu:
        y = jnp.maximum(y, 0.0)
    o_ref[0] = y.astype(o_ref.dtype)


def _fused_conv_gemm(x2d, w2d, bias, residual2d, *, relu, compute_dtype,
                     max_tile_p, vmem_limit):
    """x2d: [N, K, P]; w2d: [Cout, K] (BN scale folded); bias: [Cout];
    residual2d: [N, Cout, P] f32 or None.  Returns [N, Cout, P] f32."""
    N, K, P = x2d.shape
    Cout = w2d.shape[0]

    tile_p = min(_round_up(max(int(max_tile_p), 128), 128), _round_up(P, 128))
    Pp = _round_up(P, tile_p)
    if Pp != P:
        x2d = jnp.pad(x2d, ((0, 0), (0, 0), (0, Pp - P)))
        if residual2d is not None:
            residual2d = jnp.pad(residual2d, ((0, 0), (0, 0), (0, Pp - P)))

    x2d = x2d.astype(compute_dtype)
    w2d = w2d.astype(compute_dtype)
    bias2 = bias.reshape(Cout, 1).astype(jnp.float32)

    in_specs = [
        pl.BlockSpec((1, K, tile_p), lambda n, p: (n, 0, p)),
        pl.BlockSpec((Cout, K), lambda n, p: (0, 0)),
        pl.BlockSpec((Cout, 1), lambda n, p: (0, 0)),
    ]
    args = [x2d, w2d, bias2]
    if residual2d is not None:
        in_specs.append(pl.BlockSpec((1, Cout, tile_p), lambda n, p: (n, 0, p)))
        args.append(residual2d.astype(jnp.float32))

    kernel = functools.partial(_fused_conv_gemm_kernel,
                               apply_relu=relu,
                               add_residual=residual2d is not None)

    out = pl.pallas_call(
        kernel,
        out_shape=jax.ShapeDtypeStruct((N, Cout, Pp), jnp.float32),
        grid=(N, Pp // tile_p),
        in_specs=in_specs,
        out_specs=pl.BlockSpec((1, Cout, tile_p), lambda n, p: (n, 0, p)),
        compiler_params=pltpu.CompilerParams(
            dimension_semantics=("parallel", "parallel"),
            vmem_limit_bytes=vmem_limit),
    )(*args)

    if Pp != P:
        out = out[:, :, :P]
    return out


# ----------------------------------------------------------------------------
# Convolution wrappers (tap extraction = layout plumbing, GEMM+BN+ReLU in kernel)
# ----------------------------------------------------------------------------
def _extract_taps_3x3(x, stride):
    """x: [N, C, H, W] -> taps [N, 9*C, Ho*Wo] for a 3x3/pad-1/stride-s conv."""
    N, C, H, W = x.shape
    Ho = (H - 1) // stride + 1
    Wo = (W - 1) // stride + 1
    xp = jnp.pad(x, ((0, 0), (0, 0), (1, 1), (1, 1)))
    taps = []
    for dy in range(3):
        for dx in range(3):
            taps.append(xp[:, :,
                           dy:dy + (Ho - 1) * stride + 1:stride,
                           dx:dx + (Wo - 1) * stride + 1:stride])
    t = jnp.stack(taps, axis=1)                       # [N, 9, C, Ho, Wo]
    return t.reshape(N, 9 * C, Ho * Wo), Ho, Wo


def _conv3x3_bn(x, w, bn, *, stride, relu, residual, compute_dtype,
                max_tile_p, vmem_limit):
    """3x3 conv (pad 1, stride s) + folded BN [+ residual] [+ ReLU]."""
    N, Cin, H, W = x.shape
    Cout = w.shape[0]
    scale, shift = _fold_bn(bn)
    # [Cout, Cin, 3, 3] -> [Cout, 3, 3, Cin] -> [Cout, 9*Cin], matching tap order.
    w2d = jnp.transpose(w, (0, 2, 3, 1)).reshape(Cout, 9 * Cin) * scale[:, None]

    taps, Ho, Wo = _extract_taps_3x3(x.astype(compute_dtype), stride)
    res2d = None if residual is None else residual.reshape(N, Cout, Ho * Wo)

    y2d = _fused_conv_gemm(taps, w2d, shift, res2d, relu=relu,
                           compute_dtype=compute_dtype,
                           max_tile_p=max_tile_p, vmem_limit=vmem_limit)
    return y2d.reshape(N, Cout, Ho, Wo)


def _conv1x1_bn(x, w, bn, *, stride, relu, compute_dtype, max_tile_p, vmem_limit):
    """1x1 conv (pad 0, stride s) + folded BN (the downsample shortcut)."""
    xs = x[:, :, ::stride, ::stride].astype(compute_dtype)
    N, Cin, Ho, Wo = xs.shape
    Cout = w.shape[0]
    scale, shift = _fold_bn(bn)
    w2d = w * scale[:, None]                          # [Cout, Cin]

    y2d = _fused_conv_gemm(xs.reshape(N, Cin, Ho * Wo), w2d, shift, None,
                           relu=relu, compute_dtype=compute_dtype,
                           max_tile_p=max_tile_p, vmem_limit=vmem_limit)
    return y2d.reshape(N, Cout, Ho, Wo)


def _basic_block_pallas(x, blk, stride, **kw):
    if blk["down_w"] is not None:
        shortcut = _conv1x1_bn(x, blk["down_w"], blk["down_bn"],
                               stride=stride, relu=False, **kw)
    else:
        shortcut = x
    y = _conv3x3_bn(x, blk["conv1_w"], blk["bn1"], stride=stride, relu=True,
                    residual=None, **kw)
    # conv2 + BN2 + shortcut-add + final ReLU fused in one kernel call.
    return _conv3x3_bn(y, blk["conv2_w"], blk["bn2"], stride=1, relu=True,
                       residual=shortcut, **kw)


def backbone_v1_pallas(x, params, *, compute_dtype=jnp.bfloat16,
                       max_tile_p=512, vmem_limit_bytes=None):
    """x: [N, Cin, H, W] f32 (output of the encoder stem).  Runs layer1..layer4."""
    if vmem_limit_bytes is None:
        vmem_limit_bytes = _pick_vmem_limit()
    kw = dict(compute_dtype=compute_dtype, max_tile_p=max_tile_p,
              vmem_limit=vmem_limit_bytes)
    for si, stage in enumerate(params["stages"]):
        for bi, blk in enumerate(stage):
            x = _basic_block_pallas(x, blk, _block_stride(si, bi), **kw)
    return x


# ----------------------------------------------------------------------------
# Synthetic parameters & pure-JAX reference
# ----------------------------------------------------------------------------
def _key(base, *idx):
    k = base
    for i in idx:
        k = jax.random.fold_in(k, i)
    return k


def _init_conv(key, cout, cin, ksize):
    fan_in = cin * ksize * ksize
    std = 0.5 / (fan_in ** 0.5)
    return (std * jax.random.normal(key, (cout, cin, ksize, ksize))).astype(jnp.float32)


def _init_bn(key, c):
    k1, k2, k3, k4 = jax.random.split(key, 4)
    return {
        "gamma": (1.0 + 0.1 * jax.random.normal(k1, (c,))).astype(jnp.float32),
        "beta": (0.1 * jax.random.normal(k2, (c,))).astype(jnp.float32),
        "mean": (0.1 * jax.random.normal(k3, (c,))).astype(jnp.float32),
        "var": (1.0 + 0.1 * jax.random.uniform(k4, (c,))).astype(jnp.float32),
    }


def init_backbone_params(key, in_channels, stage_channels=(64, 128, 256, 512),
                         blocks_per_stage=(2, 2, 2, 2)):
    stages = []
    cin = in_channels
    for si, (cout, nb) in enumerate(zip(stage_channels, blocks_per_stage)):
        blocks = []
        for bi in range(nb):
            stride = _block_stride(si, bi)
            blk = {
                "conv1_w": _init_conv(_key(key, si, bi, 0), cout, cin, 3),
                "bn1": _init_bn(_key(key, si, bi, 1), cout),
                "conv2_w": _init_conv(_key(key, si, bi, 2), cout, cout, 3),
                "bn2": _init_bn(_key(key, si, bi, 3), cout),
            }
            if stride != 1 or cin != cout:
                blk["down_w"] = _init_conv(_key(key, si, bi, 4), cout, cin, 1)[:, :, 0, 0]
                blk["down_bn"] = _init_bn(_key(key, si, bi, 5), cout)
            else:
                blk["down_w"] = None
                blk["down_bn"] = None
            blocks.append(blk)
            cin = cout
        stages.append(blocks)
    return {"stages": stages}


def _conv_ref(x, w, stride, padding, dtype, precision=None):
    return lax.conv_general_dilated(
        x.astype(dtype), w.astype(dtype),
        window_strides=(stride, stride),
        padding=((padding, padding), (padding, padding)),
        dimension_numbers=("NCHW", "OIHW", "NCHW"),
        preferred_element_type=jnp.float32,
        precision=precision)


def backbone_v1_reference(x, params, dtype=jnp.float32, precision=None):
    """Pure-JAX reference with the same BN-fold and cast points as the kernel."""
    for si, stage in enumerate(params["stages"]):
        for bi, blk in enumerate(stage):
            s = _block_stride(si, bi)
            sc1, sh1 = _fold_bn(blk["bn1"])
            sc2, sh2 = _fold_bn(blk["bn2"])
            w1 = blk["conv1_w"] * sc1[:, None, None, None]
            w2 = blk["conv2_w"] * sc2[:, None, None, None]
            y = jnp.maximum(_conv_ref(x, w1, s, 1, dtype, precision)
                            + sh1[None, :, None, None], 0.0)
            y = _conv_ref(y, w2, 1, 1, dtype, precision) + sh2[None, :, None, None]
            if blk["down_w"] is not None:
                scd, shd = _fold_bn(blk["down_bn"])
                wd = (blk["down_w"] * scd[:, None])[:, :, None, None]
                shortcut = _conv_ref(x, wd, s, 0, dtype, precision) + shd[None, :, None, None]
            else:
                shortcut = x
            x = jnp.maximum(y + shortcut, 0.0)
    return x


# ----------------------------------------------------------------------------
# Demo / correctness check
# ----------------------------------------------------------------------------
if __name__ == "__main__":
    # Small, shape-consistent config (real resnet18 trunk: in=64, stages
    # (64,128,256,512), 2 blocks/stage; scaled down here).
    N, CIN, H, W = 2, 8, 16, 16
    STAGE_CH = (8, 16, 32, 64)
    BLOCKS = (2, 2, 2, 2)

    key = jax.random.PRNGKey(0)
    k_x, k_p = jax.random.split(key)
    x = jax.random.normal(k_x, (N, CIN, H, W), dtype=jnp.float32)
    params = init_backbone_params(k_p, CIN, STAGE_CH, BLOCKS)

    fwd = jax.jit(functools.partial(backbone_v1_pallas,
                                    compute_dtype=jnp.bfloat16, max_tile_p=512))
    out = jax.block_until_ready(fwd(x, params))

    # References: (a) same bf16 cast points (tight), (b) full f32 (loose sanity).
    ref_bf16 = backbone_v1_reference(x, params, dtype=jnp.bfloat16)
    ref_f32 = backbone_v1_reference(x, params, dtype=jnp.float32,
                                    precision=lax.Precision.HIGHEST)

    assert out.shape == (N, STAGE_CH[-1], H // 8, W // 8), out.shape
    err_b = float(jnp.max(jnp.abs(out - ref_bf16)))
    err_f = float(jnp.max(jnp.abs(out - ref_f32)))
    assert err_b < 5e-2, f"bf16-matched reference mismatch: {err_b}"
    assert err_f < 2.5e-1, f"f32 reference mismatch: {err_f}"

    print("KERNEL_OK")
</pallas_src>

<mosaic_0001>
module attributes {stable_mosaic.version = 11 : i64} {
  func.func @_fused_conv_gemm_kernel(%arg0: i32, %arg1: i32, %arg2: memref<1x72x256xbf16, #tpu.memory_space<vmem>>, %arg3: memref<8x72xbf16, #tpu.memory_space<vmem>>, %arg4: memref<8x1xf32, #tpu.memory_space<vmem>>, %arg5: memref<1x8x256xf32, #tpu.memory_space<vmem>>) attributes {dimension_semantics = [#tpu.dimension_semantics<parallel>, #tpu.dimension_semantics<parallel>], iteration_bounds = array<i64: 2, 1>, scalar_prefetch = 0 : i64, scratch_operands = 0 : i64, tpu.core_type = #tpu.core_type<tc>, window_params = [{transform_indices = @transform_0, window_bounds = array<i64: 1, 72, 256>}, {pipeline_mode = #tpu.pipeline_mode<synchronous>, transform_indices = @transform_1, window_bounds = array<i64: 8, 72>}, {pipeline_mode = #tpu.pipeline_mode<synchronous>, transform_indices = @transform_2, window_bounds = array<i64: 8, 1>}, {transform_indices = @transform_3, window_bounds = array<i64: 1, 8, 256>}]} {
    %c0 = arith.constant 0 : index
    %c0_0 = arith.constant 0 : index
    %0 = vector.load %arg3[%c0, %c0_0] : memref<8x72xbf16, #tpu.memory_space<vmem>>, vector<8x72xbf16>
    %c0_1 = arith.constant 0 : index
    %c0_2 = arith.constant 0 : index
    %c0_3 = arith.constant 0 : index
    %1 = vector.load %arg2[%c0_1, %c0_2, %c0_3] : memref<1x72x256xbf16, #tpu.memory_space<vmem>>, vector<1x72x256xbf16>
    %2 = vector.shape_cast %1 : vector<1x72x256xbf16> to vector<72x256xbf16>
    %cst = arith.constant dense<0.000000e+00> : vector<8x256xf32>
    %3 = tpu.matmul %0, %2, %cst {dimension_numbers = #tpu.dot_dimension_numbers<[1], [0], [0], [1], [0, 0, 1, 1], [], []>} : vector<8x72xbf16>, vector<72x256xbf16>, vector<8x256xf32> -> vector<8x256xf32>
    %c0_4 = arith.constant 0 : index
    %c0_5 = arith.constant 0 : index
    %4 = vector.load %arg4[%c0_4, %c0_5] : memref<8x1xf32, #tpu.memory_space<vmem>>, vector<8x1xf32>
    %5 = vector.broadcast %4 : vector<8x1xf32> to vector<8x256xf32>
    %6 = arith.addf %3, %5 : vector<8x256xf32>
    %cst_6 = arith.constant 0.000000e+00 : f32
    %7 = vector.broadcast %cst_6 : f32 to vector<8x256xf32>
    %8 = arith.maximumf %6, %7 : vector<8x256xf32>
    %c0_7 = arith.constant 0 : index
    %c0_8 = arith.constant 0 : index
    %c0_9 = arith.constant 0 : index
    %9 = vector.load %arg5[%c0_7, %c0_8, %c0_9] : memref<1x8x256xf32, #tpu.memory_space<vmem>>, vector<1x8x256xf32>
    %10 = vector.shape_cast %9 : vector<1x8x256xf32> to vector<8x256xf32>
    %11 = vector.shape_cast %8 : vector<8x256xf32> to vector<1x8x256xf32>
    tpu.vector_store %arg5[%c0_7, %c0_8, %c0_9], %11 {strides = array<i32>} : memref<1x8x256xf32, #tpu.memory_space<vmem>>, vector<1x8x256xf32>,
    return
  }
  func.func @transform_0(%arg0: i32, %arg1: i32) -> (i32, i32, i32) {
    %c0_i32 = arith.constant 0 : i32
    %c0_i32_0 = arith.constant 0 : i32
    return %arg0, %c0_i32, %arg1 : i32, i32, i32
  }
  func.func @transform_1(%arg0: i32, %arg1: i32) -> (i32, i32) {
    %c0_i32 = arith.constant 0 : i32
    %c0_i32_0 = arith.constant 0 : i32
    %c0_i32_1 = arith.constant 0 : i32
    return %c0_i32, %c0_i32_0 : i32, i32
  }
  func.func @transform_2(%arg0: i32, %arg1: i32) -> (i32, i32) {
    %c0_i32 = arith.constant 0 : i32
    %c0_i32_0 = arith.constant 0 : i32
    %c0_i32_1 = arith.constant 0 : i32
    return %c0_i32, %c0_i32_0 : i32, i32
  }
  func.func @transform_3(%arg0: i32, %arg1: i32) -> (i32, i32, i32) {
    %c0_i32 = arith.constant 0 : i32
    %c0_i32_0 = arith.constant 0 : i32
    return %arg0, %c0_i32, %arg1 : i32, i32, i32
  }
}

module attributes {stable_mosaic.version = 11 : i64} {
  func.func @_fused_conv_gemm_kernel(%arg0: i32, %arg1: i32, %arg2: memref<1x72x256xbf16, #tpu.memory_space<vmem>>, %arg3: memref<8x72xbf16, #tpu.memory_space<vmem>>, %arg4: memref<8x1xf32, #tpu.memory_space<vmem>>, %arg5: memref<1x8x256xf32, #tpu.memory_space<vmem>>, %arg6: memref<1x8x256xf32, #tpu.memory_space<vmem>>) attributes {dimension_semantics = [#tpu.dimension_semantics<parallel>, #tpu.dimension_semantics<parallel>], iteration_bounds = array<i64: 2, 1>, scalar_prefetch = 0 : i64, scratch_operands = 0 : i64, tpu.core_type = #tpu.core_type<tc>, window_params = [{transform_indices = @transform_0, window_bounds = array<i64: 1, 72, 256>}, {pipeline_mode = #tpu.pipeline_mode<synchronous>, transform_indices = @transform_1, window_bounds = array<i64: 8, 72>}, {pipeline_mode = #tpu.pipeline_mode<synchronous>, transform_indices = @transform_2, window_bounds = array<i64: 8, 1>}, {transform_indices = @transform_3, window_bounds = array<i64: 1, 8, 256>}, {transform_indices = @transform_4, window_bounds = array<i64: 1, 8, 256>}]} {
    %c0 = arith.constant 0 : index
    %c0_0 = arith.constant 0 : index
    %0 = vector.load %arg3[%c0, %c0_0] : memref<8x72xbf16, #tpu.memory_space<vmem>>, vector<8x72xbf16>
    %c0_1 = arith.constant 0 : index
    %c0_2 = arith.constant 0 : index
    %c0_3 = arith.constant 0 : index
    %1 = vector.load %arg2[%c0_1, %c0_2, %c0_3] : memref<1x72x256xbf16, #tpu.memory_space<vmem>>, vector<1x72x256xbf16>
    %2 = vector.shape_cast %1 : vector<1x72x256xbf16> to vector<72x256xbf16>
    %cst = arith.constant dense<0.000000e+00> : vector<8x256xf32>
    %3 = tpu.matmul %0, %2, %cst {dimension_numbers = #tpu.dot_dimension_numbers<[1], [0], [0], [1], [0, 0, 1, 1], [], []>} : vector<8x72xbf16>, vector<72x256xbf16>, vector<8x256xf32> -> vector<8x256xf32>
    %c0_4 = arith.constant 0 : index
    %c0_5 = arith.constant 0 : index
    %4 = vector.load %arg4[%c0_4, %c0_5] : memref<8x1xf32, #tpu.memory_space<vmem>>, vector<8x1xf32>
    %5 = vector.broadcast %4 : vector<8x1xf32> to vector<8x256xf32>
    %6 = arith.addf %3, %5 : vector<8x256xf32>
    %c0_6 = arith.constant 0 : index
    %c0_7 = arith.constant 0 : index
    %c0_8 = arith.constant 0 : index
    %7 = vector.load %arg5[%c0_6, %c0_7, %c0_8] : memref<1x8x256xf32, #tpu.memory_space<vmem>>, vector<1x8x256xf32>
    %8 = vector.shape_cast %7 : vector<1x8x256xf32> to vector<8x256xf32>
    %9 = arith.addf %6, %8 : vector<8x256xf32>
    %cst_9 = arith.constant 0.000000e+00 : f32
    %10 = vector.broadcast %cst_9 : f32 to vector<8x256xf32>
    %11 = arith.maximumf %9, %10 : vector<8x256xf32>
    %c0_10 = arith.constant 0 : index
    %c0_11 = arith.constant 0 : index
    %c0_12 = arith.constant 0 : index
    %12 = vector.load %arg6[%c0_10, %c0_11, %c0_12] : memref<1x8x256xf32, #tpu.memory_space<vmem>>, vector<1x8x256xf32>
    %13 = vector.shape_cast %12 : vector<1x8x256xf32> to vector<8x256xf32>
    %14 = vector.shape_cast %11 : vector<8x256xf32> to vector<1x8x256xf32>
    tpu.vector_store %arg6[%c0_10, %c0_11, %c0_12], %14 {strides = array<i32>} : memref<1x8x256xf32, #tpu.memory_space<vmem>>, vector<1x8x256xf32>,
    return
  }
  func.func @transform_0(%arg0: i32, %arg1: i32) -> (i32, i32, i32) {
    %c0_i32 = arith.constant 0 : i32
    %c0_i32_0 = arith.constant 0 : i32
    return %arg0, %c0_i32, %arg1 : i32, i32, i32
  }
  func.func @transform_1(%arg0: i32, %arg1: i32) -> (i32, i32) {
    %c0_i32 = arith.constant 0 : i32
    %c0_i32_0 = arith.constant 0 : i32
    %c0_i32_1 = arith.constant 0 : i32
    return %c0_i32, %c0_i32_0 : i32, i32
  }
  func.func @transform_2(%arg0: i32, %arg1: i32) -> (i32, i32) {
    %c0_i32 = arith.constant 0 : i32
    %c0_i32_0 = arith.constant 0 : i32
    %c0_i32_1 = arith.constant 0 : i32
    return %c0_i32, %c0_i32_0 : i32, i32
  }
  func.func @transform_3(%arg0: i32, %arg1: i32) -> (i32, i32, i32) {
    %c0_i32 = arith.constant 0 : i32
    %c0_i32_0 = arith.constant 0 : i32
    return %arg0, %c0_i32, %arg1 : i32, i32, i32
  }
  func.func @transform_4(%arg0: i32, %arg1: i32) -> (i32, i32, i32) {
    %c0_i32 = arith.constant 0 : i32
    %c0_i32_0 = arith.constant 0 : i32
    return %arg0, %c0_i32, %arg1 : i32, i32, i32
  }
}

module attributes {stable_mosaic.version = 11 : i64} {
  func.func @_fused_conv_gemm_kernel(%arg0: i32, %arg1: i32, %arg2: memref<1x72x128xbf16, #tpu.memory_space<vmem>>, %arg3: memref<16x72xbf16, #tpu.memory_space<vmem>>, %arg4: memref<16x1xf32, #tpu.memory_space<vmem>>, %arg5: memref<1x16x128xf32, #tpu.memory_space<vmem>>) attributes {dimension_semantics = [#tpu.dimension_semantics<parallel>, #tpu.dimension_semantics<parallel>], iteration_bounds = array<i64: 2, 1>, scalar_prefetch = 0 : i64, scratch_operands = 0 : i64, tpu.core_type = #tpu.core_type<tc>, window_params = [{transform_indices = @transform_0, window_bounds = array<i64: 1, 72, 128>}, {pipeline_mode = #tpu.pipeline_mode<synchronous>, transform_indices = @transform_1, window_bounds = array<i64: 16, 72>}, {pipeline_mode = #tpu.pipeline_mode<synchronous>, transform_indices = @transform_2, window_bounds = array<i64: 16, 1>}, {transform_indices = @transform_3, window_bounds = array<i64: 1, 16, 128>}]} {
    %c0 = arith.constant 0 : index
    %c0_0 = arith.constant 0 : index
    %0 = vector.load %arg3[%c0, %c0_0] : memref<16x72xbf16, #tpu.memory_space<vmem>>, vector<16x72xbf16>
    %c0_1 = arith.constant 0 : index
    %c0_2 = arith.constant 0 : index
    %c0_3 = arith.constant 0 : index
    %1 = vector.load %arg2[%c0_1, %c0_2, %c0_3] : memref<1x72x128xbf16, #tpu.memory_space<vmem>>, vector<1x72x128xbf16>
    %2 = vector.shape_cast %1 : vector<1x72x128xbf16> to vector<72x128xbf16>
    %cst = arith.constant dense<0.000000e+00> : vector<16x128xf32>
    %3 = tpu.matmul %0, %2, %cst {dimension_numbers = #tpu.dot_dimension_numbers<[1], [0], [0], [1], [0, 0, 1, 1], [], []>} : vector<16x72xbf16>, vector<72x128xbf16>, vector<16x128xf32> -> vector<16x128xf32>
    %c0_4 = arith.constant 0 : index
    %c0_5 = arith.constant 0 : index
    %4 = vector.load %arg4[%c0_4, %c0_5] : memref<16x1xf32, #tpu.memory_space<vmem>>, vector<16x1xf32>
    %5 = vector.broadcast %4 : vector<16x1xf32> to vector<16x128xf32>
    %6 = arith.addf %3, %5 : vector<16x128xf32>
    %cst_6 = arith.constant 0.000000e+00 : f32
    %7 = vector.broadcast %cst_6 : f32 to vector<16x128xf32>
    %8 = arith.maximumf %6, %7 : vector<16x128xf32>
    %c0_7 = arith.constant 0 : index
    %c0_8 = arith.constant 0 : index
    %c0_9 = arith.constant 0 : index
    %9 = vector.load %arg5[%c0_7, %c0_8, %c0_9] : memref<1x16x128xf32, #tpu.memory_space<vmem>>, vector<1x16x128xf32>
    %10 = vector.shape_cast %9 : vector<1x16x128xf32> to vector<16x128xf32>
    %11 = vector.shape_cast %8 : vector<16x128xf32> to vector<1x16x128xf32>
    tpu.vector_store %arg5[%c0_7, %c0_8, %c0_9], %11 {strides = array<i32>} : memref<1x16x128xf32, #tpu.memory_space<vmem>>, vector<1x16x128xf32>,
    return
  }
  func.func @transform_0(%arg0: i32, %arg1: i32) -> (i32, i32, i32) {
    %c0_i32 = arith.constant 0 : i32
    %c0_i32_0 = arith.constant 0 : i32
    return %arg0, %c0_i32, %arg1 : i32, i32, i32
  }
  func.func @transform_1(%arg0: i32, %arg1: i32) -> (i32, i32) {
    %c0_i32 = arith.constant 0 : i32
    %c0_i32_0 = arith.constant 0 : i32
    %c0_i32_1 = arith.constant 0 : i32
    return %c0_i32, %c0_i32_0 : i32, i32
  }
  func.func @transform_2(%arg0: i32, %arg1: i32) -> (i32, i32) {
    %c0_i32 = arith.constant 0 : i32
    %c0_i32_0 = arith.constant 0 : i32
    %c0_i32_1 = arith.constant 0 : i32
    return %c0_i32, %c0_i32_0 : i32, i32
  }
  func.func @transform_3(%arg0: i32, %arg1: i32) -> (i32, i32, i32) {
    %c0_i32 = arith.constant 0 : i32
    %c0_i32_0 = arith.constant 0 : i32
    return %arg0, %c0_i32, %arg1 : i32, i32, i32
  }
}

module attributes {stable_mosaic.version = 11 : i64} {
  func.func @_fused_conv_gemm_kernel(%arg0: i32, %arg1: i32, %arg2: memref<1x8x128xbf16, #tpu.memory_space<vmem>>, %arg3: memref<16x8xbf16, #tpu.memory_space<vmem>>, %arg4: memref<16x1xf32, #tpu.memory_space<vmem>>, %arg5: memref<1x16x128xf32, #tpu.memory_space<vmem>>) attributes {dimension_semantics = [#tpu.dimension_semantics<parallel>, #tpu.dimension_semantics<parallel>], iteration_bounds = array<i64: 2, 1>, scalar_prefetch = 0 : i64, scratch_operands = 0 : i64, tpu.core_type = #tpu.core_type<tc>, window_params = [{transform_indices = @transform_0, window_bounds = array<i64: 1, 8, 128>}, {pipeline_mode = #tpu.pipeline_mode<synchronous>, transform_indices = @transform_1, window_bounds = array<i64: 16, 8>}, {pipeline_mode = #tpu.pipeline_mode<synchronous>, transform_indices = @transform_2, window_bounds = array<i64: 16, 1>}, {transform_indices = @transform_3, window_bounds = array<i64: 1, 16, 128>}]} {
    %c0 = arith.constant 0 : index
    %c0_0 = arith.constant 0 : index
    %0 = vector.load %arg3[%c0, %c0_0] : memref<16x8xbf16, #tpu.memory_space<vmem>>, vector<16x8xbf16>
    %c0_1 = arith.constant 0 : index
    %c0_2 = arith.constant 0 : index
    %c0_3 = arith.constant 0 : index
    %1 = vector.load %arg2[%c0_1, %c0_2, %c0_3] : memref<1x8x128xbf16, #tpu.memory_space<vmem>>, vector<1x8x128xbf16>
    %2 = vector.shape_cast %1 : vector<1x8x128xbf16> to vector<8x128xbf16>
    %cst = arith.constant dense<0.000000e+00> : vector<16x128xf32>
    %3 = tpu.matmul %0, %2, %cst {dimension_numbers = #tpu.dot_dimension_numbers<[1], [0], [0], [1], [0, 0, 1, 1], [], []>} : vector<16x8xbf16>, vector<8x128xbf16>, vector<16x128xf32> -> vector<16x128xf32>
    %c0_4 = arith.constant 0 : index
    %c0_5 = arith.constant 0 : index
    %4 = vector.load %arg4[%c0_4, %c0_5] : memref<16x1xf32, #tpu.memory_space<vmem>>, vector<16x1xf32>
    %5 = vector.broadcast %4 : vector<16x1xf32> to vector<16x128xf32>
    %6 = arith.addf %3, %5 : vector<16x128xf32>
    %c0_6 = arith.constant 0 : index
    %c0_7 = arith.constant 0 : index
    %c0_8 = arith.constant 0 : index
    %7 = vector.load %arg5[%c0_6, %c0_7, %c0_8] : memref<1x16x128xf32, #tpu.memory_space<vmem>>, vector<1x16x128xf32>
    %8 = vector.shape_cast %7 : vector<1x16x128xf32> to vector<16x128xf32>
    %9 = vector.shape_cast %6 : vector<16x128xf32> to vector<1x16x128xf32>
    tpu.vector_store %arg5[%c0_6, %c0_7, %c0_8], %9 {strides = array<i32>} : memref<1x16x128xf32, #tpu.memory_space<vmem>>, vector<1x16x128xf32>,
    return
  }
  func.func @transform_0(%arg0: i32, %arg1: i32) -> (i32, i32, i32) {
    %c0_i32 = arith.constant 0 : i32
    %c0_i32_0 = arith.constant 0 : i32
    return %arg0, %c0_i32, %arg1 : i32, i32, i32
  }
  func.func @transform_1(%arg0: i32, %arg1: i32) -> (i32, i32) {
    %c0_i32 = arith.constant 0 : i32
    %c0_i32_0 = arith.constant 0 : i32
    %c0_i32_1 = arith.constant 0 : i32
    return %c0_i32, %c0_i32_0 : i32, i32
  }
  func.func @transform_2(%arg0: i32, %arg1: i32) -> (i32, i32) {
    %c0_i32 = arith.constant 0 : i32
    %c0_i32_0 = arith.constant 0 : i32
    %c0_i32_1 = arith.constant 0 : i32
    return %c0_i32, %c0_i32_0 : i32, i32
  }
  func.func @transform_3(%arg0: i32, %arg1: i32) -> (i32, i32, i32) {
    %c0_i32 = arith.constant 0 : i32
    %c0_i32_0 = arith.constant 0 : i32
    return %arg0, %c0_i32, %arg1 : i32, i32, i32
  }
}

module attributes {stable_mosaic.version = 11 : i64} {
  func.func @_fused_conv_gemm_kernel(%arg0: i32, %arg1: i32, %arg2: memref<1x144x128xbf16, #tpu.memory_space<vmem>>, %arg3: memref<16x144xbf16, #tpu.memory_space<vmem>>, %arg4: memref<16x1xf32, #tpu.memory_space<vmem>>, %arg5: memref<1x16x128xf32, #tpu.memory_space<vmem>>, %arg6: memref<1x16x128xf32, #tpu.memory_space<vmem>>) attributes {dimension_semantics = [#tpu.dimension_semantics<parallel>, #tpu.dimension_semantics<parallel>], iteration_bounds = array<i64: 2, 1>, scalar_prefetch = 0 : i64, scratch_operands = 0 : i64, tpu.core_type = #tpu.core_type<tc>, window_params = [{transform_indices = @transform_0, window_bounds = array<i64: 1, 144, 128>}, {pipeline_mode = #tpu.pipeline_mode<synchronous>, transform_indices = @transform_1, window_bounds = array<i64: 16, 144>}, {pipeline_mode = #tpu.pipeline_mode<synchronous>, transform_indices = @transform_2, window_bounds = array<i64: 16, 1>}, {transform_indices = @transform_3, window_bounds = array<i64: 1, 16, 128>}, {transform_indices = @transform_4, window_bounds = array<i64: 1, 16, 128>}]} {
    %c0 = arith.constant 0 : index
    %c0_0 = arith.constant 0 : index
    %0 = vector.load %arg3[%c0, %c0_0] : memref<16x144xbf16, #tpu.memory_space<vmem>>, vector<16x144xbf16>
    %c0_1 = arith.constant 0 : index
    %c0_2 = arith.constant 0 : index
    %c0_3 = arith.constant 0 : index
    %1 = vector.load %arg2[%c0_1, %c0_2, %c0_3] : memref<1x144x128xbf16, #tpu.memory_space<vmem>>, vector<1x144x128xbf16>
    %2 = vector.shape_cast %1 : vector<1x144x128xbf16> to vector<144x128xbf16>
    %cst = arith.constant dense<0.000000e+00> : vector<16x128xf32>
    %3 = tpu.matmul %0, %2, %cst {dimension_numbers = #tpu.dot_dimension_numbers<[1], [0], [0], [1], [0, 0, 1, 1], [], []>} : vector<16x144xbf16>, vector<144x128xbf16>, vector<16x128xf32> -> vector<16x128xf32>
    %c0_4 = arith.constant 0 : index
    %c0_5 = arith.constant 0 : index
    %4 = vector.load %arg4[%c0_4, %c0_5] : memref<16x1xf32, #tpu.memory_space<vmem>>, vector<16x1xf32>
    %5 = vector.broadcast %4 : vector<16x1xf32> to vector<16x128xf32>
    %6 = arith.addf %3, %5 : vector<16x128xf32>
    %c0_6 = arith.constant 0 : index
    %c0_7 = arith.constant 0 : index
    %c0_8 = arith.constant 0 : index
    %7 = vector.load %arg5[%c0_6, %c0_7, %c0_8] : memref<1x16x128xf32, #tpu.memory_space<vmem>>, vector<1x16x128xf32>
    %8 = vector.shape_cast %7 : vector<1x16x128xf32> to vector<16x128xf32>
    %9 = arith.addf %6, %8 : vector<16x128xf32>
    %cst_9 = arith.constant 0.000000e+00 : f32
    %10 = vector.broadcast %cst_9 : f32 to vector<16x128xf32>
    %11 = arith.maximumf %9, %10 : vector<16x128xf32>
    %c0_10 = arith.constant 0 : index
    %c0_11 = arith.constant 0 : index
    %c0_12 = arith.constant 0 : index
    %12 = vector.load %arg6[%c0_10, %c0_11, %c0_12] : memref<1x16x128xf32, #tpu.memory_space<vmem>>, vector<1x16x128xf32>
    %13 = vector.shape_cast %12 : vector<1x16x128xf32> to vector<16x128xf32>
    %14 = vector.shape_cast %11 : vector<16x128xf32> to vector<1x16x128xf32>
    tpu.vector_store %arg6[%c0_10, %c0_11, %c0_12], %14 {strides = array<i32>} : memref<1x16x128xf32, #tpu.memory_space<vmem>>, vector<1x16x128xf32>,
    return
  }
  func.func @transform_0(%arg0: i32, %arg1: i32) -> (i32, i32, i32) {
    %c0_i32 = arith.constant 0 : i32
    %c0_i32_0 = arith.constant 0 : i32
    return %arg0, %c0_i32, %arg1 : i32, i32, i32
  }
  func.func @transform_1(%arg0: i32, %arg1: i32) -> (i32, i32) {
    %c0_i32 = arith.constant 0 : i32
    %c0_i32_0 = arith.constant 0 : i32
    %c0_i32_1 = arith.constant 0 : i32
    return %c0_i32, %c0_i32_0 : i32, i32
  }
  func.func @transform_2(%arg0: i32, %arg1: i32) -> (i32, i32) {
    %c0_i32 = arith.constant 0 : i32
    %c0_i32_0 = arith.constant 0 : i32
    %c0_i32_1 = arith.constant 0 : i32
    return %c0_i32, %c0_i32_0 : i32, i32
  }
  func.func @transform_3(%arg0: i32, %arg1: i32) -> (i32, i32, i32) {
    %c0_i32 = arith.constant 0 : i32
    %c0_i32_0 = arith.constant 0 : i32
    return %arg0, %c0_i32, %arg1 : i32, i32, i32
  }
  func.func @transform_4(%arg0: i32, %arg1: i32) -> (i32, i32, i32) {
    %c0_i32 = arith.constant 0 : i32
    %c0_i32_0 = arith.constant 0 : i32
    return %arg0, %c0_i32, %arg1 : i32, i32, i32
  }
}

module attributes {stable_mosaic.version = 11 : i64} {
  func.func @_fused_conv_gemm_kernel(%arg0: i32, %arg1: i32, %arg2: memref<1x144x128xbf16, #tpu.memory_space<vmem>>, %arg3: memref<16x144xbf16, #tpu.memory_space<vmem>>, %arg4: memref<16x1xf32, #tpu.memory_space<vmem>>, %arg5: memref<1x16x128xf32, #tpu.memory_space<vmem>>) attributes {dimension_semantics = [#tpu.dimension_semantics<parallel>, #tpu.dimension_semantics<parallel>], iteration_bounds = array<i64: 2, 1>, scalar_prefetch = 0 : i64, scratch_operands = 0 : i64, tpu.core_type = #tpu.core_type<tc>, window_params = [{transform_indices = @transform_0, window_bounds = array<i64: 1, 144, 128>}, {pipeline_mode = #tpu.pipeline_mode<synchronous>, transform_indices = @transform_1, window_bounds = array<i64: 16, 144>}, {pipeline_mode = #tpu.pipeline_mode<synchronous>, transform_indices = @transform_2, window_bounds = array<i64: 16, 1>}, {transform_indices = @transform_3, window_bounds = array<i64: 1, 16, 128>}]} {
    %c0 = arith.constant 0 : index
    %c0_0 = arith.constant 0 : index
    %0 = vector.load %arg3[%c0, %c0_0] : memref<16x144xbf16, #tpu.memory_space<vmem>>, vector<16x144xbf16>
    %c0_1 = arith.constant 0 : index
    %c0_2 = arith.constant 0 : index
    %c0_3 = arith.constant 0 : index
    %1 = vector.load %arg2[%c0_1, %c0_2, %c0_3] : memref<1x144x128xbf16, #tpu.memory_space<vmem>>, vector<1x144x128xbf16>
    %2 = vector.shape_cast %1 : vector<1x144x128xbf16> to vector<144x128xbf16>
    %cst = arith.constant dense<0.000000e+00> : vector<16x128xf32>
    %3 = tpu.matmul %0, %2, %cst {dimension_numbers = #tpu.dot_dimension_numbers<[1], [0], [0], [1], [0, 0, 1, 1], [], []>} : vector<16x144xbf16>, vector<144x128xbf16>, vector<16x128xf32> -> vector<16x128xf32>
    %c0_4 = arith.constant 0 : index
    %c0_5 = arith.constant 0 : index
    %4 = vector.load %arg4[%c0_4, %c0_5] : memref<16x1xf32, #tpu.memory_space<vmem>>, vector<16x1xf32>
    %5 = vector.broadcast %4 : vector<16x1xf32> to vector<16x128xf32>
    %6 = arith.addf %3, %5 : vector<16x128xf32>
    %cst_6 = arith.constant 0.000000e+00 : f32
    %7 = vector.broadcast %cst_6 : f32 to vector<16x128xf32>
    %8 = arith.maximumf %6, %7 : vector<16x128xf32>
    %c0_7 = arith.constant 0 : index
    %c0_8 = arith.constant 0 : index
    %c0_9 = arith.constant 0 : index
    %9 = vector.load %arg5[%c0_7, %c0_8, %c0_9] : memref<1x16x128xf32, #tpu.memory_space<vmem>>, vector<1x16x128xf32>
    %10 = vector.shape_cast %9 : vector<1x16x128xf32> to vector<16x128xf32>
    %11 = vector.shape_cast %8 : vector<16x128xf32> to vector<1x16x128xf32>
    tpu.vector_store %arg5[%c0_7, %c0_8, %c0_9], %11 {strides = array<i32>} : memref<1x16x128xf32, #tpu.memory_space<vmem>>, vector<1x16x128xf32>,
    return
  }
  func.func @transform_0(%arg0: i32, %arg1: i32) -> (i32, i32, i32) {
    %c0_i32 = arith.constant 0 : i32
    %c0_i32_0 = arith.constant 0 : i32
    return %arg0, %c0_i32, %arg1 : i32, i32, i32
  }
  func.func @transform_1(%arg0: i32, %arg1: i32) -> (i32, i32) {
    %c0_i32 = arith.constant 0 : i32
    %c0_i32_0 = arith.constant 0 : i32
    %c0_i32_1 = arith.constant 0 : i32
    return %c0_i32, %c0_i32_0 : i32, i32
  }
  func.func @transform_2(%arg0: i32, %arg1: i32) -> (i32, i32) {
    %c0_i32 = arith.constant 0 : i32
    %c0_i32_0 = arith.constant 0 : i32
    %c0_i32_1 = arith.constant 0 : i32
    return %c0_i32, %c0_i32_0 : i32, i32
  }
  func.func @transform_3(%arg0: i32, %arg1: i32) -> (i32, i32, i32) {
    %c0_i32 = arith.constant 0 : i32
    %c0_i32_0 = arith.constant 0 : i32
    return %arg0, %c0_i32, %arg1 : i32, i32, i32
  }
}

module attributes {stable_mosaic.version = 11 : i64} {
  func.func @_fused_conv_gemm_kernel(%arg0: i32, %arg1: i32, %arg2: memref<1x144x128xbf16, #tpu.memory_space<vmem>>, %arg3: memref<32x144xbf16, #tpu.memory_space<vmem>>, %arg4: memref<32x1xf32, #tpu.memory_space<vmem>>, %arg5: memref<1x32x128xf32, #tpu.memory_space<vmem>>) attributes {dimension_semantics = [#tpu.dimension_semantics<parallel>, #tpu.dimension_semantics<parallel>], iteration_bounds = array<i64: 2, 1>, scalar_prefetch = 0 : i64, scratch_operands = 0 : i64, tpu.core_type = #tpu.core_type<tc>, window_params = [{transform_indices = @transform_0, window_bounds = array<i64: 1, 144, 128>}, {pipeline_mode = #tpu.pipeline_mode<synchronous>, transform_indices = @transform_1, window_bounds = array<i64: 32, 144>}, {pipeline_mode = #tpu.pipeline_mode<synchronous>, transform_indices = @transform_2, window_bounds = array<i64: 32, 1>}, {transform_indices = @transform_3, window_bounds = array<i64: 1, 32, 128>}]} {
    %c0 = arith.constant 0 : index
    %c0_0 = arith.constant 0 : index
    %0 = vector.load %arg3[%c0, %c0_0] : memref<32x144xbf16, #tpu.memory_space<vmem>>, vector<32x144xbf16>
    %c0_1 = arith.constant 0 : index
    %c0_2 = arith.constant 0 : index
    %c0_3 = arith.constant 0 : index
    %1 = vector.load %arg2[%c0_1, %c0_2, %c0_3] : memref<1x144x128xbf16, #tpu.memory_space<vmem>>, vector<1x144x128xbf16>
    %2 = vector.shape_cast %1 : vector<1x144x128xbf16> to vector<144x128xbf16>
    %cst = arith.constant dense<0.000000e+00> : vector<32x128xf32>
    %3 = tpu.matmul %0, %2, %cst {dimension_numbers = #tpu.dot_dimension_numbers<[1], [0], [0], [1], [0, 0, 1, 1], [], []>} : vector<32x144xbf16>, vector<144x128xbf16>, vector<32x128xf32> -> vector<32x128xf32>
    %c0_4 = arith.constant 0 : index
    %c0_5 = arith.constant 0 : index
    %4 = vector.load %arg4[%c0_4, %c0_5] : memref<32x1xf32, #tpu.memory_space<vmem>>, vector<32x1xf32>
    %5 = vector.broadcast %4 : vector<32x1xf32> to vector<32x128xf32>
    %6 = arith.addf %3, %5 : vector<32x128xf32>
    %cst_6 = arith.constant 0.000000e+00 : f32
    %7 = vector.broadcast %cst_6 : f32 to vector<32x128xf32>
    %8 = arith.maximumf %6, %7 : vector<32x128xf32>
    %c0_7 = arith.constant 0 : index
    %c0_8 = arith.constant 0 : index
    %c0_9 = arith.constant 0 : index
    %9 = vector.load %arg5[%c0_7, %c0_8, %c0_9] : memref<1x32x128xf32, #tpu.memory_space<vmem>>, vector<1x32x128xf32>
    %10 = vector.shape_cast %9 : vector<1x32x128xf32> to vector<32x128xf32>
    %11 = vector.shape_cast %8 : vector<32x128xf32> to vector<1x32x128xf32>
    tpu.vector_store %arg5[%c0_7, %c0_8, %c0_9], %11 {strides = array<i32>} : memref<1x32x128xf32, #tpu.memory_space<vmem>>, vector<1x32x128xf32>,
    return
  }
  func.func @transform_0(%arg0: i32, %arg1: i32) -> (i32, i32, i32) {
    %c0_i32 = arith.constant 0 : i32
    %c0_i32_0 = arith.constant 0 : i32
    return %arg0, %c0_i32, %arg1 : i32, i32, i32
  }
  func.func @transform_1(%arg0: i32, %arg1: i32) -> (i32, i32) {
    %c0_i32 = arith.constant 0 : i32
    %c0_i32_0 = arith.constant 0 : i32
    %c0_i32_1 = arith.constant 0 : i32
    return %c0_i32, %c0_i32_0 : i32, i32
  }
  func.func @transform_2(%arg0: i32, %arg1: i32) -> (i32, i32) {
    %c0_i32 = arith.constant 0 : i32
    %c0_i32_0 = arith.constant 0 : i32
    %c0_i32_1 = arith.constant 0 : i32
    return %c0_i32, %c0_i32_0 : i32, i32
  }
  func.func @transform_3(%arg0: i32, %arg1: i32) -> (i32, i32, i32) {
    %c0_i32 = arith.constant 0 : i32
    %c0_i32_0 = arith.constant 0 : i32
    return %arg0, %c0_i32, %arg1 : i32, i32, i32
  }
}

module attributes {stable_mosaic.version = 11 : i64} {
  func.func @_fused_conv_gemm_kernel(%arg0: i32, %arg1: i32, %arg2: memref<1x16x128xbf16, #tpu.memory_space<vmem>>, %arg3: memref<32x16xbf16, #tpu.memory_space<vmem>>, %arg4: memref<32x1xf32, #tpu.memory_space<vmem>>, %arg5: memref<1x32x128xf32, #tpu.memory_space<vmem>>) attributes {dimension_semantics = [#tpu.dimension_semantics<parallel>, #tpu.dimension_semantics<parallel>], iteration_bounds = array<i64: 2, 1>, scalar_prefetch = 0 : i64, scratch_operands = 0 : i64, tpu.core_type = #tpu.core_type<tc>, window_params = [{transform_indices = @transform_0, window_bounds = array<i64: 1, 16, 128>}, {pipeline_mode = #tpu.pipeline_mode<synchronous>, transform_indices = @transform_1, window_bounds = array<i64: 32, 16>}, {pipeline_mode = #tpu.pipeline_mode<synchronous>, transform_indices = @transform_2, window_bounds = array<i64: 32, 1>}, {transform_indices = @transform_3, window_bounds = array<i64: 1, 32, 128>}]} {
    %c0 = arith.constant 0 : index
    %c0_0 = arith.constant 0 : index
    %0 = vector.load %arg3[%c0, %c0_0] : memref<32x16xbf16, #tpu.memory_space<vmem>>, vector<32x16xbf16>
    %c0_1 = arith.constant 0 : index
    %c0_2 = arith.constant 0 : index
    %c0_3 = arith.constant 0 : index
    %1 = vector.load %arg2[%c0_1, %c0_2, %c0_3] : memref<1x16x128xbf16, #tpu.memory_space<vmem>>, vector<1x16x128xbf16>
    %2 = vector.shape_cast %1 : vector<1x16x128xbf16> to vector<16x128xbf16>
    %cst = arith.constant dense<0.000000e+00> : vector<32x128xf32>
    %3 = tpu.matmul %0, %2, %cst {dimension_numbers = #tpu.dot_dimension_numbers<[1], [0], [0], [1], [0, 0, 1, 1], [], []>} : vector<32x16xbf16>, vector<16x128xbf16>, vector<32x128xf32> -> vector<32x128xf32>
    %c0_4 = arith.constant 0 : index
    %c0_5 = arith.constant 0 : index
    %4 = vector.load %arg4[%c0_4, %c0_5] : memref<32x1xf32, #tpu.memory_space<vmem>>, vector<32x1xf32>
    %5 = vector.broadcast %4 : vector<32x1xf32> to vector<32x128xf32>
    %6 = arith.addf %3, %5 : vector<32x128xf32>
    %c0_6 = arith.constant 0 : index
    %c0_7 = arith.constant 0 : index
    %c0_8 = arith.constant 0 : index
    %7 = vector.load %arg5[%c0_6, %c0_7, %c0_8] : memref<1x32x128xf32, #tpu.memory_space<vmem>>, vector<1x32x128xf32>
    %8 = vector.shape_cast %7 : vector<1x32x128xf32> to vector<32x128xf32>
    %9 = vector.shape_cast %6 : vector<32x128xf32> to vector<1x32x128xf32>
    tpu.vector_store %arg5[%c0_6, %c0_7, %c0_8], %9 {strides = array<i32>} : memref<1x32x128xf32, #tpu.memory_space<vmem>>, vector<1x32x128xf32>,
    return
  }
  func.func @transform_0(%arg0: i32, %arg1: i32) -> (i32, i32, i32) {
    %c0_i32 = arith.constant 0 : i32
    %c0_i32_0 = arith.constant 0 : i32
    return %arg0, %c0_i32, %arg1 : i32, i32, i32
  }
  func.func @transform_1(%arg0: i32, %arg1: i32) -> (i32, i32) {
    %c0_i32 = arith.constant 0 : i32
    %c0_i32_0 = arith.constant 0 : i32
    %c0_i32_1 = arith.constant 0 : i32
    return %c0_i32, %c0_i32_0 : i32, i32
  }
  func.func @transform_2(%arg0: i32, %arg1: i32) -> (i32, i32) {
    %c0_i32 = arith.constant 0 : i32
    %c0_i32_0 = arith.constant 0 : i32
    %c0_i32_1 = arith.constant 0 : i32
    return %c0_i32, %c0_i32_0 : i32, i32
  }
  func.func @transform_3(%arg0: i32, %arg1: i32) -> (i32, i32, i32) {
    %c0_i32 = arith.constant 0 : i32
    %c0_i32_0 = arith.constant 0 : i32
    return %arg0, %c0_i32, %arg1 : i32, i32, i32
  }
}

module attributes {stable_mosaic.version = 11 : i64} {
  func.func @_fused_conv_gemm_kernel(%arg0: i32, %arg1: i32, %arg2: memref<1x288x128xbf16, #tpu.memory_space<vmem>>, %arg3: memref<32x288xbf16, #tpu.memory_space<vmem>>, %arg4: memref<32x1xf32, #tpu.memory_space<vmem>>, %arg5: memref<1x32x128xf32, #tpu.memory_space<vmem>>, %arg6: memref<1x32x128xf32, #tpu.memory_space<vmem>>) attributes {dimension_semantics = [#tpu.dimension_semantics<parallel>, #tpu.dimension_semantics<parallel>], iteration_bounds = array<i64: 2, 1>, scalar_prefetch = 0 : i64, scratch_operands = 0 : i64, tpu.core_type = #tpu.core_type<tc>, window_params = [{transform_indices = @transform_0, window_bounds = array<i64: 1, 288, 128>}, {pipeline_mode = #tpu.pipeline_mode<synchronous>, transform_indices = @transform_1, window_bounds = array<i64: 32, 288>}, {pipeline_mode = #tpu.pipeline_mode<synchronous>, transform_indices = @transform_2, window_bounds = array<i64: 32, 1>}, {transform_indices = @transform_3, window_bounds = array<i64: 1, 32, 128>}, {transform_indices = @transform_4, window_bounds = array<i64: 1, 32, 128>}]} {
    %c0 = arith.constant 0 : index
    %c0_0 = arith.constant 0 : index
    %0 = vector.load %arg3[%c0, %c0_0] : memref<32x288xbf16, #tpu.memory_space<vmem>>, vector<32x288xbf16>
    %c0_1 = arith.constant 0 : index
    %c0_2 = arith.constant 0 : index
    %c0_3 = arith.constant 0 : index
    %1 = vector.load %arg2[%c0_1, %c0_2, %c0_3] : memref<1x288x128xbf16, #tpu.memory_space<vmem>>, vector<1x288x128xbf16>
    %2 = vector.shape_cast %1 : vector<1x288x128xbf16> to vector<288x128xbf16>
    %cst = arith.constant dense<0.000000e+00> : vector<32x128xf32>
    %3 = tpu.matmul %0, %2, %cst {dimension_numbers = #tpu.dot_dimension_numbers<[1], [0], [0], [1], [0, 0, 1, 1], [], []>} : vector<32x288xbf16>, vector<288x128xbf16>, vector<32x128xf32> -> vector<32x128xf32>
    %c0_4 = arith.constant 0 : index
    %c0_5 = arith.constant 0 : index
    %4 = vector.load %arg4[%c0_4, %c0_5] : memref<32x1xf32, #tpu.memory_space<vmem>>, vector<32x1xf32>
    %5 = vector.broadcast %4 : vector<32x1xf32> to vector<32x128xf32>
    %6 = arith.addf %3, %5 : vector<32x128xf32>
    %c0_6 = arith.constant 0 : index
    %c0_7 = arith.constant 0 : index
    %c0_8 = arith.constant 0 : index
    %7 = vector.load %arg5[%c0_6, %c0_7, %c0_8] : memref<1x32x128xf32, #tpu.memory_space<vmem>>, vector<1x32x128xf32>
    %8 = vector.shape_cast %7 : vector<1x32x128xf32> to vector<32x128xf32>
    %9 = arith.addf %6, %8 : vector<32x128xf32>
    %cst_9 = arith.constant 0.000000e+00 : f32
    %10 = vector.broadcast %cst_9 : f32 to vector<32x128xf32>
    %11 = arith.maximumf %9, %10 : vector<32x128xf32>
    %c0_10 = arith.constant 0 : index
    %c0_11 = arith.constant 0 : index
    %c0_12 = arith.constant 0 : index
    %12 = vector.load %arg6[%c0_10, %c0_11, %c0_12] : memref<1x32x128xf32, #tpu.memory_space<vmem>>, vector<1x32x128xf32>
    %13 = vector.shape_cast %12 : vector<1x32x128xf32> to vector<32x128xf32>
    %14 = vector.shape_cast %11 : vector<32x128xf32> to vector<1x32x128xf32>
    tpu.vector_store %arg6[%c0_10, %c0_11, %c0_12], %14 {strides = array<i32>} : memref<1x32x128xf32, #tpu.memory_space<vmem>>, vector<1x32x128xf32>,
    return
  }
  func.func @transform_0(%arg0: i32, %arg1: i32) -> (i32, i32, i32) {
    %c0_i32 = arith.constant 0 : i32
    %c0_i32_0 = arith.constant 0 : i32
    return %arg0, %c0_i32, %arg1 : i32, i32, i32
  }
  func.func @transform_1(%arg0: i32, %arg1: i32) -> (i32, i32) {
    %c0_i32 = arith.constant 0 : i32
    %c0_i32_0 = arith.constant 0 : i32
    %c0_i32_1 = arith.constant 0 : i32
    return %c0_i32, %c0_i32_0 : i32, i32
  }
  func.func @transform_2(%arg0: i32, %arg1: i32) -> (i32, i32) {
    %c0_i32 = arith.constant 0 : i32
    %c0_i32_0 = arith.constant 0 : i32
    %c0_i32_1 = arith.constant 0 : i32
    return %c0_i32, %c0_i32_0 : i32, i32
  }
  func.func @transform_3(%arg0: i32, %arg1: i32) -> (i32, i32, i32) {
    %c0_i32 = arith.constant 0 : i32
    %c0_i32_0 = arith.constant 0 : i32
    return %arg0, %c0_i32, %arg1 : i32, i32, i32
  }
  func.func @transform_4(%arg0: i32, %arg1: i32) -> (i32, i32, i32) {
    %c0_i32 = arith.constant 0 : i32
    %c0_i32_0 = arith.constant 0 : i32
    return %arg0, %c0_i32, %arg1 : i32, i32, i32
  }
}

module attributes {stable_mosaic.version = 11 : i64} {
  func.func @_fused_conv_gemm_kernel(%arg0: i32, %arg1: i32, %arg2: memref<1x288x128xbf16, #tpu.memory_space<vmem>>, %arg3: memref<32x288xbf16, #tpu.memory_space<vmem>>, %arg4: memref<32x1xf32, #tpu.memory_space<vmem>>, %arg5: memref<1x32x128xf32, #tpu.memory_space<vmem>>) attributes {dimension_semantics = [#tpu.dimension_semantics<parallel>, #tpu.dimension_semantics<parallel>], iteration_bounds = array<i64: 2, 1>, scalar_prefetch = 0 : i64, scratch_operands = 0 : i64, tpu.core_type = #tpu.core_type<tc>, window_params = [{transform_indices = @transform_0, window_bounds = array<i64: 1, 288, 128>}, {pipeline_mode = #tpu.pipeline_mode<synchronous>, transform_indices = @transform_1, window_bounds = array<i64: 32, 288>}, {pipeline_mode = #tpu.pipeline_mode<synchronous>, transform_indices = @transform_2, window_bounds = array<i64: 32, 1>}, {transform_indices = @transform_3, window_bounds = array<i64: 1, 32, 128>}]} {
    %c0 = arith.constant 0 : index
    %c0_0 = arith.constant 0 : index
    %0 = vector.load %arg3[%c0, %c0_0] : memref<32x288xbf16, #tpu.memory_space<vmem>>, vector<32x288xbf16>
    %c0_1 = arith.constant 0 : index
    %c0_2 = arith.constant 0 : index
    %c0_3 = arith.constant 0 : index
    %1 = vector.load %arg2[%c0_1, %c0_2, %c0_3] : memref<1x288x128xbf16, #tpu.memory_space<vmem>>, vector<1x288x128xbf16>
    %2 = vector.shape_cast %1 : vector<1x288x128xbf16> to vector<288x128xbf16>
    %cst = arith.constant dense<0.000000e+00> : vector<32x128xf32>
    %3 = tpu.matmul %0, %2, %cst {dimension_numbers = #tpu.dot_dimension_numbers<[1], [0], [0], [1], [0, 0, 1, 1], [], []>} : vector<32x288xbf16>, vector<288x128xbf16>, vector<32x128xf32> -> vector<32x128xf32>
    %c0_4 = arith.constant 0 : index
    %c0_5 = arith.constant 0 : index
    %4 = vector.load %arg4[%c0_4, %c0_5] : memref<32x1xf32, #tpu.memory_space<vmem>>, vector<32x1xf32>
    %5 = vector.broadcast %4 : vector<32x1xf32> to vector<32x128xf32>
    %6 = arith.addf %3, %5 : vector<32x128xf32>
    %cst_6 = arith.constant 0.000000e+00 : f32
    %7 = vector.broadcast %cst_6 : f32 to vector<32x128xf32>
    %8 = arith.maximumf %6, %7 : vector<32x128xf32>
    %c0_7 = arith.constant 0 : index
    %c0_8 = arith.constant 0 : index
    %c0_9 = arith.constant 0 : index
    %9 = vector.load %arg5[%c0_7, %c0_8, %c0_9] : memref<1x32x128xf32, #tpu.memory_space<vmem>>, vector<1x32x128xf32>
    %10 = vector.shape_cast %9 : vector<1x32x128xf32> to vector<32x128xf32>
    %11 = vector.shape_cast %8 : vector<32x128xf32> to vector<1x32x128xf32>
    tpu.vector_store %arg5[%c0_7, %c0_8, %c0_9], %11 {strides = array<i32>} : memref<1x32x128xf32, #tpu.memory_space<vmem>>, vector<1x32x128xf32>,
    return
  }
  func.func @transform_0(%arg0: i32, %arg1: i32) -> (i32, i32, i32) {
    %c0_i32 = arith.constant 0 : i32
    %c0_i32_0 = arith.constant 0 : i32
    return %arg0, %c0_i32, %arg1 : i32, i32, i32
  }
  func.func @transform_1(%arg0: i32, %arg1: i32) -> (i32, i32) {
    %c0_i32 = arith.constant 0 : i32
    %c0_i32_0 = arith.constant 0 : i32
    %c0_i32_1 = arith.constant 0 : i32
    return %c0_i32, %c0_i32_0 : i32, i32
  }
  func.func @transform_2(%arg0: i32, %arg1: i32) -> (i32, i32) {
    %c0_i32 = arith.constant 0 : i32
    %c0_i32_0 = arith.constant 0 : i32
    %c0_i32_1 = arith.constant 0 : i32
    return %c0_i32, %c0_i32_0 : i32, i32
  }
  func.func @transform_3(%arg0: i32, %arg1: i32) -> (i32, i32, i32) {
    %c0_i32 = arith.constant 0 : i32
    %c0_i32_0 = arith.constant 0 : i32
    return %arg0, %c0_i32, %arg1 : i32, i32, i32
  }
}

module attributes {stable_mosaic.version = 11 : i64} {
  func.func @_fused_conv_gemm_kernel(%arg0: i32, %arg1: i32, %arg2: memref<1x288x128xbf16, #tpu.memory_space<vmem>>, %arg3: memref<64x288xbf16, #tpu.memory_space<vmem>>, %arg4: memref<64x1xf32, #tpu.memory_space<vmem>>, %arg5: memref<1x64x128xf32, #tpu.memory_space<vmem>>) attributes {dimension_semantics = [#tpu.dimension_semantics<parallel>, #tpu.dimension_semantics<parallel>], iteration_bounds = array<i64: 2, 1>, scalar_prefetch = 0 : i64, scratch_operands = 0 : i64, tpu.core_type = #tpu.core_type<tc>, window_params = [{transform_indices = @transform_0, window_bounds = array<i64: 1, 288, 128>}, {pipeline_mode = #tpu.pipeline_mode<synchronous>, transform_indices = @transform_1, window_bounds = array<i64: 64, 288>}, {pipeline_mode = #tpu.pipeline_mode<synchronous>, transform_indices = @transform_2, window_bounds = array<i64: 64, 1>}, {transform_indices = @transform_3, window_bounds = array<i64: 1, 64, 128>}]} {
    %c0 = arith.constant 0 : index
    %c0_0 = arith.constant 0 : index
    %0 = vector.load %arg3[%c0, %c0_0] : memref<64x288xbf16, #tpu.memory_space<vmem>>, vector<64x288xbf16>
    %c0_1 = arith.constant 0 : index
    %c0_2 = arith.constant 0 : index
    %c0_3 = arith.constant 0 : index
    %1 = vector.load %arg2[%c0_1, %c0_2, %c0_3] : memref<1x288x128xbf16, #tpu.memory_space<vmem>>, vector<1x288x128xbf16>
    %2 = vector.shape_cast %1 : vector<1x288x128xbf16> to vector<288x128xbf16>
    %cst = arith.constant dense<0.000000e+00> : vector<64x128xf32>
    %3 = tpu.matmul %0, %2, %cst {dimension_numbers = #tpu.dot_dimension_numbers<[1], [0], [0], [1], [0, 0, 1, 1], [], []>} : vector<64x288xbf16>, vector<288x128xbf16>, vector<64x128xf32> -> vector<64x128xf32>
    %c0_4 = arith.constant 0 : index
    %c0_5 = arith.constant 0 : index
    %4 = vector.load %arg4[%c0_4, %c0_5] : memref<64x1xf32, #tpu.memory_space<vmem>>, vector<64x1xf32>
    %5 = vector.broadcast %4 : vector<64x1xf32> to vector<64x128xf32>
    %6 = arith.addf %3, %5 : vector<64x128xf32>
    %cst_6 = arith.constant 0.000000e+00 : f32
    %7 = vector.broadcast %cst_6 : f32 to vector<64x128xf32>
    %8 = arith.maximumf %6, %7 : vector<64x128xf32>
    %c0_7 = arith.constant 0 : index
    %c0_8 = arith.constant 0 : index
    %c0_9 = arith.constant 0 : index
    %9 = vector.load %arg5[%c0_7, %c0_8, %c0_9] : memref<1x64x128xf32, #tpu.memory_space<vmem>>, vector<1x64x128xf32>
    %10 = vector.shape_cast %9 : vector<1x64x128xf32> to vector<64x128xf32>
    %11 = vector.shape_cast %8 : vector<64x128xf32> to vector<1x64x128xf32>
    tpu.vector_store %arg5[%c0_7, %c0_8, %c0_9], %11 {strides = array<i32>} : memref<1x64x128xf32, #tpu.memory_space<vmem>>, vector<1x64x128xf32>,
    return
  }
  func.func @transform_0(%arg0: i32, %arg1: i32) -> (i32, i32, i32) {
    %c0_i32 = arith.constant 0 : i32
    %c0_i32_0 = arith.constant 0 : i32
    return %arg0, %c0_i32, %arg1 : i32, i32, i32
  }
  func.func @transform_1(%arg0: i32, %arg1: i32) -> (i32, i32) {
    %c0_i32 = arith.constant 0 : i32
    %c0_i32_0 = arith.constant 0 : i32
    %c0_i32_1 = arith.constant 0 : i32
    return %c0_i32, %c0_i32_0 : i32, i32
  }
  func.func @transform_2(%arg0: i32, %arg1: i32) -> (i32, i32) {
    %c0_i32 = arith.constant 0 : i32
    %c0_i32_0 = arith.constant 0 : i32
    %c0_i32_1 = arith.constant 0 : i32
    return %c0_i32, %c0_i32_0 : i32, i32
  }
  func.func @transform_3(%arg0: i32, %arg1: i32) -> (i32, i32, i32) {
    %c0_i32 = arith.constant 0 : i32
    %c0_i32_0 = arith.constant 0 : i32
    return %arg0, %c0_i32, %arg1 : i32, i32, i32
  }
}

module attributes {stable_mosaic.version = 11 : i64} {
  func.func @_fused_conv_gemm_kernel(%arg0: i32, %arg1: i32, %arg2: memref<1x32x128xbf16, #tpu.memory_space<vmem>>, %arg3: memref<64x32xbf16, #tpu.memory_space<vmem>>, %arg4: memref<64x1xf32, #tpu.memory_space<vmem>>, %arg5: memref<1x64x128xf32, #tpu.memory_space<vmem>>) attributes {dimension_semantics = [#tpu.dimension_semantics<parallel>, #tpu.dimension_semantics<parallel>], iteration_bounds = array<i64: 2, 1>, scalar_prefetch = 0 : i64, scratch_operands = 0 : i64, tpu.core_type = #tpu.core_type<tc>, window_params = [{transform_indices = @transform_0, window_bounds = array<i64: 1, 32, 128>}, {pipeline_mode = #tpu.pipeline_mode<synchronous>, transform_indices = @transform_1, window_bounds = array<i64: 64, 32>}, {pipeline_mode = #tpu.pipeline_mode<synchronous>, transform_indices = @transform_2, window_bounds = array<i64: 64, 1>}, {transform_indices = @transform_3, window_bounds = array<i64: 1, 64, 128>}]} {
    %c0 = arith.constant 0 : index
    %c0_0 = arith.constant 0 : index
    %0 = vector.load %arg3[%c0, %c0_0] : memref<64x32xbf16, #tpu.memory_space<vmem>>, vector<64x32xbf16>
    %c0_1 = arith.constant 0 : index
    %c0_2 = arith.constant 0 : index
    %c0_3 = arith.constant 0 : index
    %1 = vector.load %arg2[%c0_1, %c0_2, %c0_3] : memref<1x32x128xbf16, #tpu.memory_space<vmem>>, vector<1x32x128xbf16>
    %2 = vector.shape_cast %1 : vector<1x32x128xbf16> to vector<32x128xbf16>
    %cst = arith.constant dense<0.000000e+00> : vector<64x128xf32>
    %3 = tpu.matmul %0, %2, %cst {dimension_numbers = #tpu.dot_dimension_numbers<[1], [0], [0], [1], [0, 0, 1, 1], [], []>} : vector<64x32xbf16>, vector<32x128xbf16>, vector<64x128xf32> -> vector<64x128xf32>
    %c0_4 = arith.constant 0 : index
    %c0_5 = arith.constant 0 : index
    %4 = vector.load %arg4[%c0_4, %c0_5] : memref<64x1xf32, #tpu.memory_space<vmem>>, vector<64x1xf32>
    %5 = vector.broadcast %4 : vector<64x1xf32> to vector<64x128xf32>
    %6 = arith.addf %3, %5 : vector<64x128xf32>
    %c0_6 = arith.constant 0 : index
    %c0_7 = arith.constant 0 : index
    %c0_8 = arith.constant 0 : index
    %7 = vector.load %arg5[%c0_6, %c0_7, %c0_8] : memref<1x64x128xf32, #tpu.memory_space<vmem>>, vector<1x64x128xf32>
    %8 = vector.shape_cast %7 : vector<1x64x128xf32> to vector<64x128xf32>
    %9 = vector.shape_cast %6 : vector<64x128xf32> to vector<1x64x128xf32>
    tpu.vector_store %arg5[%c0_6, %c0_7, %c0_8], %9 {strides = array<i32>} : memref<1x64x128xf32, #tpu.memory_space<vmem>>, vector<1x64x128xf32>,
    return
  }
  func.func @transform_0(%arg0: i32, %arg1: i32) -> (i32, i32, i32) {
    %c0_i32 = arith.constant 0 : i32
    %c0_i32_0 = arith.constant 0 : i32
    return %arg0, %c0_i32, %arg1 : i32, i32, i32
  }
  func.func @transform_1(%arg0: i32, %arg1: i32) -> (i32, i32) {
    %c0_i32 = arith.constant 0 : i32
    %c0_i32_0 = arith.constant 0 : i32
    %c0_i32_1 = arith.constant 0 : i32
    return %c0_i32, %c0_i32_0 : i32, i32
  }
  func.func @transform_2(%arg0: i32, %arg1: i32) -> (i32, i32) {
    %c0_i32 = arith.constant 0 : i32
    %c0_i32_0 = arith.constant 0 : i32
    %c0_i32_1 = arith.constant 0 : i32
    return %c0_i32, %c0_i32_0 : i32, i32
  }
  func.func @transform_3(%arg0: i32, %arg1: i32) -> (i32, i32, i32) {
    %c0_i32 = arith.constant 0 : i32
    %c0_i32_0 = arith.constant 0 : i32
    return %arg0, %c0_i32, %arg1 : i32, i32, i32
  }
}

module attributes {stable_mosaic.version = 11 : i64} {
  func.func @_fused_conv_gemm_kernel(%arg0: i32, %arg1: i32, %arg2: memref<1x576x128xbf16, #tpu.memory_space<vmem>>, %arg3: memref<64x576xbf16, #tpu.memory_space<vmem>>, %arg4: memref<64x1xf32, #tpu.memory_space<vmem>>, %arg5: memref<1x64x128xf32, #tpu.memory_space<vmem>>, %arg6: memref<1x64x128xf32, #tpu.memory_space<vmem>>) attributes {dimension_semantics = [#tpu.dimension_semantics<parallel>, #tpu.dimension_semantics<parallel>], iteration_bounds = array<i64: 2, 1>, scalar_prefetch = 0 : i64, scratch_operands = 0 : i64, tpu.core_type = #tpu.core_type<tc>, window_params = [{transform_indices = @transform_0, window_bounds = array<i64: 1, 576, 128>}, {pipeline_mode = #tpu.pipeline_mode<synchronous>, transform_indices = @transform_1, window_bounds = array<i64: 64, 576>}, {pipeline_mode = #tpu.pipeline_mode<synchronous>, transform_indices = @transform_2, window_bounds = array<i64: 64, 1>}, {transform_indices = @transform_3, window_bounds = array<i64: 1, 64, 128>}, {transform_indices = @transform_4, window_bounds = array<i64: 1, 64, 128>}]} {
    %c0 = arith.constant 0 : index
    %c0_0 = arith.constant 0 : index
    %0 = vector.load %arg3[%c0, %c0_0] : memref<64x576xbf16, #tpu.memory_space<vmem>>, vector<64x576xbf16>
    %c0_1 = arith.constant 0 : index
    %c0_2 = arith.constant 0 : index
    %c0_3 = arith.constant 0 : index
    %1 = vector.load %arg2[%c0_1, %c0_2, %c0_3] : memref<1x576x128xbf16, #tpu.memory_space<vmem>>, vector<1x576x128xbf16>
    %2 = vector.shape_cast %1 : vector<1x576x128xbf16> to vector<576x128xbf16>
    %cst = arith.constant dense<0.000000e+00> : vector<64x128xf32>
    %3 = tpu.matmul %0, %2, %cst {dimension_numbers = #tpu.dot_dimension_numbers<[1], [0], [0], [1], [0, 0, 1, 1], [], []>} : vector<64x576xbf16>, vector<576x128xbf16>, vector<64x128xf32> -> vector<64x128xf32>
    %c0_4 = arith.constant 0 : index
    %c0_5 = arith.constant 0 : index
    %4 = vector.load %arg4[%c0_4, %c0_5] : memref<64x1xf32, #tpu.memory_space<vmem>>, vector<64x1xf32>
    %5 = vector.broadcast %4 : vector<64x1xf32> to vector<64x128xf32>
    %6 = arith.addf %3, %5 : vector<64x128xf32>
    %c0_6 = arith.constant 0 : index
    %c0_7 = arith.constant 0 : index
    %c0_8 = arith.constant 0 : index
    %7 = vector.load %arg5[%c0_6, %c0_7, %c0_8] : memref<1x64x128xf32, #tpu.memory_space<vmem>>, vector<1x64x128xf32>
    %8 = vector.shape_cast %7 : vector<1x64x128xf32> to vector<64x128xf32>
    %9 = arith.addf %6, %8 : vector<64x128xf32>
    %cst_9 = arith.constant 0.000000e+00 : f32
    %10 = vector.broadcast %cst_9 : f32 to vector<64x128xf32>
    %11 = arith.maximumf %9, %10 : vector<64x128xf32>
    %c0_10 = arith.constant 0 : index
    %c0_11 = arith.constant 0 : index
    %c0_12 = arith.constant 0 : index
    %12 = vector.load %arg6[%c0_10, %c0_11, %c0_12] : memref<1x64x128xf32, #tpu.memory_space<vmem>>, vector<1x64x128xf32>
    %13 = vector.shape_cast %12 : vector<1x64x128xf32> to vector<64x128xf32>
    %14 = vector.shape_cast %11 : vector<64x128xf32> to vector<1x64x128xf32>
    tpu.vector_store %arg6[%c0_10, %c0_11, %c0_12], %14 {strides = array<i32>} : memref<1x64x128xf32, #tpu.memory_space<vmem>>, vector<1x64x128xf32>,
    return
  }
  func.func @transform_0(%arg0: i32, %arg1: i32) -> (i32, i32, i32) {
    %c0_i32 = arith.constant 0 : i32
    %c0_i32_0 = arith.constant 0 : i32
    return %arg0, %c0_i32, %arg1 : i32, i32, i32
  }
  func.func @transform_1(%arg0: i32, %arg1: i32) -> (i32, i32) {
    %c0_i32 = arith.constant 0 : i32
    %c0_i32_0 = arith.constant 0 : i32
    %c0_i32_1 = arith.constant 0 : i32
    return %c0_i32, %c0_i32_0 : i32, i32
  }
  func.func @transform_2(%arg0: i32, %arg1: i32) -> (i32, i32) {
    %c0_i32 = arith.constant 0 : i32
    %c0_i32_0 = arith.constant 0 : i32
    %c0_i32_1 = arith.constant 0 : i32
    return %c0_i32, %c0_i32_0 : i32, i32
  }
  func.func @transform_3(%arg0: i32, %arg1: i32) -> (i32, i32, i32) {
    %c0_i32 = arith.constant 0 : i32
    %c0_i32_0 = arith.constant 0 : i32
    return %arg0, %c0_i32, %arg1 : i32, i32, i32
  }
  func.func @transform_4(%arg0: i32, %arg1: i32) -> (i32, i32, i32) {
    %c0_i32 = arith.constant 0 : i32
    %c0_i32_0 = arith.constant 0 : i32
    return %arg0, %c0_i32, %arg1 : i32, i32, i32
  }
}

module attributes {stable_mosaic.version = 11 : i64} {
  func.func @_fused_conv_gemm_kernel(%arg0: i32, %arg1: i32, %arg2: memref<1x576x128xbf16, #tpu.memory_space<vmem>>, %arg3: memref<64x576xbf16, #tpu.memory_space<vmem>>, %arg4: memref<64x1xf32, #tpu.memory_space<vmem>>, %arg5: memref<1x64x128xf32, #tpu.memory_space<vmem>>) attributes {dimension_semantics = [#tpu.dimension_semantics<parallel>, #tpu.dimension_semantics<parallel>], iteration_bounds = array<i64: 2, 1>, scalar_prefetch = 0 : i64, scratch_operands = 0 : i64, tpu.core_type = #tpu.core_type<tc>, window_params = [{transform_indices = @transform_0, window_bounds = array<i64: 1, 576, 128>}, {pipeline_mode = #tpu.pipeline_mode<synchronous>, transform_indices = @transform_1, window_bounds = array<i64: 64, 576>}, {pipeline_mode = #tpu.pipeline_mode<synchronous>, transform_indices = @transform_2, window_bounds = array<i64: 64, 1>}, {transform_indices = @transform_3, window_bounds = array<i64: 1, 64, 128>}]} {
    %c0 = arith.constant 0 : index
    %c0_0 = arith.constant 0 : index
    %0 = vector.load %arg3[%c0, %c0_0] : memref<64x576xbf16, #tpu.memory_space<vmem>>, vector<64x576xbf16>
    %c0_1 = arith.constant 0 : index
    %c0_2 = arith.constant 0 : index
    %c0_3 = arith.constant 0 : index
    %1 = vector.load %arg2[%c0_1, %c0_2, %c0_3] : memref<1x576x128xbf16, #tpu.memory_space<vmem>>, vector<1x576x128xbf16>
    %2 = vector.shape_cast %1 : vector<1x576x128xbf16> to vector<576x128xbf16>
    %cst = arith.constant dense<0.000000e+00> : vector<64x128xf32>
    %3 = tpu.matmul %0, %2, %cst {dimension_numbers = #tpu.dot_dimension_numbers<[1], [0], [0], [1], [0, 0, 1, 1], [], []>} : vector<64x576xbf16>, vector<576x128xbf16>, vector<64x128xf32> -> vector<64x128xf32>
    %c0_4 = arith.constant 0 : index
    %c0_5 = arith.constant 0 : index
    %4 = vector.load %arg4[%c0_4, %c0_5] : memref<64x1xf32, #tpu.memory_space<vmem>>, vector<64x1xf32>
    %5 = vector.broadcast %4 : vector<64x1xf32> to vector<64x128xf32>
    %6 = arith.addf %3, %5 : vector<64x128xf32>
    %cst_6 = arith.constant 0.000000e+00 : f32
    %7 = vector.broadcast %cst_6 : f32 to vector<64x128xf32>
    %8 = arith.maximumf %6, %7 : vector<64x128xf32>
    %c0_7 = arith.constant 0 : index
    %c0_8 = arith.constant 0 : index
    %c0_9 = arith.constant 0 : index
    %9 = vector.load %arg5[%c0_7, %c0_8, %c0_9] : memref<1x64x128xf32, #tpu.memory_space<vmem>>, vector<1x64x128xf32>
    %10 = vector.shape_cast %9 : vector<1x64x128xf32> to vector<64x128xf32>
    %11 = vector.shape_cast %8 : vector<64x128xf32> to vector<1x64x128xf32>
    tpu.vector_store %arg5[%c0_7, %c0_8, %c0_9], %11 {strides = array<i32>} : memref<1x64x128xf32, #tpu.memory_space<vmem>>, vector<1x64x128xf32>,
    return
  }
  func.func @transform_0(%arg0: i32, %arg1: i32) -> (i32, i32, i32) {
    %c0_i32 = arith.constant 0 : i32
    %c0_i32_0 = arith.constant 0 : i32
    return %arg0, %c0_i32, %arg1 : i32, i32, i32
  }
  func.func @transform_1(%arg0: i32, %arg1: i32) -> (i32, i32) {
    %c0_i32 = arith.constant 0 : i32
    %c0_i32_0 = arith.constant 0 : i32
    %c0_i32_1 = arith.constant 0 : i32
    return %c0_i32, %c0_i32_0 : i32, i32
  }
  func.func @transform_2(%arg0: i32, %arg1: i32) -> (i32, i32) {
    %c0_i32 = arith.constant 0 : i32
    %c0_i32_0 = arith.constant 0 : i32
    %c0_i32_1 = arith.constant 0 : i32
    return %c0_i32, %c0_i32_0 : i32, i32
  }
  func.func @transform_3(%arg0: i32, %arg1: i32) -> (i32, i32, i32) {
    %c0_i32 = arith.constant 0 : i32
    %c0_i32_0 = arith.constant 0 : i32
    return %arg0, %c0_i32, %arg1 : i32, i32, i32
  }
}

</mosaic_0001>

<bundles_post_ra>
// kernel: backbone_v1_pallas.19
= control target key start
LH: loop header
LB: loop body
LE: loop exit
PB: predicated region body
PF: predicated region fallthrough
CT: control target
= control target key end

     0   :  { %s525_s12 = smov 0   ;;  %s527_s13 = smov 0   ;;  %s587_s0 = inlined_call_operand.vmem [shape: bf16[2,72,256], index: 0, kind: input, shape index: {}]   ;;  %s588_s1 = inlined_call_operand.vmem [shape: bf16[8,72], index: 1, kind: input, shape index: {}]   ;;  %s589_s2 = inlined_call_operand.vmem [shape: f32[8,1], index: 2, kind: input, shape index: {}]   ;;  %s590_s3 = inlined_call_operand.vmem [shape: f32[2,8,256], index: 3, kind: output, shape index: {}]  }
   0x1   :  { %s529_s14 = smov 0  }
   0x2 LB: > { %s25_s15 = sadd.s32 1, %s498_s13  ;;  %p404_p0 = scmp.ge.s32.totalorder %s502_s14, 1  ;;  %s502_s14 = sphi %s529_s14, %s13_s14   ;;  %s498_s13 = sphi %s527_s13, %s592_s13   ;;  %s494_s12 = sphi %s525_s12, %s591_s12  }
   0x3   : > { %p27_p1 = scmp.ge.s32.totalorder %s25_s15, 2  ;;  %p158_p2 = scmp.lt.s32.totalorder %s502_s14, 3 }
   0x5   : > { %s594_s15 = smov (%p27_p1, %s25_s15), 0  ;;  %p159_p3 = pnand %p404_p0, %p158_p2 }
   0x6   : > { %p191_p4 = scmp.lt.s32.totalorder (!%p159_p3), %s494_s12, 1 }
   0x7   : > { %162 = sbr.rel (%p159_p3) target bundleno = 175 (0xaf), region = 32 }
   0xc   : > { %v504_v0 = vmov 0   ;;  %v221_v1 = vld [vmem:[%s589_s2] sm:$0xff]  ;;  %s596_s12 = smov (!%p191_p4, %s494_s12), 1  ;;  %vm276_vm0 = vcmask 1043456   ;;  %vm272_vm1 = vcmask 588800  }
   0xd   : > { %479 = vset.pattern.permute.xlu0 %v504_v0  ;;  %s453_s18 = smul.u32 72, %s596_s12  ;;  %v211_v33 = vld [vmem:[%s588_s1] sm:$0xf]  ;;  %s444_s24 = sshll.u32 %s596_s12, 4 }
   0xe   : > { %224 = vperm.xlu0 %479, %v221_v1   ;;  %s208_s27 = scalar_lea.vmem %s590_s3, %s444_s24 }
   0xf   : > { %s552_s21 = scalar_lea.vmem %s587_s0, %s453_s18 }
  0x10   : > { %v220_v2 = vld [vmem:[%s552_s21 + $0x40] sm:$0xff]  ;;  %v434_v5 = vld [vmem:[%s552_s21 + $0x30] sm:$0xf]  ;;  %v452_v8 = vld [vmem:[%s552_s21 + $0x34] sm:$0xf0] }
  0x11   : > { %v252_v3 = vunpack.c.l.b16 %v220_v2  ;;  %v253_v4 = vunpack.c.h.b16 %v220_v2  ;;  %v451_v9 = vld [vmem:[%s552_s21 + $0x34] sm:$0xf]  ;;  %v436_v10 = vld [vmem:[%s552_s21 + $0x38] sm:$0xf0]  ;;  %v435_v13 = vor.u32 %v452_v8, %v434_v5  ;;  %v426_v15 = vld [vmem:[%s552_s21 + $0x20] sm:$0xf] }
  0x12   : > { %v439_v14 = vor.u32 %v451_v9, %v436_v10  ;;  %v450_v16 = vld [vmem:[%s552_s21 + $0x24] sm:$0xf0]  ;;  %v449_v17 = vld [vmem:[%s552_s21 + $0x24] sm:$0xf]  ;;  %v428_v18 = vld [vmem:[%s552_s21 + $0x28] sm:$0xf0] }
  0x13   : > { %v262_v6 = vpack.c.b16 %v252_v3, %v252_v3  ;;  %v263_v7 = vpack.c.b16 %v253_v4, %v253_v4  ;;  %v427_v19 = vor.u32 %v450_v16, %v426_v15  ;;  %v431_v20 = vor.u32 %v449_v17, %v428_v18  ;;  %v418_v21 = vld [vmem:[%s552_s21 + $0x10] sm:$0xf]  ;;  %v448_v22 = vld [vmem:[%s552_s21 + $0x14] sm:$0xf0]  ;;  %v447_v23 = vld [vmem:[%s552_s21 + $0x14] sm:$0xf] }
  0x14   : > { %v420_v24 = vld [vmem:[%s552_s21 + $0x18] sm:$0xf0]  ;;  %v419_v25 = vor.u32 %v448_v22, %v418_v21  ;;  %v410_v27 = vld [vmem:[%s552_s21] sm:$0xf]  ;;  %v446_v28 = vld [vmem:[%s552_s21 + $0x4] sm:$0xf0] }
  0x15   : > { %v278_v11 = vsel %vm276_vm0, %v262_v6, 0  ;;  %v281_v12 = vsel %vm276_vm0, %v263_v7, 0  ;;  %v423_v26 = vor.u32 %v447_v23, %v420_v24  ;;  %v445_v29 = vld [vmem:[%s552_s21 + $0x4] sm:$0xf]  ;;  %v412_v30 = vld [vmem:[%s552_s21 + $0x8] sm:$0xf0]  ;;  %v411_v31 = vor.u32 %v446_v28, %v410_v27 }
  0x16   : > { %286 = vmatpush.bf16.msra.mxu0 %v278_v11  ;;  %299 = vmatpush.bf16.msra.mxu1 %v281_v12  ;;  %v415_v32 = vor.u32 %v445_v29, %v412_v30 }
  0x1a   : > { %287 = vmatpush.bf16.msra.mxu0 %v435_v13  ;;  %300 = vmatpush.bf16.msra.mxu1 %v439_v14 }
  0x1e   : > { %288 = vmatpush.bf16.msra.mxu0 %v427_v19  ;;  %301 = vmatpush.bf16.msra.mxu1 %v431_v20 }
  0x22   : > { %289 = vmatpush.bf16.msra.mxu0 %v419_v25  ;;  %302 = vmatpush.bf16.msra.mxu1 %v423_v26 }
  0x26   : > { %290 = vmatpush.bf16.msra.mxu0 %v411_v31  ;;  %303 = vmatpush.bf16.msra.mxu1 %v415_v32 }
  0x29   : > { %440 = vmatmul.msk.bf16.vlgmr.msra.gmra.mxu0 %vm272_vm1, %v211_v33  ;;  %441 = vmatmul.msk.bf16.vlgmr.msra.gmra.mxu1 %vm272_vm1, %v211_v33 }
  0x80   : > { %v225_v34 = vpop.permute.xlu0 %224 }
  0xa6   : > { %v292_v35 = vpop.f32.mrf.mxu0  ;;  %v305_v36 = vpop.f32.mrf.mxu1 }
  0xa7   : > { %v293_v37 = vadd.f32 %v292_v35, %v225_v34  ;;  %v306_v38 = vadd.f32 %v305_v36, %v225_v34 }
  0xa9   : > { %v309_v39 = vmax.f32 %v293_v37, 0.0  ;;  %v310_v40 = vmax.f32 %v306_v38, 0.0 }
  0xab   : > { %311 = vst [vmem:[%s208_s27] sm:$0xff] %v309_v39 }
  0xac   : > { %312 = vst [vmem:[%s208_s27 + $0x8] sm:$0xff] %v310_v40 }
  0xae   : > { %v294_v41 = vpop.f32.mrf.mxu0  ;;  %v307_v42 = vpop.f32.mrf.mxu1 }
  0xaf PF: > { %s13_s14 = sadd.s32 1, %s502_s14   ;;  %s591_s12 = smov %s498_s13 }
  0xb0   : > { %p10_p5 = scmp.ge.s32.totalorder %s13_s14, 4   ;;  %s592_s13 = smov %s594_s15 }
  0xb2   :  { %12 = sbr.rel (!%p10_p5) target bundleno = 2 (0x2), region = 62 }

// kernel: backbone_v1_pallas.20
= control target key start
LH: loop header
LB: loop body
LE: loop exit
PB: predicated region body
PF: predicated region fallthrough
CT: control target
= control target key end

     0   :  { %s618_s15 = smov 0   ;;  %s620_s16 = smov 0   ;;  %s683_s0 = inlined_call_operand.vmem [shape: bf16[2,72,256], index: 0, kind: input, shape index: {}]   ;;  %s684_s1 = inlined_call_operand.vmem [shape: bf16[8,72], index: 1, kind: input, shape index: {}]   ;;  %s685_s2 = inlined_call_operand.vmem [shape: f32[8,1], index: 2, kind: input, shape index: {}]   ;;  %s686_s3 = inlined_call_operand.vmem [shape: f32[2,8,256], index: 3, kind: input, shape index: {}]   ;;  %s687_s4 = inlined_call_operand.vmem [shape: f32[2,8,256], index: 4, kind: output, shape index: {}]  }
   0x1   :  { %s622_s17 = smov 0  }
   0x2 LB: > { %s26_s18 = sadd.s32 1, %s586_s16  ;;  %p489_p0 = scmp.ge.s32.totalorder %s590_s17, 1  ;;  %s590_s17 = sphi %s622_s17, %s14_s17   ;;  %s586_s16 = sphi %s620_s16, %s689_s16   ;;  %s582_s15 = sphi %s618_s15, %s688_s15  }
   0x3   : > { %p28_p1 = scmp.ge.s32.totalorder %s26_s18, 2  ;;  %p200_p2 = scmp.lt.s32.totalorder %s590_s17, 3 }
   0x5   : > { %s691_s18 = smov (%p28_p1, %s26_s18), 0  ;;  %p201_p3 = pnand %p489_p0, %p200_p2 }
   0x6   : > { %p244_p4 = scmp.lt.s32.totalorder (!%p201_p3), %s582_s15, 1 }
   0x7   : > { %204 = sbr.rel (%p201_p3) target bundleno = 175 (0xaf), region = 36 }
   0xc   : > { %v592_v0 = vmov 0   ;;  %v284_v1 = vld [vmem:[%s685_s2] sm:$0xff]  ;;  %s693_s15 = smov (!%p244_p4, %s582_s15), 1  ;;  %vm339_vm0 = vcmask 1043456   ;;  %vm335_vm1 = vcmask 588800  }
   0xd   : > { %567 = vset.pattern.permute.xlu0 %v592_v0  ;;  %s541_s21 = smul.u32 72, %s693_s15  ;;  %v274_v33 = vld [vmem:[%s684_s1] sm:$0xf]  ;;  %s531_s27 = sshll.u32 %s693_s15, 4 }
   0xe   : > { %287 = vperm.xlu0 %567, %v284_v1   ;;  %s261_s30 = scalar_lea.vmem %s686_s3, %s531_s27  ;;  %s271_s7 = scalar_lea.vmem %s687_s4, %s531_s27 }
   0xf   : > { %s645_s24 = scalar_lea.vmem %s683_s0, %s541_s21  ;;  %v372_v36 = vld [vmem:[%s261_s30] sm:$0xff]  ;;  %v373_v38 = vld [vmem:[%s261_s30 + $0x8] sm:$0xff] }
  0x10   : > { %v283_v2 = vld [vmem:[%s645_s24 + $0x40] sm:$0xff]  ;;  %v521_v5 = vld [vmem:[%s645_s24 + $0x30] sm:$0xf]  ;;  %v540_v8 = vld [vmem:[%s645_s24 + $0x34] sm:$0xf0] }
  0x11   : > { %v315_v3 = vunpack.c.l.b16 %v283_v2  ;;  %v316_v4 = vunpack.c.h.b16 %v283_v2  ;;  %v539_v9 = vld [vmem:[%s645_s24 + $0x34] sm:$0xf]  ;;  %v523_v10 = vld [vmem:[%s645_s24 + $0x38] sm:$0xf0]  ;;  %v522_v13 = vor.u32 %v540_v8, %v521_v5  ;;  %v513_v15 = vld [vmem:[%s645_s24 + $0x20] sm:$0xf] }
  0x12   : > { %v526_v14 = vor.u32 %v539_v9, %v523_v10  ;;  %v538_v16 = vld [vmem:[%s645_s24 + $0x24] sm:$0xf0]  ;;  %v537_v17 = vld [vmem:[%s645_s24 + $0x24] sm:$0xf]  ;;  %v515_v18 = vld [vmem:[%s645_s24 + $0x28] sm:$0xf0] }
  0x13   : > { %v325_v6 = vpack.c.b16 %v315_v3, %v315_v3  ;;  %v326_v7 = vpack.c.b16 %v316_v4, %v316_v4  ;;  %v514_v19 = vor.u32 %v538_v16, %v513_v15  ;;  %v518_v20 = vor.u32 %v537_v17, %v515_v18  ;;  %v505_v21 = vld [vmem:[%s645_s24 + $0x10] sm:$0xf]  ;;  %v536_v22 = vld [vmem:[%s645_s24 + $0x14] sm:$0xf0]  ;;  %v535_v23 = vld [vmem:[%s645_s24 + $0x14] sm:$0xf] }
  0x14   : > { %v507_v24 = vld [vmem:[%s645_s24 + $0x18] sm:$0xf0]  ;;  %v506_v25 = vor.u32 %v536_v22, %v505_v21  ;;  %v497_v27 = vld [vmem:[%s645_s24] sm:$0xf]  ;;  %v534_v28 = vld [vmem:[%s645_s24 + $0x4] sm:$0xf0] }
  0x15   : > { %v341_v11 = vsel %vm339_vm0, %v325_v6, 0  ;;  %v344_v12 = vsel %vm339_vm0, %v326_v7, 0  ;;  %v510_v26 = vor.u32 %v535_v23, %v507_v24  ;;  %v533_v29 = vld [vmem:[%s645_s24 + $0x4] sm:$0xf]  ;;  %v499_v30 = vld [vmem:[%s645_s24 + $0x8] sm:$0xf0]  ;;  %v498_v31 = vor.u32 %v534_v28, %v497_v27 }
  0x16   : > { %349 = vmatpush.bf16.msra.mxu0 %v341_v11  ;;  %362 = vmatpush.bf16.msra.mxu1 %v344_v12  ;;  %v502_v32 = vor.u32 %v533_v29, %v499_v30 }
  0x1a   : > { %350 = vmatpush.bf16.msra.mxu0 %v522_v13  ;;  %363 = vmatpush.bf16.msra.mxu1 %v526_v14 }
  0x1e   : > { %351 = vmatpush.bf16.msra.mxu0 %v514_v19  ;;  %364 = vmatpush.bf16.msra.mxu1 %v518_v20 }
  0x22   : > { %352 = vmatpush.bf16.msra.mxu0 %v506_v25  ;;  %365 = vmatpush.bf16.msra.mxu1 %v510_v26 }
  0x26   : > { %353 = vmatpush.bf16.msra.mxu0 %v498_v31  ;;  %366 = vmatpush.bf16.msra.mxu1 %v502_v32 }
  0x29   : > { %527 = vmatmul.msk.bf16.vlgmr.msra.gmra.mxu0 %vm335_vm1, %v274_v33  ;;  %528 = vmatmul.msk.bf16.vlgmr.msra.gmra.mxu1 %vm335_vm1, %v274_v33 }
  0x80   : > { %v288_v34 = vpop.permute.xlu0 %287 }
  0xa6   : > { %v355_v35 = vpop.f32.mrf.mxu0  ;;  %v368_v37 = vpop.f32.mrf.mxu1 }
  0xa7   : > { %v356_v39 = vadd.f32 %v355_v35, %v288_v34  ;;  %v369_v40 = vadd.f32 %v368_v37, %v288_v34 }
  0xa9   : > { %v374_v41 = vadd.f32 %v372_v36, %v356_v39  ;;  %v375_v42 = vadd.f32 %v373_v38, %v369_v40 }
  0xab   : > { %v376_v43 = vmax.f32 %v374_v41, 0.0  ;;  %v377_v44 = vmax.f32 %v375_v42, 0.0 }
  0xad   : > { %378 = vst [vmem:[%s271_s7] sm:$0xff] %v376_v43 }
  0xae   : > { %379 = vst [vmem:[%s271_s7 + $0x8] sm:$0xff] %v377_v44  ;;  %v357_v45 = vpop.f32.mrf.mxu0  ;;  %v370_v46 = vpop.f32.mrf.mxu1 }
  0xaf PF: > { %s14_s17 = sadd.s32 1, %s590_s17   ;;  %s688_s15 = smov %s586_s16 }
  0xb0   : > { %p11_p5 = scmp.ge.s32.totalorder %s14_s17, 4   ;;  %s689_s16 = smov %s691_s18 }
  0xb2   :  { %13 = sbr.rel (!%p11_p5) target bundleno = 2 (0x2), region = 69 }

// kernel: backbone_v1_pallas.24
= control target key start
LH: loop header
LB: loop body
LE: loop exit
PB: predicated region body
PF: predicated region fallthrough
CT: control target
= control target key end

     0   :  { %s476_s12 = smov 0   ;;  %s478_s13 = smov 0   ;;  %s518_s0 = inlined_call_operand.vmem [shape: bf16[2,72,128], index: 0, kind: input, shape index: {}]   ;;  %s519_s1 = inlined_call_operand.vmem [shape: bf16[16,72], index: 1, kind: input, shape index: {}]   ;;  %s520_s2 = inlined_call_operand.vmem [shape: f32[16,1], index: 2, kind: input, shape index: {}]   ;;  %s521_s3 = inlined_call_operand.vmem [shape: f32[2,16,128], index: 3, kind: output, shape index: {}]  }
   0x1   :  { %s480_s14 = smov 0  }
   0x2 LB: > { %s25_s15 = sadd.s32 1, %s449_s13  ;;  %p371_p0 = scmp.ge.s32.totalorder %s453_s14, 1  ;;  %s453_s14 = sphi %s480_s14, %s13_s14   ;;  %s449_s13 = sphi %s478_s13, %s523_s13   ;;  %s445_s12 = sphi %s476_s12, %s522_s12  }
   0x3   : > { %p27_p1 = scmp.ge.s32.totalorder %s25_s15, 2  ;;  %p156_p2 = scmp.lt.s32.totalorder %s453_s14, 3 }
   0x5   : > { %s525_s15 = smov (%p27_p1, %s25_s15), 0  ;;  %p157_p3 = pnand %p371_p0, %p156_p2 }
   0x6   : > { %p186_p4 = scmp.lt.s32.totalorder (!%p157_p3), %s445_s12, 1 }
   0x7   : > { %160 = sbr.rel (%p157_p3) target bundleno = 180 (0xb4), region = 32 }
   0xc   : > { %v214_v0 = vld [vmem:[%s520_s2] sm:$0xff]  ;;  %v455_v1 = vmov 0   ;;  %s527_s12 = smov (!%p186_p4, %s445_s12), 1  ;;  %v215_v3 = vld [vmem:[%s520_s2 + $0x8] sm:$0xff]  ;;  %vm262_vm0 = vcmask 1043456   ;;  %vm258_vm1 = vcmask 588800  }
   0xd   : > { %430 = vset.pattern.permute.xlu0 %v455_v1  ;;  %s404_s18 = smul.u32 36, %s527_s12  ;;  %v399_v11 = vld [vmem:[%s519_s1] sm:$0xff]  ;;  %s398_s26 = sshll.u32 %s527_s12, 4 }
   0xe   : > { %218 = vperm.xlu0 %430, %v214_v0   ;;  %s201_s29 = scalar_lea.vmem %s521_s3, %s398_s26 }
   0xf   : > { %s193_s21 = scalar_lea.vmem %s518_s0, %s404_s18 }
  0x10   : > { %v213_v2 = vld [vmem:[%s193_s21 + $0x20] sm:$0xf]  ;;  %v403_v7 = vld [vmem:[%s193_s21 + $0x18] sm:$0xff]  ;;  %v402_v8 = vld [vmem:[%s193_s21 + $0x10] sm:$0xff] }
  0x11   : > { %v248_v4 = vunpack.c.l.b16 %v213_v2  ;;  %v401_v9 = vld [vmem:[%s193_s21 + $0x8] sm:$0xff]  ;;  %v400_v10 = vld [vmem:[%s193_s21] sm:$0xff] }
  0x13   : > { %v253_v5 = vpack.c.b16 %v248_v4, %v248_v4 }
  0x15   : > { %v264_v6 = vsel %vm262_vm0, %v253_v5, 0 }
  0x16   : > { %223 = vperm.xlu0 %430, %v215_v3   ;;  %269 = vmatpush.bf16.msra.mxu0 %v264_v6 }
  0x1a   : > { %270 = vmatpush.bf16.msra.mxu0 %v403_v7 }
  0x1e   : > { %271 = vmatpush.bf16.msra.mxu0 %v402_v8 }
  0x22   : > { %272 = vmatpush.bf16.msra.mxu0 %v401_v9 }
  0x26   : > { %273 = vmatpush.bf16.msra.mxu0 %v400_v10 }
  0x29   : > { %395 = vmatmul.msk.bf16.vlgmr.msra.gmra.mxu0 %vm258_vm1, %v399_v11 }
  0x80   : > { %v219_v12 = vpop.permute.xlu0 %218 }
  0x88   : > { %v224_v16 = vpop.permute.xlu0 %223 }
  0xa6   : > { %v275_v13 = vpop.f32.mrf.mxu0 }
  0xa7   : > { %v276_v14 = vadd.f32 %v275_v13, %v219_v12 }
  0xa9   : > { %v280_v15 = vmax.f32 %v276_v14, 0.0 }
  0xab   : > { %282 = vst [vmem:[%s201_s29] sm:$0xff] %v280_v15 }
  0xae   : > { %v277_v17 = vpop.f32.mrf.mxu0 }
  0xaf   : > { %v278_v18 = vadd.f32 %v277_v17, %v224_v16 }
  0xb1   : > { %v281_v19 = vmax.f32 %v278_v18, 0.0 }
  0xb3   : > { %283 = vst [vmem:[%s201_s29 + $0x8] sm:$0xff] %v281_v19 }
  0xb4 PF: > { %s13_s14 = sadd.s32 1, %s453_s14   ;;  %s522_s12 = smov %s449_s13 }
  0xb5   : > { %p10_p5 = scmp.ge.s32.totalorder %s13_s14, 4   ;;  %s523_s13 = smov %s525_s15 }
  0xb7   :  { %12 = sbr.rel (!%p10_p5) target bundleno = 2 (0x2), region = 62 }

// kernel: backbone_v1_pallas.23
= control target key start
LH: loop header
LB: loop body
LE: loop exit
PB: predicated region body
PF: predicated region fallthrough
CT: control target
= control target key end

     0   :  { %s412_s12 = smov 0   ;;  %s414_s13 = smov 0   ;;  %s454_s0 = inlined_call_operand.vmem [shape: bf16[2,8,128], index: 0, kind: input, shape index: {}]   ;;  %s455_s1 = inlined_call_operand.vmem [shape: bf16[16,8], index: 1, kind: input, shape index: {}]   ;;  %s456_s2 = inlined_call_operand.vmem [shape: f32[16,1], index: 2, kind: input, shape index: {}]   ;;  %s457_s3 = inlined_call_operand.vmem [shape: f32[2,16,128], index: 3, kind: output, shape index: {}]  }
   0x1   :  { %s416_s14 = smov 0  }
   0x2 LB: > { %s25_s15 = sadd.s32 1, %s385_s13  ;;  %p328_p0 = scmp.ge.s32.totalorder %s389_s14, 1  ;;  %s389_s14 = sphi %s416_s14, %s13_s14   ;;  %s385_s13 = sphi %s414_s13, %s459_s13   ;;  %s381_s12 = sphi %s412_s12, %s458_s12  }
   0x3   : > { %p27_p1 = scmp.ge.s32.totalorder %s25_s15, 2  ;;  %p155_p2 = scmp.lt.s32.totalorder %s389_s14, 3 }
   0x5   : > { %s461_s15 = smov (%p27_p1, %s25_s15), 0  ;;  %p156_p3 = pnand %p328_p0, %p155_p2 }
   0x6   : > { %p184_p4 = scmp.lt.s32.totalorder (!%p156_p3), %s381_s12, 1 }
   0x7   : > { %159 = sbr.rel (%p156_p3) target bundleno = 157 (0x9d), region = 32 }
   0xc   : > { %v203_v0 = vld [vmem:[%s456_s2] sm:$0xff]  ;;  %v391_v1 = vmov 0   ;;  %s463_s12 = smov (!%p184_p4, %s381_s12), 1  ;;  %vm224_vm0 = vcmask 1043456   ;;  %v204_v5 = vld [vmem:[%s456_s2 + $0x8] sm:$0xff]  ;;  %vm220_vm1 = vcmask 64512  }
   0xd   : > { %366 = vset.pattern.permute.xlu0 %v391_v1  ;;  %s329_s18 = sshll.u32 %s463_s12, 2  ;;  %v340_v4 = vld [vmem:[%s455_s1] sm:$0xff]  ;;  %s339_s26 = sshll.u32 %s463_s12, 4 }
   0xe   : > { %207 = vperm.xlu0 %366, %v203_v0   ;;  %s190_s21 = scalar_lea.vmem %s454_s0, %s329_s18  ;;  %s198_s29 = scalar_lea.vmem %s457_s3, %s339_s26 }
   0xf   : > { %v202_v2 = vld [vmem:[%s190_s21] sm:$0xf] }
  0x10   : > { %v226_v3 = vsel %vm224_vm0, %v202_v2, 0 }
  0x11   : > { %235 = vmatpush.bf16.msra.mxu0 %v226_v3 }
  0x14   : > { %336 = vmatmul.msk.bf16.vlgmr.msra.gmra.mxu0 %vm220_vm1, %v340_v4 }
  0x16   : > { %212 = vperm.xlu0 %366, %v204_v5  }
  0x80   : > { %v208_v6 = vpop.permute.xlu0 %207 }
  0x88   : > { %v213_v9 = vpop.permute.xlu0 %212 }
  0x91   : > { %v237_v7 = vpop.f32.mrf.mxu0 }
  0x92   : > { %v238_v8 = vadd.f32 %v237_v7, %v208_v6 }
  0x94   : > { %242 = vst [vmem:[%s198_s29] sm:$0xff] %v238_v8 }
  0x99   : > { %v239_v10 = vpop.f32.mrf.mxu0 }
  0x9a   : > { %v240_v11 = vadd.f32 %v239_v10, %v213_v9 }
  0x9c   : > { %243 = vst [vmem:[%s198_s29 + $0x8] sm:$0xff] %v240_v11 }
  0x9d PF: > { %s13_s14 = sadd.s32 1, %s389_s14   ;;  %s458_s12 = smov %s385_s13 }
  0x9e   : > { %p10_p5 = scmp.ge.s32.totalorder %s13_s14, 4   ;;  %s459_s13 = smov %s461_s15 }
  0xa0   :  { %12 = sbr.rel (!%p10_p5) target bundleno = 2 (0x2), region = 62 }

// kernel: backbone_v1_pallas.25
= control target key start
LH: loop header
LB: loop body
LE: loop exit
PB: predicated region body
PF: predicated region fallthrough
CT: control target
= control target key end

     0   :  { %s644_s15 = smov 0   ;;  %s646_s16 = smov 0   ;;  %s702_s0 = inlined_call_operand.vmem [shape: bf16[2,144,128], index: 0, kind: input, shape index: {}]   ;;  %s703_s1 = inlined_call_operand.vmem [shape: bf16[16,144], index: 1, kind: input, shape index: {}]   ;;  %s704_s2 = inlined_call_operand.vmem [shape: f32[16,1], index: 2, kind: input, shape index: {}]   ;;  %s705_s3 = inlined_call_operand.vmem [shape: f32[2,16,128], index: 3, kind: input, shape index: {}]   ;;  %s706_s4 = inlined_call_operand.vmem [shape: f32[2,16,128], index: 4, kind: output, shape index: {}]  }
   0x1   :  { %s648_s17 = smov 0  }
   0x2 LB: > { %s26_s18 = sadd.s32 1, %s612_s16  ;;  %p501_p0 = scmp.ge.s32.totalorder %s616_s17, 1  ;;  %s616_s17 = sphi %s648_s17, %s14_s17   ;;  %s612_s16 = sphi %s646_s16, %s708_s16   ;;  %s608_s15 = sphi %s644_s15, %s707_s15  }
   0x3   : > { %p28_p1 = scmp.ge.s32.totalorder %s26_s18, 2  ;;  %p196_p2 = scmp.lt.s32.totalorder %s616_s17, 3 }
   0x5   : > { %s710_s18 = smov (%p28_p1, %s26_s18), 0  ;;  %p197_p3 = pnand %p501_p0, %p196_p2 }
   0x6   : > { %p236_p4 = scmp.lt.s32.totalorder (!%p197_p3), %s608_s15, 1 }
   0x7   : > { %200 = sbr.rel (%p197_p3) target bundleno = 191 (0xbf), region = 36 }
   0xc   : > { %s712_s15 = smov (!%p236_p4, %s608_s15), 1  ;;  %v556_v1 = vld [vmem:[%s703_s1 + $0x4] sm:$0xf]  ;;  %v511_v2 = vld [vmem:[%s703_s1 + $0x8] sm:$0xf0]  ;;  %v618_v5 = vmov 0  }
   0xd   : > { %s567_s19 = smul.u32 72, %s712_s15  ;;  %593 = vset.pattern.permute.xlu0 %v618_v5  ;;  %v514_v6 = vor.u32 %v556_v1, %v511_v2  ;;  %v281_v7 = vld [vmem:[%s704_s2] sm:$0xff]  ;;  %vm356_vm0 = vcmask 130048   ;;  %v282_v9 = vld [vmem:[%s704_s2 + $0x8] sm:$0xff]  ;;  %s554_s9 = sshll.u32 %s712_s15, 4 }
   0xe   : > { %285 = vperm.xlu0 %593, %v281_v7   ;;  %v509_v15 = vld [vmem:[%s703_s1] sm:$0xf]  ;;  %v557_v16 = vld [vmem:[%s703_s1 + $0x4] sm:$0xf0]  ;;  %s251_s12 = scalar_lea.vmem %s705_s3, %s554_s9 }
   0xf   : > { %s243_s22 = scalar_lea.vmem %s702_s0, %s567_s19  ;;  %v510_v17 = vor.u32 %v557_v16, %v509_v15  ;;  %v388_v22 = vld [vmem:[%s251_s12] sm:$0xff]  ;;  %s259_s19 = scalar_lea.vmem %s706_s4, %s554_s9  ;;  %v389_v30 = vld [vmem:[%s251_s12 + $0x8] sm:$0xff] }
  0x10   : > { %v565_v0 = vld [vmem:[%s243_s22 + $0x38] sm:$0xff]  ;;  %v564_v3 = vld [vmem:[%s243_s22 + $0x30] sm:$0xff]  ;;  %v566_v4 = vld [vmem:[%s243_s22 + $0x40] sm:$0xff] }
  0x11   : > { %360 = vmatpush.bf16.msra.mxu0 %v565_v0  ;;  %381 = vmatpush.bf16.msra.mxu1 %v566_v4  ;;  %v563_v8 = vld [vmem:[%s243_s22 + $0x28] sm:$0xff]  ;;  %v562_v10 = vld [vmem:[%s243_s22 + $0x20] sm:$0xff]  ;;  %v561_v11 = vld [vmem:[%s243_s22 + $0x18] sm:$0xff] }
  0x12   : > { %v560_v12 = vld [vmem:[%s243_s22 + $0x10] sm:$0xff]  ;;  %v559_v13 = vld [vmem:[%s243_s22 + $0x8] sm:$0xff]  ;;  %v558_v14 = vld [vmem:[%s243_s22] sm:$0xff] }
  0x14   : > { %551 = vmatmul.msk.bf16.vlgmr.msra.gmra.mxu1 %vm356_vm0, %v514_v6 }
  0x15   : > { %361 = vmatpush.bf16.msra.mxu0 %v564_v3 }
  0x16   : > { %290 = vperm.xlu0 %593, %v282_v9  }
  0x19   : > { %362 = vmatpush.bf16.msra.mxu0 %v563_v8 }
  0x1d   : > { %363 = vmatpush.bf16.msra.mxu0 %v562_v10 }
  0x21   : > { %364 = vmatpush.bf16.msra.mxu0 %v561_v11 }
  0x25   : > { %365 = vmatpush.bf16.msra.mxu0 %v560_v12 }
  0x29   : > { %366 = vmatpush.bf16.msra.mxu0 %v559_v13 }
  0x2d   : > { %367 = vmatpush.bf16.msra.mxu0 %v558_v14 }
  0x30   : > { %368 = vmatmul.bf16.vlgmr.msra.gmra.mxu0 %v510_v17 }
  0x80   : > { %v286_v18 = vpop.permute.xlu0 %285 }
  0x88   : > { %v291_v26 = vpop.permute.xlu0 %290 }
  0x91   : > { %v383_v19 = vpop.f32.mrf.mxu1 }
  0x99   : > { %v385_v29 = vpop.f32.mrf.mxu1 }
  0xad   : > { %v369_v20 = vpop.f32.mrf.mxu0 }
  0xae   : > { %v370_v21 = vadd.f32 %v369_v20, %v286_v18 }
  0xb0   : > { %v384_v23 = vadd.f32 %v383_v19, %v370_v21 }
  0xb2   : > { %v390_v24 = vadd.f32 %v388_v22, %v384_v23 }
  0xb4   : > { %v392_v25 = vmax.f32 %v390_v24, 0.0 }
  0xb5   : > { %v371_v27 = vpop.f32.mrf.mxu0 }
  0xb6   : > { %394 = vst [vmem:[%s259_s19] sm:$0xff] %v392_v25  ;;  %v372_v28 = vadd.f32 %v371_v27, %v291_v26 }
  0xb8   : > { %v386_v31 = vadd.f32 %v385_v29, %v372_v28 }
  0xba   : > { %v391_v32 = vadd.f32 %v389_v30, %v386_v31 }
  0xbc   : > { %v393_v33 = vmax.f32 %v391_v32, 0.0 }
  0xbe   : > { %395 = vst [vmem:[%s259_s19 + $0x8] sm:$0xff] %v393_v33 }
  0xbf PF: > { %s14_s17 = sadd.s32 1, %s616_s17   ;;  %s707_s15 = smov %s612_s16 }
  0xc0   : > { %p11_p5 = scmp.ge.s32.totalorder %s14_s17, 4   ;;  %s708_s16 = smov %s710_s18 }
  0xc2   :  { %13 = sbr.rel (!%p11_p5) target bundleno = 2 (0x2), region = 69 }

// kernel: backbone_v1_pallas.26
= control target key start
LH: loop header
LB: loop body
LE: loop exit
PB: predicated region body
PF: predicated region fallthrough
CT: control target
= control target key end

     0   :  { %s556_s12 = smov 0   ;;  %s558_s13 = smov 0   ;;  %s611_s0 = inlined_call_operand.vmem [shape: bf16[2,144,128], index: 0, kind: input, shape index: {}]   ;;  %s612_s1 = inlined_call_operand.vmem [shape: bf16[16,144], index: 1, kind: input, shape index: {}]   ;;  %s613_s2 = inlined_call_operand.vmem [shape: f32[16,1], index: 2, kind: input, shape index: {}]   ;;  %s614_s3 = inlined_call_operand.vmem [shape: f32[2,16,128], index: 3, kind: output, shape index: {}]  }
   0x1   :  { %s560_s14 = smov 0  }
   0x2 LB: > { %s25_s15 = sadd.s32 1, %s529_s13  ;;  %p421_p0 = scmp.ge.s32.totalorder %s533_s14, 1  ;;  %s533_s14 = sphi %s560_s14, %s13_s14   ;;  %s529_s13 = sphi %s558_s13, %s616_s13   ;;  %s525_s12 = sphi %s556_s12, %s615_s12  }
   0x3   : > { %p27_p1 = scmp.ge.s32.totalorder %s25_s15, 2  ;;  %p156_p2 = scmp.lt.s32.totalorder %s533_s14, 3 }
   0x5   : > { %s618_s15 = smov (%p27_p1, %s25_s15), 0  ;;  %p157_p3 = pnand %p421_p0, %p156_p2 }
   0x6   : > { %p186_p4 = scmp.lt.s32.totalorder (!%p157_p3), %s525_s12, 1 }
   0x7   : > { %160 = sbr.rel (%p157_p3) target bundleno = 189 (0xbd), region = 32 }
   0xc   : > { %s620_s12 = smov (!%p186_p4, %s525_s12), 1  ;;  %v473_v1 = vld [vmem:[%s612_s1 + $0x4] sm:$0xf]  ;;  %v429_v2 = vld [vmem:[%s612_s1 + $0x8] sm:$0xf0]  ;;  %v535_v5 = vmov 0  }
   0xd   : > { %s484_s16 = smul.u32 72, %s620_s12  ;;  %510 = vset.pattern.permute.xlu0 %v535_v5  ;;  %v432_v6 = vor.u32 %v473_v1, %v429_v2  ;;  %v223_v7 = vld [vmem:[%s613_s2] sm:$0xff]  ;;  %vm298_vm0 = vcmask 130048   ;;  %v224_v9 = vld [vmem:[%s613_s2 + $0x8] sm:$0xff]  ;;  %s472_s5 = sshll.u32 %s620_s12, 4 }
   0xe   : > { %227 = vperm.xlu0 %510, %v223_v7   ;;  %v427_v15 = vld [vmem:[%s612_s1] sm:$0xf]  ;;  %v474_v16 = vld [vmem:[%s612_s1 + $0x4] sm:$0xf0]  ;;  %s201_s8 = scalar_lea.vmem %s614_s3, %s472_s5 }
   0xf   : > { %s193_s19 = scalar_lea.vmem %s611_s0, %s484_s16  ;;  %v428_v17 = vor.u32 %v474_v16, %v427_v15 }
  0x10   : > { %v482_v0 = vld [vmem:[%s193_s19 + $0x38] sm:$0xff]  ;;  %v481_v3 = vld [vmem:[%s193_s19 + $0x30] sm:$0xff]  ;;  %v483_v4 = vld [vmem:[%s193_s19 + $0x40] sm:$0xff] }
  0x11   : > { %302 = vmatpush.bf16.msra.mxu0 %v482_v0  ;;  %323 = vmatpush.bf16.msra.mxu1 %v483_v4  ;;  %v480_v8 = vld [vmem:[%s193_s19 + $0x28] sm:$0xff]  ;;  %v479_v10 = vld [vmem:[%s193_s19 + $0x20] sm:$0xff]  ;;  %v478_v11 = vld [vmem:[%s193_s19 + $0x18] sm:$0xff] }
  0x12   : > { %v477_v12 = vld [vmem:[%s193_s19 + $0x10] sm:$0xff]  ;;  %v476_v13 = vld [vmem:[%s193_s19 + $0x8] sm:$0xff]  ;;  %v475_v14 = vld [vmem:[%s193_s19] sm:$0xff] }
  0x14   : > { %469 = vmatmul.msk.bf16.vlgmr.msra.gmra.mxu1 %vm298_vm0, %v432_v6 }
  0x15   : > { %303 = vmatpush.bf16.msra.mxu0 %v481_v3 }
  0x16   : > { %232 = vperm.xlu0 %510, %v224_v9  }
  0x19   : > { %304 = vmatpush.bf16.msra.mxu0 %v480_v8 }
  0x1d   : > { %305 = vmatpush.bf16.msra.mxu0 %v479_v10 }
  0x21   : > { %306 = vmatpush.bf16.msra.mxu0 %v478_v11 }
  0x25   : > { %307 = vmatpush.bf16.msra.mxu0 %v477_v12 }
  0x29   : > { %308 = vmatpush.bf16.msra.mxu0 %v476_v13 }
  0x2d   : > { %309 = vmatpush.bf16.msra.mxu0 %v475_v14 }
  0x30   : > { %310 = vmatmul.bf16.vlgmr.msra.gmra.mxu0 %v428_v17 }
  0x80   : > { %v228_v18 = vpop.permute.xlu0 %227 }
  0x88   : > { %v233_v24 = vpop.permute.xlu0 %232 }
  0x91   : > { %v325_v19 = vpop.f32.mrf.mxu1 }
  0x99   : > { %v327_v27 = vpop.f32.mrf.mxu1 }
  0xad   : > { %v311_v20 = vpop.f32.mrf.mxu0 }
  0xae   : > { %v312_v21 = vadd.f32 %v311_v20, %v228_v18 }
  0xb0   : > { %v326_v22 = vadd.f32 %v325_v19, %v312_v21 }
  0xb2   : > { %v330_v23 = vmax.f32 %v326_v22, 0.0 }
  0xb4   : > { %332 = vst [vmem:[%s201_s8] sm:$0xff] %v330_v23 }
  0xb5   : > { %v313_v25 = vpop.f32.mrf.mxu0 }
  0xb6   : > { %v314_v26 = vadd.f32 %v313_v25, %v233_v24 }
  0xb8   : > { %v328_v28 = vadd.f32 %v327_v27, %v314_v26 }
  0xba   : > { %v331_v29 = vmax.f32 %v328_v28, 0.0 }
  0xbc   : > { %333 = vst [vmem:[%s201_s8 + $0x8] sm:$0xff] %v331_v29 }
  0xbd PF: > { %s13_s14 = sadd.s32 1, %s533_s14   ;;  %s615_s12 = smov %s529_s13 }
  0xbe   : > { %p10_p5 = scmp.ge.s32.totalorder %s13_s14, 4   ;;  %s616_s13 = smov %s618_s15 }
  0xc0   :  { %12 = sbr.rel (!%p10_p5) target bundleno = 2 (0x2), region = 62 }

// kernel: backbone_v1_pallas.29
= control target key start
LH: loop header
LB: loop body
LE: loop exit
PB: predicated region body
PF: predicated region fallthrough
CT: control target
= control target key end

     0   :  { %s616_s12 = smov 0   ;;  %s618_s13 = smov 0   ;;  %s702_s0 = inlined_call_operand.vmem [shape: bf16[2,144,128], index: 0, kind: input, shape index: {}]   ;;  %s703_s1 = inlined_call_operand.vmem [shape: bf16[32,144], index: 1, kind: input, shape index: {}]   ;;  %s704_s2 = inlined_call_operand.vmem [shape: f32[32,1], index: 2, kind: input, shape index: {}]   ;;  %s705_s3 = inlined_call_operand.vmem [shape: f32[2,32,128], index: 3, kind: output, shape index: {}]  }
   0x1   :  { %s620_s14 = smov 0  }
   0x2 LB: > { %s25_s15 = sadd.s32 1, %s589_s13  ;;  %p461_p0 = scmp.ge.s32.totalorder %s593_s14, 1  ;;  %s593_s14 = sphi %s620_s14, %s13_s14   ;;  %s589_s13 = sphi %s618_s13, %s707_s13   ;;  %s585_s12 = sphi %s616_s12, %s706_s12  }
   0x3   : > { %p27_p1 = scmp.ge.s32.totalorder %s25_s15, 2  ;;  %p156_p2 = scmp.lt.s32.totalorder %s593_s14, 3 }
   0x5   : > { %s709_s15 = smov (%p27_p1, %s25_s15), 0  ;;  %p157_p3 = pnand %p461_p0, %p156_p2 }
   0x6   : > { %p186_p4 = scmp.lt.s32.totalorder (!%p157_p3), %s585_s12, 1 }
   0x7   : > { %160 = sbr.rel (%p157_p3) target bundleno = 195 (0xc3), region = 32 }
   0xc   : > { %s711_s12 = smov (!%p186_p4, %s585_s12), 1  ;;  %v522_v1 = vld [vmem:[%s703_s1 + $0x4] sm:$0xf]  ;;  %v469_v2 = vld [vmem:[%s703_s1 + $0x8] sm:$0xf0]  ;;  %v595_v6 = vmov 0  }
   0xd   : > { %s543_s16 = smul.u32 72, %s711_s12  ;;  %v472_v5 = vor.u32 %v522_v1, %v469_v2  ;;  %570 = vset.pattern.permute.xlu1 %v595_v6  ;;  %v227_v7 = vld [vmem:[%s704_s2 + $0x10] sm:$0xff]  ;;  %v225_v8 = vld [vmem:[%s704_s2] sm:$0xff]  ;;  %vm321_vm0 = vcmask 130048   ;;  %569 = vset.pattern.permute.xlu0 %v595_v6  ;;  %v228_v10 = vld [vmem:[%s704_s2 + $0x18] sm:$0xff]  ;;  %s521_s22 = sshll.u32 %s711_s12, 5 }
   0xe   : > { %241 = vperm.xlu1 %570, %v227_v7   ;;  %231 = vperm.xlu0 %569, %v225_v8   ;;  %v226_v12 = vld [vmem:[%s704_s2 + $0x8] sm:$0xff]  ;;  %v524_v14 = vld [vmem:[%s703_s1 + $0x14] sm:$0xf]  ;;  %v477_v15 = vld [vmem:[%s703_s1 + $0x18] sm:$0xf0]  ;;  %s201_s24 = scalar_lea.vmem %s705_s3, %s521_s22 }
   0xf   : > { %s640_s19 = scalar_lea.vmem %s702_s0, %s543_s16  ;;  %v480_v17 = vor.u32 %v524_v14, %v477_v15  ;;  %v467_v19 = vld [vmem:[%s703_s1] sm:$0xf]  ;;  %v523_v20 = vld [vmem:[%s703_s1 + $0x4] sm:$0xf0]  ;;  %v475_v22 = vld [vmem:[%s703_s1 + $0x10] sm:$0xf] }
  0x10   : > { %v533_v0 = vld [vmem:[%s640_s19 + $0x38] sm:$0xff]  ;;  %v534_v3 = vld [vmem:[%s640_s19 + $0x40] sm:$0xff]  ;;  %v532_v4 = vld [vmem:[%s640_s19 + $0x30] sm:$0xff]  ;;  %v468_v24 = vor.u32 %v523_v20, %v467_v19 }
  0x11   : > { %328 = vmatpush.bf16.msra.mxu0 %v533_v0  ;;  %535 = vmatpush.bf16.msra.mxu2 %v533_v0  ;;  %v531_v9 = vld [vmem:[%s640_s19 + $0x28] sm:$0xff]  ;;  %v530_v11 = vld [vmem:[%s640_s19 + $0x20] sm:$0xff]  ;;  %v529_v13 = vld [vmem:[%s640_s19 + $0x18] sm:$0xff] }
  0x12   : > { %354 = vmatpush.bf16.msra.mxu1 %v534_v3  ;;  %v528_v16 = vld [vmem:[%s640_s19 + $0x10] sm:$0xff]  ;;  %v527_v18 = vld [vmem:[%s640_s19 + $0x8] sm:$0xff]  ;;  %v526_v21 = vld [vmem:[%s640_s19] sm:$0xff] }
  0x13   : > { %v525_v23 = vld [vmem:[%s703_s1 + $0x14] sm:$0xf0] }
  0x14   : > { %v476_v25 = vor.u32 %v525_v23, %v475_v22 }
  0x15   : > { %329 = vmatpush.bf16.msra.mxu0 %v532_v4  ;;  %536 = vmatpush.bf16.msra.mxu2 %v532_v4 }
  0x16   : > { %517 = vmatmul.msk.bf16.vlgmr.msra.gmra.mxu1 %vm321_vm0, %v472_v5  ;;  %246 = vperm.xlu1 %570, %v228_v10  }
  0x17   : > { %236 = vperm.xlu0 %569, %v226_v12  }
  0x19   : > { %330 = vmatpush.bf16.msra.mxu0 %v531_v9  ;;  %537 = vmatpush.bf16.msra.mxu2 %v531_v9 }
  0x1d   : > { %331 = vmatpush.bf16.msra.mxu0 %v530_v11  ;;  %538 = vmatpush.bf16.msra.mxu2 %v530_v11 }
  0x21   : > { %332 = vmatpush.bf16.msra.mxu0 %v529_v13  ;;  %539 = vmatpush.bf16.msra.mxu2 %v529_v13 }
  0x25   : > { %333 = vmatpush.bf16.msra.mxu0 %v528_v16  ;;  %540 = vmatpush.bf16.msra.mxu2 %v528_v16 }
  0x26   : > { %518 = vmatmul.msk.bf16.gmra.mxu1 %vm321_vm0, %v480_v17 }
  0x29   : > { %334 = vmatpush.bf16.msra.mxu0 %v527_v18  ;;  %541 = vmatpush.bf16.msra.mxu2 %v527_v18 }
  0x2d   : > { %335 = vmatpush.bf16.msra.mxu0 %v526_v21  ;;  %542 = vmatpush.bf16.msra.mxu2 %v526_v21 }
  0x30   : > { %336 = vmatmul.bf16.vlgmr.msra.gmra.mxu0 %v468_v24  ;;  %341 = vmatmul.bf16.vlgmr.msra.gmra.mxu2 %v476_v25 }
  0x80   : > { %v232_v28 = vpop.permute.xlu0 %231  ;;  %v242_v32 = vpop.permute.xlu1 %241 }
  0x88   : > { %v247_v44 = vpop.permute.xlu1 %246 }
  0x89   : > { %v237_v37 = vpop.permute.xlu0 %236 }
  0x93   : > { %v356_v26 = vpop.f32.mrf.mxu1 }
  0x9b   : > { %v358_v27 = vpop.f32.mrf.mxu1 }
  0xa3   : > { %v361_v34 = vpop.f32.mrf.mxu1 }
  0xab   : > { %v363_v47 = vpop.f32.mrf.mxu1 }
  0xad   : > { %v337_v29 = vpop.f32.mrf.mxu0 }
  0xae   : > { %v338_v30 = vadd.f32 %v337_v29, %v232_v28 }
  0xb0   : > { %v357_v31 = vadd.f32 %v356_v26, %v338_v30 }
  0xb2   : > { %v366_v33 = vmax.f32 %v357_v31, 0.0 }
  0xb3   : > { %v342_v35 = vpop.f32.mrf.mxu2 }
  0xb4   : > { %370 = vst [vmem:[%s201_s24] sm:$0xff] %v366_v33  ;;  %v343_v36 = vadd.f32 %v342_v35, %v242_v32 }
  0xb5   : > { %v339_v38 = vpop.f32.mrf.mxu0 }
  0xb6   : > { %v362_v39 = vadd.f32 %v361_v34, %v343_v36  ;;  %v340_v40 = vadd.f32 %v339_v38, %v237_v37 }
  0xb8   : > { %v368_v41 = vmax.f32 %v362_v39, 0.0  ;;  %v359_v42 = vadd.f32 %v358_v27, %v340_v40 }
  0xba   : > { %372 = vst [vmem:[%s201_s24 + $0x10] sm:$0xff] %v368_v41  ;;  %v367_v43 = vmax.f32 %v359_v42, 0.0 }
  0xbb   : > { %v344_v45 = vpop.f32.mrf.mxu2 }
  0xbc   : > { %371 = vst [vmem:[%s201_s24 + $0x8] sm:$0xff] %v367_v43  ;;  %v345_v46 = vadd.f32 %v344_v45, %v247_v44 }
  0xbe   : > { %v364_v48 = vadd.f32 %v363_v47, %v345_v46 }
  0xc0   : > { %v369_v49 = vmax.f32 %v364_v48, 0.0 }
  0xc2   : > { %373 = vst [vmem:[%s201_s24 + $0x18] sm:$0xff] %v369_v49 }
  0xc3 PF: > { %s13_s14 = sadd.s32 1, %s593_s14   ;;  %s706_s12 = smov %s589_s13 }
  0xc4   : > { %p10_p5 = scmp.ge.s32.totalorder %s13_s14, 4   ;;  %s707_s13 = smov %s709_s15 }
  0xc6   :  { %12 = sbr.rel (!%p10_p5) target bundleno = 2 (0x2), region = 62 }

// kernel: backbone_v1_pallas.28
= control target key start
LH: loop header
LB: loop body
LE: loop exit
PB: predicated region body
PF: predicated region fallthrough
CT: control target
= control target key end

     0   :  { %s465_s12 = smov 0   ;;  %s467_s13 = smov 0   ;;  %s516_s0 = inlined_call_operand.vmem [shape: bf16[2,16,128], index: 0, kind: input, shape index: {}]   ;;  %s517_s1 = inlined_call_operand.vmem [shape: bf16[32,16], index: 1, kind: input, shape index: {}]   ;;  %s518_s2 = inlined_call_operand.vmem [shape: f32[32,1], index: 2, kind: input, shape index: {}]   ;;  %s519_s3 = inlined_call_operand.vmem [shape: f32[2,32,128], index: 3, kind: output, shape index: {}]  }
   0x1   :  { %s469_s14 = smov 0  }
   0x2 LB: > { %s25_s15 = sadd.s32 1, %s438_s13  ;;  %p366_p0 = scmp.ge.s32.totalorder %s442_s14, 1  ;;  %s442_s14 = sphi %s469_s14, %s13_s14   ;;  %s438_s13 = sphi %s467_s13, %s521_s13   ;;  %s434_s12 = sphi %s465_s12, %s520_s12  }
   0x3   : > { %p27_p1 = scmp.ge.s32.totalorder %s25_s15, 2  ;;  %p156_p2 = scmp.lt.s32.totalorder %s442_s14, 3 }
   0x5   : > { %s523_s15 = smov (%p27_p1, %s25_s15), 0  ;;  %p157_p3 = pnand %p366_p0, %p156_p2 }
   0x6   : > { %p186_p4 = scmp.lt.s32.totalorder (!%p157_p3), %s434_s12, 1 }
   0x7   : > { %160 = sbr.rel (%p157_p3) target bundleno = 157 (0x9d), region = 32 }
   0xc   : > { %v211_v0 = vld [vmem:[%s518_s2 + $0x10] sm:$0xff]  ;;  %v444_v1 = vmov 0   ;;  %v209_v2 = vld [vmem:[%s518_s2] sm:$0xff]  ;;  %s525_s12 = smov (!%p186_p4, %s434_s12), 1  ;;  %v390_v5 = vld [vmem:[%s517_s1 + $0x8] sm:$0xff]  ;;  %vm249_vm0 = vcmask 130048  }
   0xd   : > { %419 = vset.pattern.permute.xlu1 %v444_v1  ;;  %418 = vset.pattern.permute.xlu0 %v444_v1  ;;  %s387_s20 = sshll.u32 %s525_s12, 3  ;;  %v389_v4 = vld [vmem:[%s517_s1] sm:$0xff]  ;;  %v212_v6 = vld [vmem:[%s518_s2 + $0x18] sm:$0xff]  ;;  %v210_v7 = vld [vmem:[%s518_s2 + $0x8] sm:$0xff]  ;;  %s388_s5 = sshll.u32 %s525_s12, 5 }
   0xe   : > { %225 = vperm.xlu1 %419, %v211_v0   ;;  %215 = vperm.xlu0 %418, %v209_v2   ;;  %s193_s23 = scalar_lea.vmem %s516_s0, %s387_s20  ;;  %s201_s8 = scalar_lea.vmem %s519_s3, %s388_s5 }
   0xf   : > { %v391_v3 = vld [vmem:[%s193_s23] sm:$0xff] }
  0x10   : > { %263 = vmatpush.bf16.msra.mxu0 %v391_v3  ;;  %392 = vmatpush.bf16.msra.mxu1 %v391_v3 }
  0x13   : > { %383 = vmatmul.msk.bf16.vlgmr.msra.gmra.mxu0 %vm249_vm0, %v389_v4  ;;  %384 = vmatmul.msk.bf16.vlgmr.msra.gmra.mxu1 %vm249_vm0, %v390_v5 }
  0x16   : > { %230 = vperm.xlu1 %419, %v212_v6   ;;  %220 = vperm.xlu0 %418, %v210_v7  }
  0x80   : > { %v226_v8 = vpop.permute.xlu1 %225  ;;  %v216_v9 = vpop.permute.xlu0 %215 }
  0x88   : > { %v231_v14 = vpop.permute.xlu1 %230  ;;  %v221_v15 = vpop.permute.xlu0 %220 }
  0x90   : > { %v265_v10 = vpop.f32.mrf.mxu0  ;;  %v270_v11 = vpop.f32.mrf.mxu1 }
  0x91   : > { %v266_v12 = vadd.f32 %v265_v10, %v216_v9  ;;  %v271_v13 = vadd.f32 %v270_v11, %v226_v8 }
  0x93   : > { %275 = vst [vmem:[%s201_s8] sm:$0xff] %v266_v12 }
  0x94   : > { %277 = vst [vmem:[%s201_s8 + $0x10] sm:$0xff] %v271_v13 }
  0x98   : > { %v267_v16 = vpop.f32.mrf.mxu0  ;;  %v272_v17 = vpop.f32.mrf.mxu1 }
  0x99   : > { %v268_v18 = vadd.f32 %v267_v16, %v221_v15  ;;  %v273_v19 = vadd.f32 %v272_v17, %v231_v14 }
  0x9b   : > { %276 = vst [vmem:[%s201_s8 + $0x8] sm:$0xff] %v268_v18 }
  0x9c   : > { %278 = vst [vmem:[%s201_s8 + $0x18] sm:$0xff] %v273_v19 }
  0x9d PF: > { %s13_s14 = sadd.s32 1, %s442_s14   ;;  %s520_s12 = smov %s438_s13 }
  0x9e   : > { %p10_p5 = scmp.ge.s32.totalorder %s13_s14, 4   ;;  %s521_s13 = smov %s523_s15 }
  0xa0   :  { %12 = sbr.rel (!%p10_p5) target bundleno = 2 (0x2), region = 62 }

// kernel: backbone_v1_pallas.30
= control target key start
LH: loop header
LB: loop body
LE: loop exit
PB: predicated region body
PF: predicated region fallthrough
CT: control target
= control target key end

     0   :  { %s870_s15 = smov 0   ;;  %s872_s16 = smov 0   ;;  %s992_s0 = inlined_call_operand.vmem [shape: bf16[2,288,128], index: 0, kind: input, shape index: {}]   ;;  %s993_s1 = inlined_call_operand.vmem [shape: bf16[32,288], index: 1, kind: input, shape index: {}]   ;;  %s994_s2 = inlined_call_operand.vmem [shape: f32[32,1], index: 2, kind: input, shape index: {}]   ;;  %s995_s3 = inlined_call_operand.vmem [shape: f32[2,32,128], index: 3, kind: input, shape index: {}]   ;;  %s996_s4 = inlined_call_operand.vmem [shape: f32[2,32,128], index: 4, kind: output, shape index: {}]  }
   0x1   :  { %s874_s17 = smov 0  }
   0x2 LB: > { %s26_s18 = sadd.s32 1, %s838_s16  ;;  %p652_p0 = scmp.ge.s32.totalorder %s842_s17, 1  ;;  %s842_s17 = sphi %s874_s17, %s14_s17   ;;  %s838_s16 = sphi %s872_s16, %s998_s16   ;;  %s834_s15 = sphi %s870_s15, %s997_s15  }
   0x3   : > { %p28_p1 = scmp.ge.s32.totalorder %s26_s18, 2  ;;  %p196_p2 = scmp.lt.s32.totalorder %s842_s17, 3 }
   0x5   : > { %s1000_s18 = smov (%p28_p1, %s26_s18), 0  ;;  %p197_p3 = pnand %p652_p0, %p196_p2 }
   0x6   : > { %p236_p4 = scmp.lt.s32.totalorder (!%p197_p3), %s834_s15, 1 }
   0x7   : > { %200 = sbr.rel (%p197_p3) target bundleno = 208 (0xd0), region = 36 }
   0xc   : > { %s1002_s15 = smov (!%p236_p4, %s834_s15), 1  ;;  %v844_v5 = vmov 0   ;;  %v668_v7 = vld [vmem:[%s993_s1 + $0x8] sm:$0xf]  ;;  %v762_v8 = vld [vmem:[%s993_s1 + $0x10] sm:$0xf0] }
   0xd   : > { %s792_s19 = smul.u32 144, %s1002_s15  ;;  %818 = vset.pattern.permute.xlu0 %v844_v5  ;;  %819 = vset.pattern.permute.xlu1 %v844_v5  ;;  %v669_v11 = vor.u32 %v762_v8, %v668_v7  ;;  %v305_v12 = vld [vmem:[%s994_s2] sm:$0xff]  ;;  %vm467_vm0 = vcmask 261120   ;;  %v307_v18 = vld [vmem:[%s994_s2 + $0x10] sm:$0xff]  ;;  %v306_v19 = vld [vmem:[%s994_s2 + $0x8] sm:$0xff]  ;;  %s758_s7 = sshll.u32 %s1002_s15, 5 }
   0xe   : > { %311 = vperm.xlu0 %818, %v305_v12   ;;  %321 = vperm.xlu1 %819, %v307_v18   ;;  %v680_v21 = vld [vmem:[%s993_s1 + $0x20] sm:$0xf]  ;;  %v765_v22 = vld [vmem:[%s993_s1 + $0x28] sm:$0xf0]  ;;  %v308_v28 = vld [vmem:[%s994_s2 + $0x18] sm:$0xff]  ;;  %s968_s10 = scalar_lea.vmem %s995_s3, %s758_s7  ;;  %s974_s15 = scalar_lea.vmem %s996_s4, %s758_s7 }
   0xf   : > { %s894_s22 = scalar_lea.vmem %s992_s0, %s792_s19  ;;  %v681_v25 = vor.u32 %v765_v22, %v680_v21  ;;  %v660_v26 = vld [vmem:[%s993_s1] sm:$0xf]  ;;  %v761_v27 = vld [vmem:[%s993_s1 + $0x8] sm:$0xf0]  ;;  %v672_v30 = vld [vmem:[%s993_s1 + $0x18] sm:$0xf] }
  0x10   : > { %v773_v0 = vld [vmem:[%s894_s22 + $0x38] sm:$0xff]  ;;  %v772_v2 = vld [vmem:[%s894_s22 + $0x30] sm:$0xff]  ;;  %v783_v3 = vld [vmem:[%s894_s22 + $0x88] sm:$0xff]  ;;  %v661_v35 = vor.u32 %v761_v27, %v660_v26 }
  0x11   : > { %v781_v1 = vld [vmem:[%s894_s22 + $0x78] sm:$0xff]  ;;  %474 = vmatpush.bf16.msra.mxu0 %v773_v0  ;;  %784 = vmatpush.bf16.msra.mxu3 %v773_v0  ;;  %v780_v4 = vld [vmem:[%s894_s22 + $0x70] sm:$0xff]  ;;  %v782_v6 = vld [vmem:[%s894_s22 + $0x80] sm:$0xff] }
  0x12   : > { %493 = vmatpush.bf16.msra.mxu1 %v781_v1  ;;  %518 = vmatpush.bf16.msra.mxu2 %v783_v3  ;;  %v771_v9 = vld [vmem:[%s894_s22 + $0x28] sm:$0xff]  ;;  %v770_v13 = vld [vmem:[%s894_s22 + $0x20] sm:$0xff]  ;;  %v769_v15 = vld [vmem:[%s894_s22 + $0x18] sm:$0xff] }
  0x13   : > { %v779_v10 = vld [vmem:[%s894_s22 + $0x68] sm:$0xff]  ;;  %v778_v14 = vld [vmem:[%s894_s22 + $0x60] sm:$0xff]  ;;  %v777_v16 = vld [vmem:[%s894_s22 + $0x58] sm:$0xff] }
  0x14   : > { %v768_v17 = vld [vmem:[%s894_s22 + $0x10] sm:$0xff]  ;;  %v767_v23 = vld [vmem:[%s894_s22 + $0x8] sm:$0xff]  ;;  %v766_v29 = vld [vmem:[%s894_s22] sm:$0xff] }
  0x15   : > { %475 = vmatpush.bf16.msra.mxu0 %v772_v2  ;;  %785 = vmatpush.bf16.msra.mxu3 %v772_v2  ;;  %v776_v20 = vld [vmem:[%s894_s22 + $0x50] sm:$0xff]  ;;  %v775_v24 = vld [vmem:[%s894_s22 + $0x48] sm:$0xff]  ;;  %v764_v31 = vld [vmem:[%s993_s1 + $0x20] sm:$0xf0] }
  0x16   : > { %494 = vmatpush.bf16.msra.mxu1 %v780_v4  ;;  %519 = vmatpush.bf16.msra.mxu2 %v782_v6  ;;  %v774_v32 = vld [vmem:[%s894_s22 + $0x40] sm:$0xff]  ;;  %v662_v34 = vld [vmem:[%s993_s1 + $0xc] sm:$0xf0]  ;;  %v673_v36 = vor.u32 %v764_v31, %v672_v30  ;;  %v763_v38 = vld [vmem:[%s993_s1 + $0x1c] sm:$0xf] }
  0x17   : > { %316 = vperm.xlu0 %818, %v306_v19   ;;  %v760_v33 = vld [vmem:[%s993_s1 + $0x4] sm:$0xf]  ;;  %326 = vperm.xlu1 %819, %v308_v28   ;;  %v674_v39 = vld [vmem:[%s993_s1 + $0x24] sm:$0xf0]  ;;  %v533_v3 = vld [vmem:[%s968_s10 + $0x10] sm:$0xff] }
  0x18   : > { %v665_v37 = vor.u32 %v760_v33, %v662_v34  ;;  %v677_v40 = vor.u32 %v763_v38, %v674_v39  ;;  %v531_v47 = vld [vmem:[%s968_s10] sm:$0xff]  ;;  %v532_v59 = vld [vmem:[%s968_s10 + $0x8] sm:$0xff] }
  0x19   : > { %476 = vmatpush.bf16.msra.mxu0 %v771_v9  ;;  %786 = vmatpush.bf16.msra.mxu3 %v771_v9 }
  0x1a   : > { %495 = vmatpush.bf16.msra.mxu1 %v779_v10  ;;  %754 = vmatmul.msk.bf16.vlgmr.msra.gmra.mxu2 %vm467_vm0, %v669_v11 }
  0x1d   : > { %477 = vmatpush.bf16.msra.mxu0 %v770_v13  ;;  %787 = vmatpush.bf16.msra.mxu3 %v770_v13  ;;  %v534_v13 = vld [vmem:[%s968_s10 + $0x18] sm:$0xff] }
  0x1e   : > { %496 = vmatpush.bf16.msra.mxu1 %v778_v14 }
  0x21   : > { %478 = vmatpush.bf16.msra.mxu0 %v769_v15  ;;  %788 = vmatpush.bf16.msra.mxu3 %v769_v15 }
  0x22   : > { %497 = vmatpush.bf16.msra.mxu1 %v777_v16 }
  0x25   : > { %479 = vmatpush.bf16.msra.mxu0 %v768_v17  ;;  %789 = vmatpush.bf16.msra.mxu3 %v768_v17 }
  0x26   : > { %498 = vmatpush.bf16.msra.mxu1 %v776_v20 }
  0x29   : > { %480 = vmatpush.bf16.msra.mxu0 %v767_v23  ;;  %790 = vmatpush.bf16.msra.mxu3 %v767_v23 }
  0x2a   : > { %499 = vmatpush.bf16.msra.mxu1 %v775_v24  ;;  %755 = vmatmul.msk.bf16.gmra.mxu2 %vm467_vm0, %v681_v25 }
  0x2d   : > { %481 = vmatpush.bf16.msra.mxu0 %v766_v29  ;;  %791 = vmatpush.bf16.msra.mxu3 %v766_v29 }
  0x2e   : > { %500 = vmatpush.bf16.msra.mxu1 %v774_v32 }
  0x30   : > { %482 = vmatmul.bf16.vlgmr.msra.gmra.mxu0 %v661_v35  ;;  %487 = vmatmul.bf16.vlgmr.msra.gmra.mxu3 %v673_v36 }
  0x31   : > { %501 = vmatmul.bf16.vlgmr.msra.gmra.mxu1 %v665_v37 }
  0x41   : > { %506 = vmatmul.bf16.gmra.mxu1 %v677_v40 }
  0x80   : > { %v312_v41 = vpop.permute.xlu0 %311  ;;  %v322_v56 = vpop.permute.xlu1 %321 }
  0x89   : > { %v317_v49 = vpop.permute.xlu0 %316  ;;  %v327_v5 = vpop.permute.xlu1 %326 }
  0x9d   : > { %v521_v42 = vpop.f32.mrf.mxu2 }
  0xa5   : > { %v523_v51 = vpop.f32.mrf.mxu2 }
  0xad   : > { %v483_v43 = vpop.f32.mrf.mxu0  ;;  %v526_v0 = vpop.f32.mrf.mxu2 }
  0xae   : > { %v484_v44 = vadd.f32 %v483_v43, %v312_v41  ;;  %v502_v45 = vpop.f32.mrf.mxu1 }
  0xb0   : > { %v503_v46 = vadd.f32 %v502_v45, %v484_v44 }
  0xb2   : > { %v522_v48 = vadd.f32 %v521_v42, %v503_v46 }
  0xb3   : > { %v488_v57 = vpop.f32.mrf.mxu3 }
  0xb4   : > { %v535_v50 = vadd.f32 %v531_v47, %v522_v48  ;;  %v489_v61 = vadd.f32 %v488_v57, %v322_v56 }
  0xb5   : > { %v485_v52 = vpop.f32.mrf.mxu0  ;;  %v528_v12 = vpop.f32.mrf.mxu2 }
  0xb6   : > { %v539_v53 = vmax.f32 %v535_v50, 0.0  ;;  %v486_v54 = vadd.f32 %v485_v52, %v317_v49  ;;  %v504_v55 = vpop.f32.mrf.mxu1 }
  0xb8   : > { %543 = vst [vmem:[%s974_s15] sm:$0xff] %v539_v53  ;;  %v505_v58 = vadd.f32 %v504_v55, %v486_v54 }
  0xba   : > { %v524_v60 = vadd.f32 %v523_v51, %v505_v58 }
  0xbb   : > { %v490_v6 = vpop.f32.mrf.mxu3 }
  0xbc   : > { %v536_v62 = vadd.f32 %v532_v59, %v524_v60  ;;  %v491_v8 = vadd.f32 %v490_v6, %v327_v5 }
  0xbe   : > { %v540_v63 = vmax.f32 %v536_v62, 0.0  ;;  %v507_v1 = vpop.f32.mrf.mxu1 }
  0xbf   : > { %v508_v2 = vadd.f32 %v507_v1, %v489_v61 }
  0xc0   : > { %544 = vst [vmem:[%s974_s15 + $0x8] sm:$0xff] %v540_v63 }
  0xc1   : > { %v527_v4 = vadd.f32 %v526_v0, %v508_v2 }
  0xc3   : > { %v537_v7 = vadd.f32 %v533_v3, %v527_v4 }
  0xc5   : > { %v541_v9 = vmax.f32 %v537_v7, 0.0 }
  0xc6   : > { %v509_v10 = vpop.f32.mrf.mxu1 }
  0xc7   : > { %545 = vst [vmem:[%s974_s15 + $0x10] sm:$0xff] %v541_v9  ;;  %v510_v11 = vadd.f32 %v509_v10, %v491_v8 }
  0xc9   : > { %v529_v14 = vadd.f32 %v528_v12, %v510_v11 }
  0xcb   : > { %v538_v15 = vadd.f32 %v534_v13, %v529_v14 }
  0xcd   : > { %v542_v16 = vmax.f32 %v538_v15, 0.0 }
  0xcf   : > { %546 = vst [vmem:[%s974_s15 + $0x18] sm:$0xff] %v542_v16 }
  0xd0 PF: > { %s14_s17 = sadd.s32 1, %s842_s17   ;;  %s997_s15 = smov %s838_s16 }
  0xd1   : > { %p11_p5 = scmp.ge.s32.totalorder %s14_s17, 4   ;;  %s998_s16 = smov %s1000_s18 }
  0xd3   :  { %13 = sbr.rel (!%p11_p5) target bundleno = 2 (0x2), region = 69 }

// kernel: backbone_v1_pallas.31
= control target key start
LH: loop header
LB: loop body
LE: loop exit
PB: predicated region body
PF: predicated region fallthrough
CT: control target
= control target key end

     0   :  { %s778_s12 = smov 0   ;;  %s780_s13 = smov 0   ;;  %s885_s0 = inlined_call_operand.vmem [shape: bf16[2,288,128], index: 0, kind: input, shape index: {}]   ;;  %s886_s1 = inlined_call_operand.vmem [shape: bf16[32,288], index: 1, kind: input, shape index: {}]   ;;  %s887_s2 = inlined_call_operand.vmem [shape: f32[32,1], index: 2, kind: input, shape index: {}]   ;;  %s888_s3 = inlined_call_operand.vmem [shape: f32[2,32,128], index: 3, kind: output, shape index: {}]  }
   0x1   :  { %s782_s14 = smov 0  }
   0x2 LB: > { %s25_s15 = sadd.s32 1, %s751_s13  ;;  %p568_p0 = scmp.ge.s32.totalorder %s755_s14, 1  ;;  %s755_s14 = sphi %s782_s14, %s13_s14   ;;  %s751_s13 = sphi %s780_s13, %s890_s13   ;;  %s747_s12 = sphi %s778_s12, %s889_s12  }
   0x3   : > { %p27_p1 = scmp.ge.s32.totalorder %s25_s15, 2  ;;  %p156_p2 = scmp.lt.s32.totalorder %s755_s14, 3 }
   0x5   : > { %s892_s15 = smov (%p27_p1, %s25_s15), 0  ;;  %p157_p3 = pnand %p568_p0, %p156_p2 }
   0x6   : > { %p186_p4 = scmp.lt.s32.totalorder (!%p157_p3), %s747_s12, 1 }
   0x7   : > { %160 = sbr.rel (%p157_p3) target bundleno = 206 (0xce), region = 32 }
   0xc   : > { %s894_s12 = smov (!%p186_p4, %s747_s12), 1  ;;  %v757_v5 = vmov 0   ;;  %v582_v7 = vld [vmem:[%s886_s1 + $0x8] sm:$0xf]  ;;  %v675_v8 = vld [vmem:[%s886_s1 + $0x10] sm:$0xf0] }
   0xd   : > { %s705_s16 = smul.u32 144, %s894_s12  ;;  %731 = vset.pattern.permute.xlu0 %v757_v5  ;;  %732 = vset.pattern.permute.xlu1 %v757_v5  ;;  %v583_v11 = vor.u32 %v675_v8, %v582_v7  ;;  %v247_v12 = vld [vmem:[%s887_s2] sm:$0xff]  ;;  %vm409_vm0 = vcmask 261120   ;;  %v249_v18 = vld [vmem:[%s887_s2 + $0x10] sm:$0xff]  ;;  %v248_v19 = vld [vmem:[%s887_s2 + $0x8] sm:$0xff]  ;;  %s672_s29 = sshll.u32 %s894_s12, 5 }
   0xe   : > { %253 = vperm.xlu0 %731, %v247_v12   ;;  %263 = vperm.xlu1 %732, %v249_v18   ;;  %v594_v21 = vld [vmem:[%s886_s1 + $0x20] sm:$0xf]  ;;  %v678_v22 = vld [vmem:[%s886_s1 + $0x28] sm:$0xf0]  ;;  %v250_v28 = vld [vmem:[%s887_s2 + $0x18] sm:$0xff]  ;;  %s201_s5 = scalar_lea.vmem %s888_s3, %s672_s29 }
   0xf   : > { %s802_s19 = scalar_lea.vmem %s885_s0, %s705_s16  ;;  %v595_v25 = vor.u32 %v678_v22, %v594_v21  ;;  %v574_v26 = vld [vmem:[%s886_s1] sm:$0xf]  ;;  %v674_v27 = vld [vmem:[%s886_s1 + $0x8] sm:$0xf0]  ;;  %v586_v30 = vld [vmem:[%s886_s1 + $0x18] sm:$0xf] }
  0x10   : > { %v686_v0 = vld [vmem:[%s802_s19 + $0x38] sm:$0xff]  ;;  %v685_v2 = vld [vmem:[%s802_s19 + $0x30] sm:$0xff]  ;;  %v696_v3 = vld [vmem:[%s802_s19 + $0x88] sm:$0xff]  ;;  %v575_v35 = vor.u32 %v674_v27, %v574_v26 }
  0x11   : > { %v694_v1 = vld [vmem:[%s802_s19 + $0x78] sm:$0xff]  ;;  %416 = vmatpush.bf16.msra.mxu0 %v686_v0  ;;  %697 = vmatpush.bf16.msra.mxu3 %v686_v0  ;;  %v693_v4 = vld [vmem:[%s802_s19 + $0x70] sm:$0xff]  ;;  %v695_v6 = vld [vmem:[%s802_s19 + $0x80] sm:$0xff] }
  0x12   : > { %435 = vmatpush.bf16.msra.mxu1 %v694_v1  ;;  %460 = vmatpush.bf16.msra.mxu2 %v696_v3  ;;  %v684_v9 = vld [vmem:[%s802_s19 + $0x28] sm:$0xff]  ;;  %v683_v13 = vld [vmem:[%s802_s19 + $0x20] sm:$0xff]  ;;  %v682_v15 = vld [vmem:[%s802_s19 + $0x18] sm:$0xff] }
  0x13   : > { %v692_v10 = vld [vmem:[%s802_s19 + $0x68] sm:$0xff]  ;;  %v691_v14 = vld [vmem:[%s802_s19 + $0x60] sm:$0xff]  ;;  %v690_v16 = vld [vmem:[%s802_s19 + $0x58] sm:$0xff] }
  0x14   : > { %v681_v17 = vld [vmem:[%s802_s19 + $0x10] sm:$0xff]  ;;  %v680_v23 = vld [vmem:[%s802_s19 + $0x8] sm:$0xff]  ;;  %v679_v29 = vld [vmem:[%s802_s19] sm:$0xff] }
  0x15   : > { %417 = vmatpush.bf16.msra.mxu0 %v685_v2  ;;  %698 = vmatpush.bf16.msra.mxu3 %v685_v2  ;;  %v689_v20 = vld [vmem:[%s802_s19 + $0x50] sm:$0xff]  ;;  %v688_v24 = vld [vmem:[%s802_s19 + $0x48] sm:$0xff]  ;;  %v677_v31 = vld [vmem:[%s886_s1 + $0x20] sm:$0xf0] }
  0x16   : > { %436 = vmatpush.bf16.msra.mxu1 %v693_v4  ;;  %461 = vmatpush.bf16.msra.mxu2 %v695_v6  ;;  %v687_v32 = vld [vmem:[%s802_s19 + $0x40] sm:$0xff]  ;;  %v576_v34 = vld [vmem:[%s886_s1 + $0xc] sm:$0xf0]  ;;  %v587_v36 = vor.u32 %v677_v31, %v586_v30  ;;  %v676_v38 = vld [vmem:[%s886_s1 + $0x1c] sm:$0xf] }
  0x17   : > { %258 = vperm.xlu0 %731, %v248_v19   ;;  %v673_v33 = vld [vmem:[%s886_s1 + $0x4] sm:$0xf]  ;;  %268 = vperm.xlu1 %732, %v250_v28   ;;  %v588_v39 = vld [vmem:[%s886_s1 + $0x24] sm:$0xf0] }
  0x18   : > { %v579_v37 = vor.u32 %v673_v33, %v576_v34  ;;  %v591_v40 = vor.u32 %v676_v38, %v588_v39 }
  0x19   : > { %418 = vmatpush.bf16.msra.mxu0 %v684_v9  ;;  %699 = vmatpush.bf16.msra.mxu3 %v684_v9 }
  0x1a   : > { %437 = vmatpush.bf16.msra.mxu1 %v692_v10  ;;  %668 = vmatmul.msk.bf16.vlgmr.msra.gmra.mxu2 %vm409_vm0, %v583_v11 }
  0x1d   : > { %419 = vmatpush.bf16.msra.mxu0 %v683_v13  ;;  %700 = vmatpush.bf16.msra.mxu3 %v683_v13 }
  0x1e   : > { %438 = vmatpush.bf16.msra.mxu1 %v691_v14 }
  0x21   : > { %420 = vmatpush.bf16.msra.mxu0 %v682_v15  ;;  %701 = vmatpush.bf16.msra.mxu3 %v682_v15 }
  0x22   : > { %439 = vmatpush.bf16.msra.mxu1 %v690_v16 }
  0x25   : > { %421 = vmatpush.bf16.msra.mxu0 %v681_v17  ;;  %702 = vmatpush.bf16.msra.mxu3 %v681_v17 }
  0x26   : > { %440 = vmatpush.bf16.msra.mxu1 %v689_v20 }
  0x29   : > { %422 = vmatpush.bf16.msra.mxu0 %v680_v23  ;;  %703 = vmatpush.bf16.msra.mxu3 %v680_v23 }
  0x2a   : > { %441 = vmatpush.bf16.msra.mxu1 %v688_v24  ;;  %669 = vmatmul.msk.bf16.gmra.mxu2 %vm409_vm0, %v595_v25 }
  0x2d   : > { %423 = vmatpush.bf16.msra.mxu0 %v679_v29  ;;  %704 = vmatpush.bf16.msra.mxu3 %v679_v29 }
  0x2e   : > { %442 = vmatpush.bf16.msra.mxu1 %v687_v32 }
  0x30   : > { %424 = vmatmul.bf16.vlgmr.msra.gmra.mxu0 %v575_v35  ;;  %429 = vmatmul.bf16.vlgmr.msra.gmra.mxu3 %v587_v36 }
  0x31   : > { %443 = vmatmul.bf16.vlgmr.msra.gmra.mxu1 %v579_v37 }
  0x41   : > { %448 = vmatmul.bf16.gmra.mxu1 %v591_v40 }
  0x80   : > { %v254_v41 = vpop.permute.xlu0 %253  ;;  %v264_v54 = vpop.permute.xlu1 %263 }
  0x89   : > { %v259_v48 = vpop.permute.xlu0 %258  ;;  %v269_v0 = vpop.permute.xlu1 %268 }
  0x9d   : > { %v463_v42 = vpop.f32.mrf.mxu2 }
  0xa5   : > { %v465_v50 = vpop.f32.mrf.mxu2 }
  0xad   : > { %v425_v43 = vpop.f32.mrf.mxu0  ;;  %v468_v60 = vpop.f32.mrf.mxu2 }
  0xae   : > { %v426_v44 = vadd.f32 %v425_v43, %v254_v41  ;;  %v444_v45 = vpop.f32.mrf.mxu1 }
  0xb0   : > { %v445_v46 = vadd.f32 %v444_v45, %v426_v44 }
  0xb2   : > { %v464_v47 = vadd.f32 %v463_v42, %v445_v46 }
  0xb3   : > { %v430_v55 = vpop.f32.mrf.mxu3 }
  0xb4   : > { %v473_v49 = vmax.f32 %v464_v47, 0.0  ;;  %v431_v58 = vadd.f32 %v430_v55, %v264_v54 }
  0xb5   : > { %v427_v51 = vpop.f32.mrf.mxu0  ;;  %v470_v6 = vpop.f32.mrf.mxu2 }
  0xb6   : > { %477 = vst [vmem:[%s201_s5] sm:$0xff] %v473_v49  ;;  %v428_v52 = vadd.f32 %v427_v51, %v259_v48  ;;  %v446_v53 = vpop.f32.mrf.mxu1 }
  0xb8   : > { %v447_v56 = vadd.f32 %v446_v53, %v428_v52 }
  0xba   : > { %v466_v57 = vadd.f32 %v465_v50, %v447_v56 }
  0xbb   : > { %v432_v1 = vpop.f32.mrf.mxu3 }
  0xbc   : > { %v474_v59 = vmax.f32 %v466_v57, 0.0  ;;  %v433_v3 = vadd.f32 %v432_v1, %v269_v0 }
  0xbe   : > { %478 = vst [vmem:[%s201_s5 + $0x8] sm:$0xff] %v474_v59  ;;  %v449_v61 = vpop.f32.mrf.mxu1 }
  0xbf   : > { %v450_v62 = vadd.f32 %v449_v61, %v431_v58 }
  0xc1   : > { %v469_v63 = vadd.f32 %v468_v60, %v450_v62 }
  0xc3   : > { %v475_v2 = vmax.f32 %v469_v63, 0.0 }
  0xc5   : > { %479 = vst [vmem:[%s201_s5 + $0x10] sm:$0xff] %v475_v2 }
  0xc6   : > { %v451_v4 = vpop.f32.mrf.mxu1 }
  0xc7   : > { %v452_v5 = vadd.f32 %v451_v4, %v433_v3 }
  0xc9   : > { %v471_v7 = vadd.f32 %v470_v6, %v452_v5 }
  0xcb   : > { %v476_v8 = vmax.f32 %v471_v7, 0.0 }
  0xcd   : > { %480 = vst [vmem:[%s201_s5 + $0x18] sm:$0xff] %v476_v8 }
  0xce PF: > { %s13_s14 = sadd.s32 1, %s755_s14   ;;  %s889_s12 = smov %s751_s13 }
  0xcf   : > { %p10_p5 = scmp.ge.s32.totalorder %s13_s14, 4   ;;  %s890_s13 = smov %s892_s15 }
  0xd1   :  { %12 = sbr.rel (!%p10_p5) target bundleno = 2 (0x2), region = 62 }

// kernel: backbone_v1_pallas.34
= control target key start
LH: loop header
LB: loop body
LE: loop exit
PB: predicated region body
PF: predicated region fallthrough
CT: control target
= control target key end

     0   :  { %s925_s12 = smov 0   ;;  %s927_s13 = smov 0   ;;  %s1112_s0 = inlined_call_operand.vmem [shape: bf16[2,288,128], index: 0, kind: input, shape index: {}]   ;;  %s1113_s1 = inlined_call_operand.vmem [shape: bf16[64,288], index: 1, kind: input, shape index: {}]   ;;  %s1114_s2 = inlined_call_operand.vmem [shape: f32[64,1], index: 2, kind: input, shape index: {}]   ;;  %s1115_s3 = inlined_call_operand.vmem [shape: f32[2,64,128], index: 3, kind: output, shape index: {}]  }
   0x1   :  { %s929_s14 = smov 0  }
   0x2 LB: > { %s25_s15 = sadd.s32 1, %s898_s13  ;;  %p674_p0 = scmp.ge.s32.totalorder %s902_s14, 1  ;;  %s902_s14 = sphi %s929_s14, %s13_s14   ;;  %s898_s13 = sphi %s927_s13, %s1117_s13   ;;  %s894_s12 = sphi %s925_s12, %s1116_s12  }
   0x3   : > { %p27_p1 = scmp.ge.s32.totalorder %s25_s15, 2  ;;  %p156_p2 = scmp.lt.s32.totalorder %s902_s14, 3 }
   0x5   : > { %s1119_s15 = smov (%p27_p1, %s25_s15), 0  ;;  %p157_p3 = pnand %p674_p0, %p156_p2 }
   0x6   : > { %p186_p4 = scmp.lt.s32.totalorder (!%p157_p3), %s894_s12, 1 }
   0x7   : > { %160 = sbr.rel (%p157_p3) target bundleno = 229 (0xe5), region = 32 }
   0xc   : > { %s1121_s12 = smov (!%p186_p4, %s894_s12), 1  ;;  %v688_v6 = vld [vmem:[%s1113_s1 + $0x8] sm:$0xf]  ;;  %v807_v7 = vld [vmem:[%s1113_s1 + $0x10] sm:$0xf0]  ;;  %vm471_vm0 = vcmask 261120  }
   0xd   : > { %s851_s16 = smul.u32 144, %s1121_s12  ;;  %v689_v10 = vor.u32 %v807_v7, %v688_v6  ;;  %v904_v15 = vmov 0   ;;  %v257_v17 = vld [vmem:[%s1114_s2 + $0x10] sm:$0xff]  ;;  %v700_v19 = vld [vmem:[%s1113_s1 + $0x20] sm:$0xf]  ;;  %v258_v27 = vld [vmem:[%s1114_s2 + $0x18] sm:$0xff] }
   0xe   : > { %878 = vset.pattern.permute.xlu1 %v904_v15  ;;  %877 = vset.pattern.permute.xlu0 %v904_v15  ;;  %v810_v20 = vld [vmem:[%s1113_s1 + $0x28] sm:$0xf0]  ;;  %v255_v24 = vld [vmem:[%s1114_s2] sm:$0xff]  ;;  %v692_v25 = vld [vmem:[%s1113_s1 + $0x18] sm:$0xf]  ;;  %s804_s11 = sshll.u32 %s1121_s12, 6 }
   0xf   : > { %s949_s19 = scalar_lea.vmem %s1112_s0, %s851_s16  ;;  %879 = vset.pattern.permute.xlu2 %v904_v15  ;;  %275 = vperm.xlu1 %878, %v257_v17   ;;  %v701_v23 = vor.u32 %v810_v20, %v700_v19  ;;  %v809_v26 = vld [vmem:[%s1113_s1 + $0x20] sm:$0xf0]  ;;  %v680_v29 = vld [vmem:[%s1113_s1] sm:$0xf]  ;;  %v806_v30 = vld [vmem:[%s1113_s1 + $0x8] sm:$0xf0]  ;;  %s1093_s18 = scalar_lea.vmem %s1115_s3, %s804_s11 }
  0x10   : > { %v824_v0 = vld [vmem:[%s949_s19 + $0x38] sm:$0xff]  ;;  %v834_v2 = vld [vmem:[%s949_s19 + $0x88] sm:$0xff]  ;;  %v823_v3 = vld [vmem:[%s949_s19 + $0x30] sm:$0xff]  ;;  %265 = vperm.xlu0 %877, %v255_v24   ;;  %v693_v34 = vor.u32 %v809_v26, %v692_v25  ;;  %v681_v35 = vor.u32 %v806_v30, %v680_v29 }
  0x11   : > { %v953_v1 = vld [vmem:[%s949_s19 + $0x78] sm:$0xff]  ;;  %484 = vmatpush.bf16.msra.mxu0 %v824_v0  ;;  %835 = vmatpush.bf16.msra.mxu3 %v824_v0  ;;  %v959_v4 = vld [vmem:[%s949_s19 + $0x70] sm:$0xff]  ;;  %v833_v5 = vld [vmem:[%s949_s19 + $0x80] sm:$0xff] }
  0x12   : > { %843 = vmatpush.bf16.msra.mxu1 %v953_v1  ;;  %548 = vmatpush.bf16.msra.mxu2 %v834_v2  ;;  %v822_v8 = vld [vmem:[%s949_s19 + $0x28] sm:$0xff]  ;;  %v821_v11 = vld [vmem:[%s949_s19 + $0x20] sm:$0xff]  ;;  %v820_v13 = vld [vmem:[%s949_s19 + $0x18] sm:$0xff] }
  0x13   : > { %v971_v9 = vld [vmem:[%s949_s19 + $0x68] sm:$0xff]  ;;  %v977_v12 = vld [vmem:[%s949_s19 + $0x60] sm:$0xff]  ;;  %v982_v14 = vld [vmem:[%s949_s19 + $0x58] sm:$0xff] }
  0x14   : > { %v819_v16 = vld [vmem:[%s949_s19 + $0x10] sm:$0xff]  ;;  %v818_v21 = vld [vmem:[%s949_s19 + $0x8] sm:$0xff]  ;;  %v817_v28 = vld [vmem:[%s949_s19] sm:$0xff] }
  0x15   : > { %485 = vmatpush.bf16.msra.mxu0 %v823_v3  ;;  %836 = vmatpush.bf16.msra.mxu3 %v823_v3  ;;  %v827_v18 = vld [vmem:[%s949_s19 + $0x50] sm:$0xff]  ;;  %v826_v22 = vld [vmem:[%s949_s19 + $0x48] sm:$0xff]  ;;  %v825_v31 = vld [vmem:[%s949_s19 + $0x40] sm:$0xff] }
  0x16   : > { %844 = vmatpush.bf16.msra.mxu1 %v959_v4  ;;  %549 = vmatpush.bf16.msra.mxu2 %v833_v5  ;;  %v808_v32 = vld [vmem:[%s1113_s1 + $0x1c] sm:$0xf]  ;;  %v694_v33 = vld [vmem:[%s1113_s1 + $0x24] sm:$0xf0]  ;;  %v259_v39 = vld [vmem:[%s1114_s2 + $0x20] sm:$0xff] }
  0x17   : > { %280 = vperm.xlu1 %878, %v258_v27   ;;  %v697_v36 = vor.u32 %v808_v32, %v694_v33  ;;  %v256_v37 = vld [vmem:[%s1114_s2 + $0x8] sm:$0xff]  ;;  %v262_v38 = vld [vmem:[%s1114_s2 + $0x38] sm:$0xff]  ;;  %v813_v41 = vld [vmem:[%s1113_s1 + $0x40] sm:$0xf0]  ;;  %285 = vperm.xlu2 %879, %v259_v39  }
  0x18   : > { %270 = vperm.xlu0 %877, %v256_v37   ;;  %v712_v40 = vld [vmem:[%s1113_s1 + $0x38] sm:$0xf]  ;;  %v261_v43 = vld [vmem:[%s1114_s2 + $0x30] sm:$0xff]  ;;  %v260_v44 = vld [vmem:[%s1114_s2 + $0x28] sm:$0xff] }
  0x19   : > { %486 = vmatpush.bf16.msra.mxu0 %v822_v8  ;;  %837 = vmatpush.bf16.msra.mxu3 %v822_v8  ;;  %v713_v42 = vor.u32 %v813_v41, %v712_v40  ;;  %v704_v45 = vld [vmem:[%s1113_s1 + $0x30] sm:$0xf]  ;;  %v812_v46 = vld [vmem:[%s1113_s1 + $0x38] sm:$0xf0]  ;;  %v811_v47 = vld [vmem:[%s1113_s1 + $0x34] sm:$0xf] }
  0x1a   : > { %845 = vmatpush.bf16.msra.mxu1 %v971_v9  ;;  %798 = vmatmul.msk.bf16.vlgmr.msra.gmra.mxu2 %vm471_vm0, %v689_v10  ;;  %v706_v48 = vld [vmem:[%s1113_s1 + $0x3c] sm:$0xf0]  ;;  %v705_v49 = vor.u32 %v812_v46, %v704_v45  ;;  %v724_v51 = vld [vmem:[%s1113_s1 + $0x50] sm:$0xf]  ;;  %v816_v52 = vld [vmem:[%s1113_s1 + $0x58] sm:$0xf0] }
  0x1b   : > { %v709_v50 = vor.u32 %v811_v47, %v706_v48  ;;  %v725_v53 = vor.u32 %v816_v52, %v724_v51  ;;  %v805_v54 = vld [vmem:[%s1113_s1 + $0x4] sm:$0xf]  ;;  %v682_v55 = vld [vmem:[%s1113_s1 + $0xc] sm:$0xf0]  ;;  %v716_v57 = vld [vmem:[%s1113_s1 + $0x48] sm:$0xf] }
  0x1c   : > { %v685_v56 = vor.u32 %v805_v54, %v682_v55  ;;  %v815_v58 = vld [vmem:[%s1113_s1 + $0x50] sm:$0xf0]  ;;  %v814_v59 = vld [vmem:[%s1113_s1 + $0x4c] sm:$0xf]  ;;  %v718_v60 = vld [vmem:[%s1113_s1 + $0x54] sm:$0xf0] }
  0x1d   : > { %487 = vmatpush.bf16.msra.mxu0 %v821_v11  ;;  %838 = vmatpush.bf16.msra.mxu3 %v821_v11  ;;  %v717_v61 = vor.u32 %v815_v58, %v716_v57  ;;  %v721_v62 = vor.u32 %v814_v59, %v718_v60 }
  0x1e   : > { %846 = vmatpush.bf16.msra.mxu1 %v977_v12 }
  0x1f   : > { %300 = vperm.xlu1 %878, %v262_v38   ;;  %290 = vperm.xlu2 %879, %v260_v44  }
  0x20   : > { %295 = vperm.xlu0 %877, %v261_v43  }
  0x21   : > { %488 = vmatpush.bf16.msra.mxu0 %v820_v13  ;;  %839 = vmatpush.bf16.msra.mxu3 %v820_v13 }
  0x22   : > { %847 = vmatpush.bf16.msra.mxu1 %v982_v14 }
  0x25   : > { %489 = vmatpush.bf16.msra.mxu0 %v819_v16  ;;  %840 = vmatpush.bf16.msra.mxu3 %v819_v16 }
  0x26   : > { %848 = vmatpush.bf16.msra.mxu1 %v827_v18 }
  0x29   : > { %490 = vmatpush.bf16.msra.mxu0 %v818_v21  ;;  %841 = vmatpush.bf16.msra.mxu3 %v818_v21 }
  0x2a   : > { %849 = vmatpush.bf16.msra.mxu1 %v826_v22  ;;  %799 = vmatmul.msk.bf16.gmra.mxu2 %vm471_vm0, %v701_v23 }
  0x2d   : > { %491 = vmatpush.bf16.msra.mxu0 %v817_v28  ;;  %842 = vmatpush.bf16.msra.mxu3 %v817_v28 }
  0x2e   : > { %850 = vmatpush.bf16.msra.mxu1 %v825_v31 }
  0x30   : > { %497 = vmatmul.bf16.vlgmr.msra.gmra.mxu3 %v693_v34  ;;  %492 = vmatmul.bf16.vlgmr.msra.gmra.mxu0 %v681_v35 }
  0x31   : > { %513 = vmatpush.bf16.msrb.mxu0 %v953_v1  ;;  %526 = vmatmul.bf16.vlgmr.msra.gmra.mxu1 %v697_v36 }
  0x35   : > { %514 = vmatpush.bf16.msrb.mxu0 %v959_v4 }
  0x39   : > { %515 = vmatpush.bf16.msrb.mxu0 %v971_v9 }
  0x3a   : > { %800 = vmatmul.msk.bf16.gmra.mxu2 %vm471_vm0, %v713_v42 }
  0x3d   : > { %516 = vmatpush.bf16.msrb.mxu0 %v977_v12 }
  0x40   : > { %502 = vmatmul.bf16.gmra.mxu3 %v705_v49 }
  0x41   : > { %517 = vmatpush.bf16.msrb.mxu0 %v982_v14  ;;  %531 = vmatmul.bf16.gmra.mxu1 %v709_v50 }
  0x45   : > { %518 = vmatpush.bf16.msrb.mxu0 %v827_v18 }
  0x49   : > { %519 = vmatpush.bf16.msrb.mxu0 %v826_v22 }
  0x4a   : > { %801 = vmatmul.msk.bf16.gmra.mxu2 %vm471_vm0, %v725_v53 }
  0x4d   : > { %520 = vmatpush.bf16.msrb.mxu0 %v825_v31 }
  0x50   : > { %521 = vmatmul.bf16.vlgmr.msrb.gmra.mxu0 %v685_v56  ;;  %507 = vmatmul.bf16.gmra.mxu3 %v717_v61 }
  0x51   : > { %536 = vmatmul.bf16.gmra.mxu1 %v721_v62 }
  0x71   : > { %v286_v18 = vpop.permute.xlu2 %285 }
  0x79   : > { %v291_v30 = vpop.permute.xlu2 %290 }
  0x81   : > { %v276_v3 = vpop.permute.xlu1 %275 }
  0x82   : > { %v266_v15 = vpop.permute.xlu0 %265 }
  0x89   : > { %v281_v11 = vpop.permute.xlu1 %280 }
  0x8a   : > { %v271_v26 = vpop.permute.xlu0 %270 }
  0x91   : > { %v301_v55 = vpop.permute.xlu1 %300 }
  0x92   : > { %v296_v42 = vpop.permute.xlu0 %295 }
  0x9d   : > { %v551_v63 = vpop.f32.mrf.mxu2 }
  0xa5   : > { %v553_v0 = vpop.f32.mrf.mxu2 }
  0xad   : > { %v556_v1 = vpop.f32.mrf.mxu2  ;;  %v493_v8 = vpop.f32.mrf.mxu0 }
  0xae   : > { %v527_v2 = vpop.f32.mrf.mxu1  ;;  %v494_v28 = vadd.f32 %v493_v8, %v266_v15 }
  0xb3   : > { %v498_v4 = vpop.f32.mrf.mxu3 }
  0xb4   : > { %v499_v5 = vadd.f32 %v498_v4, %v276_v3 }
  0xb5   : > { %v558_v9 = vpop.f32.mrf.mxu2  ;;  %v495_v20 = vpop.f32.mrf.mxu0 }
  0xb6   : > { %v528_v6 = vadd.f32 %v527_v2, %v499_v5  ;;  %v529_v7 = vpop.f32.mrf.mxu1  ;;  %v496_v41 = vadd.f32 %v495_v20, %v271_v26 }
  0xb8   : > { %v557_v10 = vadd.f32 %v556_v1, %v528_v6 }
  0xba   : > { %v573_v12 = vmax.f32 %v557_v10, 0.0 }
  0xbb   : > { %v500_v13 = vpop.f32.mrf.mxu3 }
  0xbc   : > { %581 = vst [vmem:[%s1093_s18 + $0x10] sm:$0xff] %v573_v12  ;;  %v501_v14 = vadd.f32 %v500_v13, %v281_v11 }
  0xbd   : > { %v561_v21 = vpop.f32.mrf.mxu2 }
  0xbe   : > { %v530_v16 = vadd.f32 %v529_v7, %v501_v14  ;;  %v532_v17 = vpop.f32.mrf.mxu1 }
  0xc0   : > { %v559_v19 = vadd.f32 %v558_v9, %v530_v16 }
  0xc2   : > { %v574_v22 = vmax.f32 %v559_v19, 0.0 }
  0xc3   : > { %v503_v23 = vpop.f32.mrf.mxu3 }
  0xc4   : > { %582 = vst [vmem:[%s1093_s18 + $0x18] sm:$0xff] %v574_v22  ;;  %v504_v24 = vadd.f32 %v503_v23, %v286_v18 }
  0xc5   : > { %v563_v33 = vpop.f32.mrf.mxu2 }
  0xc6   : > { %v533_v25 = vadd.f32 %v532_v17, %v504_v24  ;;  %v534_v29 = vpop.f32.mrf.mxu1 }
  0xc8   : > { %v562_v27 = vadd.f32 %v561_v21, %v533_v25 }
  0xca   : > { %v575_v31 = vmax.f32 %v562_v27, 0.0 }
  0xcb   : > { %v505_v35 = vpop.f32.mrf.mxu3 }
  0xcc   : > { %583 = vst [vmem:[%s1093_s18 + $0x20] sm:$0xff] %v575_v31  ;;  %v506_v36 = vadd.f32 %v505_v35, %v291_v30 }
  0xcd   : > { %v522_v32 = vpop.f32.mrf.mxu0  ;;  %v566_v49 = vpop.f32.mrf.mxu2 }
  0xce   : > { %v523_v34 = vadd.f32 %v522_v32, %v494_v28  ;;  %v535_v38 = vadd.f32 %v534_v29, %v506_v36  ;;  %v537_v45 = vpop.f32.mrf.mxu1 }
  0xd0   : > { %v552_v37 = vadd.f32 %v551_v63, %v523_v34  ;;  %v564_v40 = vadd.f32 %v563_v33, %v535_v38 }
  0xd2   : > { %v571_v39 = vmax.f32 %v552_v37, 0.0  ;;  %v576_v43 = vmax.f32 %v564_v40, 0.0 }
  0xd3   : > { %v508_v47 = vpop.f32.mrf.mxu3 }
  0xd4   : > { %579 = vst [vmem:[%s1093_s18] sm:$0xff] %v571_v39  ;;  %v509_v48 = vadd.f32 %v508_v47, %v296_v42 }
  0xd5   : > { %v524_v44 = vpop.f32.mrf.mxu0  ;;  %584 = vst [vmem:[%s1093_s18 + $0x28] sm:$0xff] %v576_v43  ;;  %v568_v60 = vpop.f32.mrf.mxu2 }
  0xd6   : > { %v525_v46 = vadd.f32 %v524_v44, %v496_v41  ;;  %v538_v51 = vadd.f32 %v537_v45, %v509_v48  ;;  %v539_v58 = vpop.f32.mrf.mxu1 }
  0xd8   : > { %v554_v50 = vadd.f32 %v553_v0, %v525_v46  ;;  %v567_v53 = vadd.f32 %v566_v49, %v538_v51 }
  0xda   : > { %v572_v52 = vmax.f32 %v554_v50, 0.0  ;;  %v577_v54 = vmax.f32 %v567_v53, 0.0 }
  0xdb   : > { %v510_v56 = vpop.f32.mrf.mxu3 }
  0xdc   : > { %580 = vst [vmem:[%s1093_s18 + $0x8] sm:$0xff] %v572_v52  ;;  %v511_v57 = vadd.f32 %v510_v56, %v301_v55 }
  0xdd   : > { %585 = vst [vmem:[%s1093_s18 + $0x30] sm:$0xff] %v577_v54 }
  0xde   : > { %v540_v59 = vadd.f32 %v539_v58, %v511_v57 }
  0xe0   : > { %v569_v61 = vadd.f32 %v568_v60, %v540_v59 }
  0xe2   : > { %v578_v62 = vmax.f32 %v569_v61, 0.0 }
  0xe4   : > { %586 = vst [vmem:[%s1093_s18 + $0x38] sm:$0xff] %v578_v62 }
  0xe5 PF: > { %s13_s14 = sadd.s32 1, %s902_s14   ;;  %s1116_s12 = smov %s898_s13 }
  0xe6   : > { %p10_p5 = scmp.ge.s32.totalorder %s13_s14, 4   ;;  %s1117_s13 = smov %s1119_s15 }
  0xe8   :  { %12 = sbr.rel (!%p10_p5) target bundleno = 2 (0x2), region = 62 }

// kernel: backbone_v1_pallas.33
= control target key start
LH: loop header
LB: loop body
LE: loop exit
PB: predicated region body
PF: predicated region fallthrough
CT: control target
= control target key end

     0   :  { %s554_s12 = smov 0   ;;  %s556_s13 = smov 0   ;;  %s627_s0 = inlined_call_operand.vmem [shape: bf16[2,32,128], index: 0, kind: input, shape index: {}]   ;;  %s628_s1 = inlined_call_operand.vmem [shape: bf16[64,32], index: 1, kind: input, shape index: {}]   ;;  %s629_s2 = inlined_call_operand.vmem [shape: f32[64,1], index: 2, kind: input, shape index: {}]   ;;  %s630_s3 = inlined_call_operand.vmem [shape: f32[2,64,128], index: 3, kind: output, shape index: {}]  }
   0x1   :  { %s558_s14 = smov 0  }
   0x2 LB: > { %s25_s15 = sadd.s32 1, %s527_s13  ;;  %p432_p0 = scmp.ge.s32.totalorder %s531_s14, 1  ;;  %s531_s14 = sphi %s558_s14, %s13_s14   ;;  %s527_s13 = sphi %s556_s13, %s632_s13   ;;  %s523_s12 = sphi %s554_s12, %s631_s12  }
   0x3   : > { %p27_p1 = scmp.ge.s32.totalorder %s25_s15, 2  ;;  %p156_p2 = scmp.lt.s32.totalorder %s531_s14, 3 }
   0x5   : > { %s634_s15 = smov (%p27_p1, %s25_s15), 0  ;;  %p157_p3 = pnand %p432_p0, %p156_p2 }
   0x6   : > { %p186_p4 = scmp.lt.s32.totalorder (!%p157_p3), %s523_s12, 1 }
   0x7   : > { %160 = sbr.rel (%p157_p3) target bundleno = 169 (0xa9), region = 32 }
   0xc   : > { %v217_v0 = vld [vmem:[%s629_s2 + $0x10] sm:$0xff]  ;;  %v215_v1 = vld [vmem:[%s629_s2] sm:$0xff]  ;;  %v533_v2 = vmov 0   ;;  %s636_s12 = smov (!%p186_p4, %s523_s12), 1  ;;  %v218_v5 = vld [vmem:[%s629_s2 + $0x18] sm:$0xff]  ;;  %vm295_vm0 = vcmask 261120  }
   0xd   : > { %507 = vset.pattern.permute.xlu1 %v533_v2  ;;  %506 = vset.pattern.permute.xlu0 %v533_v2  ;;  %v219_v3 = vld [vmem:[%s629_s2 + $0x20] sm:$0xff]  ;;  %s467_s22 = sshll.u32 %s636_s12, 4  ;;  %v216_v6 = vld [vmem:[%s629_s2 + $0x8] sm:$0xff]  ;;  %v471_v11 = vld [vmem:[%s628_s1 + $0x10] sm:$0xff]  ;;  %s468_s21 = sshll.u32 %s636_s12, 6 }
   0xe   : > { %235 = vperm.xlu1 %507, %v217_v0   ;;  %225 = vperm.xlu0 %506, %v215_v1   ;;  %s193_s25 = scalar_lea.vmem %s627_s0, %s467_s22  ;;  %v469_v8 = vld [vmem:[%s628_s1] sm:$0xff]  ;;  %v470_v9 = vld [vmem:[%s628_s1 + $0x8] sm:$0xff]  ;;  %v472_v12 = vld [vmem:[%s628_s1 + $0x18] sm:$0xff]  ;;  %s201_s24 = scalar_lea.vmem %s630_s3, %s468_s21 }
   0xf   : > { %508 = vset.pattern.permute.xlu2 %v533_v2  ;;  %v474_v4 = vld [vmem:[%s193_s25 + $0x8] sm:$0xff]  ;;  %v473_v7 = vld [vmem:[%s193_s25] sm:$0xff]  ;;  %v222_v13 = vld [vmem:[%s629_s2 + $0x38] sm:$0xff] }
  0x10   : > { %245 = vperm.xlu2 %508, %v219_v3   ;;  %314 = vmatpush.bf16.msra.mxu0 %v474_v4  ;;  %v220_v10 = vld [vmem:[%s629_s2 + $0x28] sm:$0xff]  ;;  %v221_v14 = vld [vmem:[%s629_s2 + $0x30] sm:$0xff] }
  0x11   : > { %475 = vmatpush.bf16.msra.mxu1 %v474_v4  ;;  %476 = vmatpush.bf16.msra.mxu2 %v474_v4 }
  0x12   : > { %477 = vmatpush.bf16.msra.mxu3 %v474_v4 }
  0x14   : > { %315 = vmatpush.bf16.msra.mxu0 %v473_v7 }
  0x15   : > { %478 = vmatpush.bf16.msra.mxu1 %v473_v7  ;;  %479 = vmatpush.bf16.msra.mxu2 %v473_v7 }
  0x16   : > { %240 = vperm.xlu1 %507, %v218_v5   ;;  %230 = vperm.xlu0 %506, %v216_v6  }
  0x17   : > { %480 = vmatpush.bf16.msra.mxu3 %v473_v7  ;;  %461 = vmatmul.msk.bf16.vlgmr.msra.gmra.mxu0 %vm295_vm0, %v469_v8 }
  0x18   : > { %250 = vperm.xlu2 %508, %v220_v10   ;;  %462 = vmatmul.msk.bf16.vlgmr.msra.gmra.mxu1 %vm295_vm0, %v470_v9 }
  0x19   : > { %463 = vmatmul.msk.bf16.vlgmr.msra.gmra.mxu2 %vm295_vm0, %v471_v11 }
  0x1a   : > { %464 = vmatmul.msk.bf16.vlgmr.msra.gmra.mxu3 %vm295_vm0, %v472_v12 }
  0x1e   : > { %260 = vperm.xlu1 %507, %v222_v13   ;;  %255 = vperm.xlu0 %506, %v221_v14  }
  0x6a   : > { %v246_v23 = vpop.permute.xlu2 %245 }
  0x72   : > { %v251_v34 = vpop.permute.xlu2 %250 }
  0x80   : > { %v226_v15 = vpop.permute.xlu0 %225  ;;  %v236_v16 = vpop.permute.xlu1 %235 }
  0x88   : > { %v231_v17 = vpop.permute.xlu0 %230  ;;  %v241_v22 = vpop.permute.xlu1 %240 }
  0x90   : > { %v256_v24 = vpop.permute.xlu0 %255  ;;  %v261_v33 = vpop.permute.xlu1 %260 }
  0x94   : > { %v317_v18 = vpop.f32.mrf.mxu0 }
  0x95   : > { %v322_v19 = vpop.f32.mrf.mxu1  ;;  %v318_v20 = vadd.f32 %v317_v18, %v226_v15 }
  0x96   : > { %v323_v21 = vadd.f32 %v322_v19, %v236_v16 }
  0x97   : > { %337 = vst [vmem:[%s201_s24] sm:$0xff] %v318_v20 }
  0x98   : > { %339 = vst [vmem:[%s201_s24 + $0x10] sm:$0xff] %v323_v21 }
  0x9c   : > { %v327_v25 = vpop.f32.mrf.mxu2  ;;  %v319_v29 = vpop.f32.mrf.mxu0 }
  0x9d   : > { %v332_v26 = vpop.f32.mrf.mxu3  ;;  %v328_v27 = vadd.f32 %v327_v25, %v246_v23  ;;  %v324_v30 = vpop.f32.mrf.mxu1  ;;  %v320_v31 = vadd.f32 %v319_v29, %v231_v17 }
  0x9e   : > { %v333_v28 = vadd.f32 %v332_v26, %v256_v24  ;;  %v325_v32 = vadd.f32 %v324_v30, %v241_v22 }
  0x9f   : > { %341 = vst [vmem:[%s201_s24 + $0x20] sm:$0xff] %v328_v27 }
  0xa0   : > { %343 = vst [vmem:[%s201_s24 + $0x30] sm:$0xff] %v333_v28 }
  0xa1   : > { %338 = vst [vmem:[%s201_s24 + $0x8] sm:$0xff] %v320_v31 }
  0xa2   : > { %340 = vst [vmem:[%s201_s24 + $0x18] sm:$0xff] %v325_v32 }
  0xa4   : > { %v329_v35 = vpop.f32.mrf.mxu2 }
  0xa5   : > { %v334_v36 = vpop.f32.mrf.mxu3  ;;  %v330_v37 = vadd.f32 %v329_v35, %v251_v34 }
  0xa6   : > { %v335_v38 = vadd.f32 %v334_v36, %v261_v33 }
  0xa7   : > { %342 = vst [vmem:[%s201_s24 + $0x28] sm:$0xff] %v330_v37 }
  0xa8   : > { %344 = vst [vmem:[%s201_s24 + $0x38] sm:$0xff] %v335_v38 }
  0xa9 PF: > { %s13_s14 = sadd.s32 1, %s531_s14   ;;  %s631_s12 = smov %s527_s13 }
  0xaa   : > { %p10_p5 = scmp.ge.s32.totalorder %s13_s14, 4   ;;  %s632_s13 = smov %s634_s15 }
  0xac   :  { %12 = sbr.rel (!%p10_p5) target bundleno = 2 (0x2), region = 62 }

// kernel: backbone_v1_pallas.35
= control target key start
LH: loop header
LB: loop body
LE: loop exit
PB: predicated region body
PF: predicated region fallthrough
CT: control target
= control target key end

     0   :  { %s1405_s15 = smov 0   ;;  %s1407_s16 = smov 0   ;;  %s1660_s0 = inlined_call_operand.vmem [shape: bf16[2,576,128], index: 0, kind: input, shape index: {}]   ;;  %s1661_s1 = inlined_call_operand.vmem [shape: bf16[64,576], index: 1, kind: input, shape index: {}]   ;;  %s1662_s2 = inlined_call_operand.vmem [shape: f32[64,1], index: 2, kind: input, shape index: {}]   ;;  %s1663_s3 = inlined_call_operand.vmem [shape: f32[2,64,128], index: 3, kind: input, shape index: {}]   ;;  %s1664_s4 = inlined_call_operand.vmem [shape: f32[2,64,128], index: 4, kind: output, shape index: {}]  }
   0x1   :  { %s1409_s17 = smov 0  }
   0x2 LB: > { %s26_s18 = sadd.s32 1, %s1373_s16  ;;  %p1016_p0 = scmp.ge.s32.totalorder %s1377_s17, 1  ;;  %s1377_s17 = sphi %s1409_s17, %s14_s17   ;;  %s1373_s16 = sphi %s1407_s16, %s1666_s16   ;;  %s1369_s15 = sphi %s1405_s15, %s1665_s15  }
   0x3   : > { %p28_p1 = scmp.ge.s32.totalorder %s26_s18, 2  ;;  %p196_p2 = scmp.lt.s32.totalorder %s1377_s17, 3 }
   0x5   : > { %s1668_s18 = smov (%p28_p1, %s26_s18), 0  ;;  %p197_p3 = pnand %p1016_p0, %p196_p2 }
   0x6   : > { %p236_p4 = scmp.lt.s32.totalorder (!%p197_p3), %s1369_s15, 1 }
   0x7   : > { %200 = sbr.rel (%p197_p3) target bundleno = 279 (0x117), region = 36 }
   0xc   : > { %s1670_s15 = smov (!%p236_p4, %s1369_s15), 1  ;;  %v1379_v6 = vmov 0   ;;  %v359_v8 = vld [vmem:[%s1662_s2 + $0x10] sm:$0xff]  ;;  %v357_v10 = vld [vmem:[%s1662_s2] sm:$0xff]  ;;  %v360_v14 = vld [vmem:[%s1662_s2 + $0x18] sm:$0xff]  ;;  %vm721_vm0 = vcmask 523264  }
   0xd   : > { %s1326_s19 = smul.u32 288, %s1670_s15  ;;  %1353 = vset.pattern.permute.xlu1 %v1379_v6  ;;  %1352 = vset.pattern.permute.xlu0 %v1379_v6  ;;  %v358_v16 = vld [vmem:[%s1662_s2 + $0x8] sm:$0xff]  ;;  %v1261_v20 = vld [vmem:[%s1661_s1 + $0x38] sm:$0xf0]  ;;  %v1084_v22 = vld [vmem:[%s1661_s1 + $0x78] sm:$0xf] }
   0xe   : > { %1354 = vset.pattern.permute.xlu2 %v1379_v6  ;;  %377 = vperm.xlu1 %1353, %v359_v8   ;;  %v1044_v19 = vld [vmem:[%s1661_s1 + $0x28] sm:$0xf]  ;;  %v1271_v23 = vld [vmem:[%s1661_s1 + $0x88] sm:$0xf0]  ;;  %v1024_v26 = vld [vmem:[%s1661_s1] sm:$0xf] }
   0xf   : > { %s1429_s22 = scalar_lea.vmem %s1660_s0, %s1326_s19  ;;  %367 = vperm.xlu0 %1352, %v357_v10   ;;  %v1045_v28 = vor.u32 %v1261_v20, %v1044_v19  ;;  %v1085_v29 = vor.u32 %v1271_v23, %v1084_v22  ;;  %v1256_v30 = vld [vmem:[%s1661_s1 + $0x10] sm:$0xf0]  ;;  %v1255_v31 = vld [vmem:[%s1661_s1 + $0xc] sm:$0xf]  ;;  %v1034_v32 = vld [vmem:[%s1661_s1 + $0x1c] sm:$0xf0] }
  0x10   : > { %v1281_v0 = vld [vmem:[%s1429_s22 + $0x38] sm:$0xff]  ;;  %v1280_v1 = vld [vmem:[%s1429_s22 + $0x30] sm:$0xff]  ;;  %v1279_v4 = vld [vmem:[%s1429_s22 + $0x28] sm:$0xff]  ;;  %v1025_v37 = vor.u32 %v1256_v30, %v1024_v26  ;;  %v1037_v38 = vor.u32 %v1255_v31, %v1034_v32  ;;  %s1252_s6 = sshll.u32 %s1670_s15, 6 }
  0x11   : > { %1310 = vmatpush.bf16.msra.mxu1 %v1281_v0  ;;  %1311 = vmatpush.bf16.msra.mxu2 %v1281_v0  ;;  %v1305_v2 = vld [vmem:[%s1429_s22 + $0xf8] sm:$0xff]  ;;  %v1304_v3 = vld [vmem:[%s1429_s22 + $0xf0] sm:$0xff]  ;;  %v1303_v5 = vld [vmem:[%s1429_s22 + $0xe8] sm:$0xff]  ;;  %s1625_s9 = scalar_lea.vmem %s1663_s3, %s1252_s6  ;;  %s1631_s11 = scalar_lea.vmem %s1664_s4, %s1252_s6 }
  0x12   : > { %734 = vmatpush.bf16.msra.mxu0 %v1281_v0  ;;  %821 = vmatpush.bf16.msra.mxu3 %v1305_v2  ;;  %v1278_v7 = vld [vmem:[%s1429_s22 + $0x20] sm:$0xff]  ;;  %v1277_v11 = vld [vmem:[%s1429_s22 + $0x18] sm:$0xff]  ;;  %v1276_v13 = vld [vmem:[%s1429_s22 + $0x10] sm:$0xff] }
  0x13   : > { %v1302_v9 = vld [vmem:[%s1429_s22 + $0xe0] sm:$0xff]  ;;  %v1301_v12 = vld [vmem:[%s1429_s22 + $0xd8] sm:$0xff]  ;;  %v1300_v15 = vld [vmem:[%s1429_s22 + $0xd0] sm:$0xff] }
  0x14   : > { %v1275_v17 = vld [vmem:[%s1429_s22 + $0x8] sm:$0xff]  ;;  %v1274_v21 = vld [vmem:[%s1429_s22] sm:$0xff]  ;;  %v1297_v24 = vld [vmem:[%s1429_s22 + $0xb8] sm:$0xff] }
  0x15   : > { %1312 = vmatpush.bf16.msra.mxu1 %v1280_v1  ;;  %1313 = vmatpush.bf16.msra.mxu2 %v1280_v1  ;;  %v1299_v18 = vld [vmem:[%s1429_s22 + $0xc8] sm:$0xff]  ;;  %v1289_v25 = vld [vmem:[%s1429_s22 + $0x78] sm:$0xff]  ;;  %v1298_v27 = vld [vmem:[%s1429_s22 + $0xc0] sm:$0xff] }
  0x16   : > { %735 = vmatpush.bf16.msra.mxu0 %v1280_v1  ;;  %822 = vmatpush.bf16.msra.mxu3 %v1304_v3  ;;  %v1309_v33 = vld [vmem:[%s1429_s22 + $0x118] sm:$0xff]  ;;  %v1296_v34 = vld [vmem:[%s1429_s22 + $0xb0] sm:$0xff]  ;;  %v1295_v41 = vld [vmem:[%s1429_s22 + $0xa8] sm:$0xff] }
  0x17   : > { %382 = vperm.xlu1 %1353, %v360_v14   ;;  %372 = vperm.xlu0 %1352, %v358_v16   ;;  %v1288_v35 = vld [vmem:[%s1429_s22 + $0x70] sm:$0xff]  ;;  %v364_v36 = vld [vmem:[%s1662_s2 + $0x38] sm:$0xff]  ;;  %v1287_v42 = vld [vmem:[%s1429_s22 + $0x68] sm:$0xff] }
  0x18   : > { %v1308_v39 = vld [vmem:[%s1429_s22 + $0x110] sm:$0xff]  ;;  %v1307_v43 = vld [vmem:[%s1429_s22 + $0x108] sm:$0xff]  ;;  %v1294_v44 = vld [vmem:[%s1429_s22 + $0xa0] sm:$0xff] }
  0x19   : > { %1314 = vmatpush.bf16.msra.mxu1 %v1279_v4  ;;  %1315 = vmatpush.bf16.msra.mxu2 %v1279_v4  ;;  %v363_v40 = vld [vmem:[%s1662_s2 + $0x30] sm:$0xff]  ;;  %v1286_v45 = vld [vmem:[%s1429_s22 + $0x60] sm:$0xff]  ;;  %v1293_v49 = vld [vmem:[%s1429_s22 + $0x98] sm:$0xff] }
  0x1a   : > { %736 = vmatpush.bf16.msra.mxu0 %v1279_v4  ;;  %823 = vmatpush.bf16.msra.mxu3 %v1303_v5  ;;  %v1064_v46 = vld [vmem:[%s1661_s1 + $0x50] sm:$0xf]  ;;  %v1266_v47 = vld [vmem:[%s1661_s1 + $0x60] sm:$0xf0]  ;;  %v1285_v50 = vld [vmem:[%s1429_s22 + $0x58] sm:$0xff] }
  0x1b   : > { %v1306_v48 = vld [vmem:[%s1429_s22 + $0x100] sm:$0xff]  ;;  %v1040_v51 = vld [vmem:[%s1661_s1 + $0x10] sm:$0xf]  ;;  %v1065_v52 = vor.u32 %v1266_v47, %v1064_v46  ;;  %v1260_v54 = vld [vmem:[%s1661_s1 + $0x34] sm:$0xf] }
  0x1c   : > { %v1258_v53 = vld [vmem:[%s1661_s1 + $0x20] sm:$0xf0]  ;;  %v1054_v55 = vld [vmem:[%s1661_s1 + $0x44] sm:$0xf0]  ;;  %v1292_v56 = vld [vmem:[%s1429_s22 + $0x90] sm:$0xff] }
  0x1d   : > { %1316 = vmatpush.bf16.msra.mxu1 %v1278_v7  ;;  %1317 = vmatpush.bf16.msra.mxu2 %v1278_v7  ;;  %v1284_v57 = vld [vmem:[%s1429_s22 + $0x50] sm:$0xff]  ;;  %v1041_v58 = vor.u32 %v1258_v53, %v1040_v51  ;;  %v1057_v59 = vor.u32 %v1260_v54, %v1054_v55  ;;  %v361_v60 = vld [vmem:[%s1662_s2 + $0x20] sm:$0xff]  ;;  %v1291_v61 = vld [vmem:[%s1429_s22 + $0x88] sm:$0xff] }
  0x1e   : > { %737 = vmatpush.bf16.msra.mxu0 %v1278_v7  ;;  %824 = vmatpush.bf16.msra.mxu3 %v1302_v9  ;;  %v1283_v62 = vld [vmem:[%s1429_s22 + $0x48] sm:$0xff]  ;;  %v1290_v63 = vld [vmem:[%s1429_s22 + $0x80] sm:$0xff]  ;;  %v1257_v2 = vld [vmem:[%s1661_s1 + $0x18] sm:$0xf0] }
  0x1f   : > { %402 = vperm.xlu1 %1353, %v364_v36   ;;  %397 = vperm.xlu0 %1352, %v363_v40   ;;  %v1282_v0 = vld [vmem:[%s1429_s22 + $0x40] sm:$0xff]  ;;  %v1032_v1 = vld [vmem:[%s1661_s1 + $0x8] sm:$0xf]  ;;  %v1026_v6 = vld [vmem:[%s1661_s1 + $0x14] sm:$0xf0] }
  0x20   : > { %387 = vperm.xlu2 %1354, %v361_v60   ;;  %v362_v3 = vld [vmem:[%s1662_s2 + $0x28] sm:$0xff]  ;;  %v1033_v4 = vor.u32 %v1257_v2, %v1032_v1  ;;  %v1254_v5 = vld [vmem:[%s1661_s1 + $0x4] sm:$0xf]  ;;  %v1060_v7 = vld [vmem:[%s1661_s1 + $0x38] sm:$0xf] }
  0x21   : > { %1318 = vmatpush.bf16.msra.mxu1 %v1277_v11  ;;  %1319 = vmatpush.bf16.msra.mxu2 %v1277_v11  ;;  %v1029_v8 = vor.u32 %v1254_v5, %v1026_v6  ;;  %v1263_v9 = vld [vmem:[%s1661_s1 + $0x48] sm:$0xf0]  ;;  %v1265_v10 = vld [vmem:[%s1661_s1 + $0x5c] sm:$0xf]  ;;  %v1052_v14 = vld [vmem:[%s1661_s1 + $0x30] sm:$0xf] }
  0x22   : > { %738 = vmatpush.bf16.msra.mxu0 %v1277_v11  ;;  %825 = vmatpush.bf16.msra.mxu3 %v1301_v12  ;;  %v1074_v11 = vld [vmem:[%s1661_s1 + $0x6c] sm:$0xf0]  ;;  %v1061_v12 = vor.u32 %v1263_v9, %v1060_v7  ;;  %v1080_v19 = vld [vmem:[%s1661_s1 + $0x60] sm:$0xf]  ;;  %v1270_v22 = vld [vmem:[%s1661_s1 + $0x84] sm:$0xf] }
  0x23   : > { %v1094_v23 = vld [vmem:[%s1661_s1 + $0x94] sm:$0xf0]  ;;  %v1066_v30 = vld [vmem:[%s1661_s1 + $0x64] sm:$0xf0]  ;;  %v1272_v36 = vld [vmem:[%s1661_s1 + $0x90] sm:$0xf0] }
  0x24   : > { %v1072_v26 = vld [vmem:[%s1661_s1 + $0x58] sm:$0xf]  ;;  %v1100_v32 = vld [vmem:[%s1661_s1 + $0x88] sm:$0xf] }
  0x25   : > { %1320 = vmatpush.bf16.msra.mxu1 %v1276_v13  ;;  %1321 = vmatpush.bf16.msra.mxu2 %v1276_v13 }
  0x26   : > { %739 = vmatpush.bf16.msra.mxu0 %v1276_v13  ;;  %826 = vmatpush.bf16.msra.mxu3 %v1300_v15  ;;  %v1077_v13 = vor.u32 %v1265_v10, %v1074_v11  ;;  %v1262_v15 = vld [vmem:[%s1661_s1 + $0x40] sm:$0xf0]  ;;  %v880_v11 = vld [vmem:[%s1625_s9 + $0x8] sm:$0xff] }
  0x27   : > { %v1053_v16 = vor.u32 %v1262_v15, %v1052_v14 }
  0x28   : > { %392 = vperm.xlu2 %1354, %v362_v3  }
  0x29   : > { %1322 = vmatpush.bf16.msra.mxu1 %v1275_v17  ;;  %1323 = vmatpush.bf16.msra.mxu2 %v1275_v17 }
  0x2a   : > { %740 = vmatpush.bf16.msra.mxu0 %v1275_v17  ;;  %827 = vmatpush.bf16.msra.mxu3 %v1299_v18  ;;  %v1259_v17 = vld [vmem:[%s1661_s1 + $0x2c] sm:$0xf]  ;;  %v1046_v18 = vld [vmem:[%s1661_s1 + $0x3c] sm:$0xf0] }
  0x2b   : > { %v1049_v20 = vor.u32 %v1259_v17, %v1046_v18 }
  0x2d   : > { %1324 = vmatpush.bf16.msra.mxu1 %v1274_v21  ;;  %1325 = vmatpush.bf16.msra.mxu2 %v1274_v21 }
  0x2e   : > { %741 = vmatpush.bf16.msra.mxu0 %v1274_v21  ;;  %828 = vmatpush.bf16.msra.mxu3 %v1298_v27  ;;  %v1268_v21 = vld [vmem:[%s1661_s1 + $0x70] sm:$0xf0]  ;;  %v1267_v27 = vld [vmem:[%s1661_s1 + $0x68] sm:$0xf0] }
  0x30   : > { %747 = vmatmul.bf16.vlgmr.msra.gmra.mxu1 %v1045_v28  ;;  %757 = vmatmul.bf16.vlgmr.msra.gmra.mxu2 %v1085_v29  ;;  %v1073_v28 = vor.u32 %v1267_v27, %v1072_v26  ;;  %v1264_v29 = vld [vmem:[%s1661_s1 + $0x54] sm:$0xf] }
  0x31   : > { %792 = vmatpush.bf16.msrb.mxu2 %v1297_v24  ;;  %763 = vmatpush.bf16.msrb.mxu1 %v1289_v25  ;;  %v1081_v24 = vor.u32 %v1268_v21, %v1080_v19  ;;  %v1097_v25 = vor.u32 %v1270_v22, %v1094_v23  ;;  %v1069_v31 = vor.u32 %v1264_v29, %v1066_v30  ;;  %v881_v23 = vld [vmem:[%s1625_s9 + $0x10] sm:$0xff] }
  0x32   : > { %854 = vmatpush.bf16.msrb.mxu0 %v1309_v33  ;;  %829 = vmatmul.bf16.vlgmr.msra.gmra.mxu3 %v1037_v38  ;;  %v1273_v33 = vld [vmem:[%s1661_s1 + $0x98] sm:$0xf0] }
  0x33   : > { %742 = vmatmul.bf16.vlgmr.msra.gmra.mxu0 %v1025_v37  ;;  %v1269_v38 = vld [vmem:[%s1661_s1 + $0x7c] sm:$0xf] }
  0x35   : > { %793 = vmatpush.bf16.msrb.mxu2 %v1296_v34  ;;  %764 = vmatpush.bf16.msrb.mxu1 %v1288_v35  ;;  %v1101_v34 = vor.u32 %v1273_v33, %v1100_v32  ;;  %v1092_v35 = vld [vmem:[%s1661_s1 + $0x80] sm:$0xf] }
  0x36   : > { %855 = vmatpush.bf16.msrb.mxu0 %v1308_v39  ;;  %v1093_v37 = vor.u32 %v1272_v36, %v1092_v35  ;;  %v1086_v39 = vld [vmem:[%s1661_s1 + $0x8c] sm:$0xf0]  ;;  %v882_v35 = vld [vmem:[%s1625_s9 + $0x18] sm:$0xff] }
  0x37   : > { %v1089_v40 = vor.u32 %v1269_v38, %v1086_v39 }
  0x39   : > { %794 = vmatpush.bf16.msrb.mxu2 %v1295_v41  ;;  %765 = vmatpush.bf16.msrb.mxu1 %v1287_v42 }
  0x3a   : > { %856 = vmatpush.bf16.msrb.mxu0 %v1307_v43 }
  0x3d   : > { %795 = vmatpush.bf16.msrb.mxu2 %v1294_v44  ;;  %766 = vmatpush.bf16.msrb.mxu1 %v1286_v45 }
  0x3e   : > { %857 = vmatpush.bf16.msrb.mxu0 %v1306_v48 }
  0x40   : > { %752 = vmatmul.bf16.gmra.mxu1 %v1065_v52 }
  0x41   : > { %796 = vmatpush.bf16.msrb.mxu2 %v1293_v49  ;;  %767 = vmatpush.bf16.msrb.mxu1 %v1285_v50 }
  0x42   : > { %834 = vmatmul.bf16.gmra.mxu3 %v1057_v59 }
  0x43   : > { %1246 = vmatmul.msk.bf16.vlgmr.msrb.gmra.mxu0 %vm721_vm0, %v1041_v58 }
  0x45   : > { %797 = vmatpush.bf16.msrb.mxu2 %v1292_v56  ;;  %768 = vmatpush.bf16.msrb.mxu1 %v1284_v57 }
  0x49   : > { %798 = vmatpush.bf16.msrb.mxu2 %v1291_v61  ;;  %769 = vmatpush.bf16.msrb.mxu1 %v1283_v62  ;;  %v879_v62 = vld [vmem:[%s1625_s9] sm:$0xff] }
  0x4d   : > { %799 = vmatpush.bf16.msrb.mxu2 %v1290_v63  ;;  %770 = vmatpush.bf16.msrb.mxu1 %v1282_v0 }
  0x50   : > { %800 = vmatmul.bf16.vlgmr.msrb.gmra.mxu2 %v1033_v4  ;;  %771 = vmatmul.bf16.vlgmr.msrb.gmra.mxu1 %v1029_v8 }
  0x52   : > { %839 = vmatmul.bf16.gmra.mxu3 %v1077_v13 }
  0x53   : > { %1247 = vmatmul.msk.bf16.gmra.mxu0 %vm721_vm0, %v1061_v12 }
  0x60   : > { %805 = vmatmul.bf16.gmra.mxu2 %v1053_v16  ;;  %776 = vmatmul.bf16.gmra.mxu1 %v1049_v20 }
  0x62   : > { %844 = vmatmul.bf16.gmra.mxu3 %v1097_v25 }
  0x63   : > { %1248 = vmatmul.msk.bf16.gmra.mxu0 %vm721_vm0, %v1081_v24 }
  0x70   : > { %810 = vmatmul.bf16.gmra.mxu2 %v1073_v28  ;;  %781 = vmatmul.bf16.gmra.mxu1 %v1069_v31 }
  0x73   : > { %1249 = vmatmul.msk.bf16.gmra.mxu0 %vm721_vm0, %v1101_v34 }
  0x7a   : > { %v388_v28 = vpop.permute.xlu2 %387 }
  0x80   : > { %815 = vmatmul.bf16.gmra.mxu2 %v1093_v37  ;;  %786 = vmatmul.bf16.gmra.mxu1 %v1089_v40  ;;  %v378_v2 = vpop.permute.xlu1 %377 }
  0x81   : > { %v368_v51 = vpop.permute.xlu0 %367 }
  0x89   : > { %v373_v59 = vpop.permute.xlu0 %372  ;;  %v383_v17 = vpop.permute.xlu1 %382 }
  0xad   : > { %v748_v41 = vpop.f32.mrf.mxu1 }
  0xae   : > { %v749_v10 = vadd.f32 %v748_v41, %v378_v2 }
  0xb0   : > { %v743_v42 = vpop.f32.mrf.mxu0 }
  0xb1   : > { %v744_v52 = vadd.f32 %v743_v42, %v368_v51 }
  0xb3   : > { %v1615_v46 = vpop.f32.mrf.mxu2 }
  0xb5   : > { %v750_v43 = vpop.f32.mrf.mxu1  ;;  %v830_v47 = vpop.f32.mrf.mxu3 }
  0xb6   : > { %v751_v22 = vadd.f32 %v750_v43, %v383_v17  ;;  %v393_v43 = vpop.permute.xlu2 %392 }
  0xb8   : > { %v745_v44 = vpop.f32.mrf.mxu0 }
  0xb9   : > { %v746_v61 = vadd.f32 %v745_v44, %v373_v59  ;;  %v398_v59 = vpop.permute.xlu0 %397 }
  0xbb   : > { %v1619_v50 = vpop.f32.mrf.mxu2 }
  0xbd   : > { %v753_v45 = vpop.f32.mrf.mxu1  ;;  %v832_v55 = vpop.f32.mrf.mxu3 }
  0xbe   : > { %v754_v34 = vadd.f32 %v753_v45, %v388_v28 }
  0xc0   : > { %v859_v49 = vpop.f32.mrf.mxu0 }
  0xc5   : > { %v1617_v48 = vpop.f32.mrf.mxu1  ;;  %v835_v5 = vpop.f32.mrf.mxu3 }
  0xc6   : > { %v756_v51 = vadd.f32 %v1617_v48, %v393_v43 }
  0xc8   : > { %v861_v57 = vpop.f32.mrf.mxu0 }
  0xcd   : > { %v772_v53 = vpop.f32.mrf.mxu1  ;;  %v837_v20 = vpop.f32.mrf.mxu3 }
  0xce   : > { %v773_v54 = vadd.f32 %v772_v53, %v744_v52  ;;  %v883_v52 = vld [vmem:[%s1625_s9 + $0x20] sm:$0xff] }
  0xd0   : > { %v864_v8 = vpop.f32.mrf.mxu0 }
  0xd3   : > { %v801_v56 = vpop.f32.mrf.mxu2 }
  0xd4   : > { %v802_v58 = vadd.f32 %v801_v56, %v773_v54 }
  0xd5   : > { %v774_v0 = vpop.f32.mrf.mxu1  ;;  %v840_v36 = vpop.f32.mrf.mxu3 }
  0xd6   : > { %v831_v60 = vadd.f32 %v830_v47, %v802_v58  ;;  %v775_v1 = vadd.f32 %v774_v0, %v746_v61  ;;  %v884_v0 = vld [vmem:[%s1625_s9 + $0x28] sm:$0xff] }
  0xd8   : > { %v860_v63 = vadd.f32 %v859_v49, %v831_v60  ;;  %v866_v24 = vpop.f32.mrf.mxu0 }
  0xda   : > { %v887_v3 = vadd.f32 %v879_v62, %v860_v63  ;;  %v759_v63 = vadd.f32 %v1615_v46, %v398_v59 }
  0xdb   : > { %v803_v4 = vpop.f32.mrf.mxu2 }
  0xdc   : > { %v895_v6 = vmax.f32 %v887_v3, 0.0  ;;  %v804_v7 = vadd.f32 %v803_v4, %v775_v1 }
  0xdd   : > { %v777_v13 = vpop.f32.mrf.mxu1  ;;  %v842_v54 = vpop.f32.mrf.mxu3 }
  0xde   : > { %903 = vst [vmem:[%s1631_s11] sm:$0xff] %v895_v6  ;;  %v833_v9 = vadd.f32 %v832_v55, %v804_v7  ;;  %v778_v14 = vadd.f32 %v777_v13, %v749_v10  ;;  %v403_v6 = vpop.permute.xlu1 %402 }
  0xe0   : > { %v862_v12 = vadd.f32 %v861_v57, %v833_v9  ;;  %v869_v39 = vpop.f32.mrf.mxu0 }
  0xe2   : > { %v888_v15 = vadd.f32 %v880_v11, %v862_v12  ;;  %v761_v11 = vadd.f32 %v1619_v50, %v403_v6  ;;  %v885_v12 = vld [vmem:[%s1625_s9 + $0x30] sm:$0xff] }
  0xe3   : > { %v806_v16 = vpop.f32.mrf.mxu2 }
  0xe4   : > { %v896_v18 = vmax.f32 %v888_v15, 0.0  ;;  %v807_v19 = vadd.f32 %v806_v16, %v778_v14 }
  0xe5   : > { %v779_v26 = vpop.f32.mrf.mxu1  ;;  %v845_v4 = vpop.f32.mrf.mxu3 }
  0xe6   : > { %904 = vst [vmem:[%s1631_s11 + $0x8] sm:$0xff] %v896_v18  ;;  %v836_v21 = vadd.f32 %v835_v5, %v807_v19  ;;  %v780_v27 = vadd.f32 %v779_v26, %v751_v22  ;;  %v886_v22 = vld [vmem:[%s1625_s9 + $0x38] sm:$0xff] }
  0xe8   : > { %v865_v25 = vadd.f32 %v864_v8, %v836_v21  ;;  %v871_v57 = vpop.f32.mrf.mxu0 }
  0xea   : > { %v889_v29 = vadd.f32 %v881_v23, %v865_v25 }
  0xeb   : > { %v808_v30 = vpop.f32.mrf.mxu2 }
  0xec   : > { %v897_v31 = vmax.f32 %v889_v29, 0.0  ;;  %v809_v32 = vadd.f32 %v808_v30, %v780_v27 }
  0xed   : > { %v782_v38 = vpop.f32.mrf.mxu1  ;;  %v847_v19 = vpop.f32.mrf.mxu3 }
  0xee   : > { %905 = vst [vmem:[%s1631_s11 + $0x10] sm:$0xff] %v897_v31  ;;  %v838_v33 = vadd.f32 %v837_v20, %v809_v32  ;;  %v783_v40 = vadd.f32 %v782_v38, %v754_v34 }
  0xf0   : > { %v867_v37 = vadd.f32 %v866_v24, %v838_v33  ;;  %v874_v9 = vpop.f32.mrf.mxu0 }
  0xf2   : > { %v890_v41 = vadd.f32 %v882_v35, %v867_v37 }
  0xf3   : > { %v811_v42 = vpop.f32.mrf.mxu2 }
  0xf4   : > { %v898_v44 = vmax.f32 %v890_v41, 0.0  ;;  %v812_v47 = vadd.f32 %v811_v42, %v783_v40 }
  0xf5   : > { %v784_v45 = vpop.f32.mrf.mxu1 }
  0xf6   : > { %906 = vst [vmem:[%s1631_s11 + $0x18] sm:$0xff] %v898_v44  ;;  %v841_v49 = vadd.f32 %v840_v36, %v812_v47  ;;  %v785_v55 = vadd.f32 %v784_v45, %v756_v51 }
  0xf8   : > { %v870_v53 = vadd.f32 %v869_v39, %v841_v49  ;;  %v876_v21 = vpop.f32.mrf.mxu0 }
  0xfa   : > { %v891_v56 = vadd.f32 %v883_v52, %v870_v53 }
  0xfb   : > { %v813_v58 = vpop.f32.mrf.mxu2 }
  0xfc   : > { %v899_v60 = vmax.f32 %v891_v56, 0.0  ;;  %v814_v61 = vadd.f32 %v813_v58, %v785_v55 }
  0xfd   : > { %v787_v48 = vpop.f32.mrf.mxu1 }
  0xfe   : > { %907 = vst [vmem:[%s1631_s11 + $0x20] sm:$0xff] %v899_v60  ;;  %v843_v62 = vadd.f32 %v842_v54, %v814_v61  ;;  %v788_v2 = vadd.f32 %v787_v48, %v759_v63 }
 0x100   : > { %v872_v1 = vadd.f32 %v871_v57, %v843_v62 }
 0x102   : > { %v892_v3 = vadd.f32 %v884_v0, %v872_v1 }
 0x103   : > { %v816_v5 = vpop.f32.mrf.mxu2 }
 0x104   : > { %v900_v7 = vmax.f32 %v892_v3, 0.0  ;;  %v817_v8 = vadd.f32 %v816_v5, %v788_v2 }
 0x105   : > { %v789_v13 = vpop.f32.mrf.mxu1 }
 0x106   : > { %908 = vst [vmem:[%s1631_s11 + $0x28] sm:$0xff] %v900_v7  ;;  %v846_v10 = vadd.f32 %v845_v4, %v817_v8  ;;  %v790_v14 = vadd.f32 %v789_v13, %v761_v11 }
 0x108   : > { %v875_v46 = vadd.f32 %v874_v9, %v846_v10 }
 0x10a   : > { %v893_v15 = vadd.f32 %v885_v12, %v875_v46 }
 0x10b   : > { %v818_v16 = vpop.f32.mrf.mxu2 }
 0x10c   : > { %v901_v17 = vmax.f32 %v893_v15, 0.0  ;;  %v819_v18 = vadd.f32 %v818_v16, %v790_v14 }
 0x10e   : > { %909 = vst [vmem:[%s1631_s11 + $0x30] sm:$0xff] %v901_v17  ;;  %v848_v20 = vadd.f32 %v847_v19, %v819_v18 }
 0x110   : > { %v877_v23 = vadd.f32 %v876_v21, %v848_v20 }
 0x112   : > { %v894_v24 = vadd.f32 %v886_v22, %v877_v23 }
 0x114   : > { %v902_v25 = vmax.f32 %v894_v24, 0.0 }
 0x116   : > { %910 = vst [vmem:[%s1631_s11 + $0x38] sm:$0xff] %v902_v25 }
 0x117 PF: > { %s14_s17 = sadd.s32 1, %s1377_s17   ;;  %s1665_s15 = smov %s1373_s16 }
 0x118   : > { %p11_p5 = scmp.ge.s32.totalorder %s14_s17, 4   ;;  %s1666_s16 = smov %s1668_s18 }
 0x11a   :  { %13 = sbr.rel (!%p11_p5) target bundleno = 2 (0x2), region = 69 }

// kernel: backbone_v1_pallas.36
= control target key start
LH: loop header
LB: loop body
LE: loop exit
PB: predicated region body
PF: predicated region fallthrough
CT: control target
= control target key end

     0   :  { %s1305_s12 = smov 0   ;;  %s1307_s13 = smov 0   ;;  %s1544_s0 = inlined_call_operand.vmem [shape: bf16[2,576,128], index: 0, kind: input, shape index: {}]   ;;  %s1545_s1 = inlined_call_operand.vmem [shape: bf16[64,576], index: 1, kind: input, shape index: {}]   ;;  %s1546_s2 = inlined_call_operand.vmem [shape: f32[64,1], index: 2, kind: input, shape index: {}]   ;;  %s1547_s3 = inlined_call_operand.vmem [shape: f32[2,64,128], index: 3, kind: output, shape index: {}]  }
   0x1   :  { %s1309_s14 = smov 0  }
   0x2 LB: > { %s25_s15 = sadd.s32 1, %s1278_s13  ;;  %p924_p0 = scmp.ge.s32.totalorder %s1282_s14, 1  ;;  %s1282_s14 = sphi %s1309_s14, %s13_s14   ;;  %s1278_s13 = sphi %s1307_s13, %s1549_s13   ;;  %s1274_s12 = sphi %s1305_s12, %s1548_s12  }
   0x3   : > { %p27_p1 = scmp.ge.s32.totalorder %s25_s15, 2  ;;  %p156_p2 = scmp.lt.s32.totalorder %s1282_s14, 3 }
   0x5   : > { %s1551_s15 = smov (%p27_p1, %s25_s15), 0  ;;  %p157_p3 = pnand %p924_p0, %p156_p2 }
   0x6   : > { %p186_p4 = scmp.lt.s32.totalorder (!%p157_p3), %s1274_s12, 1 }
   0x7   : > { %160 = sbr.rel (%p157_p3) target bundleno = 277 (0x115), region = 32 }
   0xc   : > { %s1553_s12 = smov (!%p186_p4, %s1274_s12), 1  ;;  %v1284_v6 = vmov 0   ;;  %v301_v8 = vld [vmem:[%s1546_s2 + $0x10] sm:$0xff]  ;;  %v299_v10 = vld [vmem:[%s1546_s2] sm:$0xff]  ;;  %v302_v14 = vld [vmem:[%s1546_s2 + $0x18] sm:$0xff]  ;;  %vm663_vm0 = vcmask 523264  }
   0xd   : > { %s1231_s16 = smul.u32 288, %s1553_s12  ;;  %1258 = vset.pattern.permute.xlu1 %v1284_v6  ;;  %1257 = vset.pattern.permute.xlu0 %v1284_v6  ;;  %v300_v16 = vld [vmem:[%s1546_s2 + $0x8] sm:$0xff]  ;;  %v1166_v20 = vld [vmem:[%s1545_s1 + $0x38] sm:$0xf0]  ;;  %v990_v22 = vld [vmem:[%s1545_s1 + $0x78] sm:$0xf] }
   0xe   : > { %1259 = vset.pattern.permute.xlu2 %v1284_v6  ;;  %319 = vperm.xlu1 %1258, %v301_v8   ;;  %v950_v19 = vld [vmem:[%s1545_s1 + $0x28] sm:$0xf]  ;;  %v1176_v23 = vld [vmem:[%s1545_s1 + $0x88] sm:$0xf0]  ;;  %v930_v26 = vld [vmem:[%s1545_s1] sm:$0xf] }
   0xf   : > { %s1329_s19 = scalar_lea.vmem %s1544_s0, %s1231_s16  ;;  %309 = vperm.xlu0 %1257, %v299_v10   ;;  %v951_v28 = vor.u32 %v1166_v20, %v950_v19  ;;  %v991_v29 = vor.u32 %v1176_v23, %v990_v22  ;;  %v1161_v30 = vld [vmem:[%s1545_s1 + $0x10] sm:$0xf0]  ;;  %v1160_v31 = vld [vmem:[%s1545_s1 + $0xc] sm:$0xf]  ;;  %v940_v32 = vld [vmem:[%s1545_s1 + $0x1c] sm:$0xf0] }
  0x10   : > { %v1186_v0 = vld [vmem:[%s1329_s19 + $0x38] sm:$0xff]  ;;  %v1185_v1 = vld [vmem:[%s1329_s19 + $0x30] sm:$0xff]  ;;  %v1184_v4 = vld [vmem:[%s1329_s19 + $0x28] sm:$0xff]  ;;  %v931_v37 = vor.u32 %v1161_v30, %v930_v26  ;;  %v943_v38 = vor.u32 %v1160_v31, %v940_v32 }
  0x11   : > { %1215 = vmatpush.bf16.msra.mxu1 %v1186_v0  ;;  %1216 = vmatpush.bf16.msra.mxu2 %v1186_v0  ;;  %v1210_v2 = vld [vmem:[%s1329_s19 + $0xf8] sm:$0xff]  ;;  %v1209_v3 = vld [vmem:[%s1329_s19 + $0xf0] sm:$0xff]  ;;  %v1208_v5 = vld [vmem:[%s1329_s19 + $0xe8] sm:$0xff] }
  0x12   : > { %676 = vmatpush.bf16.msra.mxu0 %v1186_v0  ;;  %763 = vmatpush.bf16.msra.mxu3 %v1210_v2  ;;  %v1183_v7 = vld [vmem:[%s1329_s19 + $0x20] sm:$0xff]  ;;  %v1182_v11 = vld [vmem:[%s1329_s19 + $0x18] sm:$0xff]  ;;  %v1181_v13 = vld [vmem:[%s1329_s19 + $0x10] sm:$0xff] }
  0x13   : > { %v1207_v9 = vld [vmem:[%s1329_s19 + $0xe0] sm:$0xff]  ;;  %v1206_v12 = vld [vmem:[%s1329_s19 + $0xd8] sm:$0xff]  ;;  %v1205_v15 = vld [vmem:[%s1329_s19 + $0xd0] sm:$0xff] }
  0x14   : > { %v1180_v17 = vld [vmem:[%s1329_s19 + $0x8] sm:$0xff]  ;;  %v1179_v21 = vld [vmem:[%s1329_s19] sm:$0xff]  ;;  %v1202_v24 = vld [vmem:[%s1329_s19 + $0xb8] sm:$0xff] }
  0x15   : > { %1217 = vmatpush.bf16.msra.mxu1 %v1185_v1  ;;  %1218 = vmatpush.bf16.msra.mxu2 %v1185_v1  ;;  %v1204_v18 = vld [vmem:[%s1329_s19 + $0xc8] sm:$0xff]  ;;  %v1194_v25 = vld [vmem:[%s1329_s19 + $0x78] sm:$0xff]  ;;  %v1203_v27 = vld [vmem:[%s1329_s19 + $0xc0] sm:$0xff] }
  0x16   : > { %677 = vmatpush.bf16.msra.mxu0 %v1185_v1  ;;  %764 = vmatpush.bf16.msra.mxu3 %v1209_v3  ;;  %v1214_v33 = vld [vmem:[%s1329_s19 + $0x118] sm:$0xff]  ;;  %v1201_v34 = vld [vmem:[%s1329_s19 + $0xb0] sm:$0xff]  ;;  %v1200_v41 = vld [vmem:[%s1329_s19 + $0xa8] sm:$0xff] }
  0x17   : > { %324 = vperm.xlu1 %1258, %v302_v14   ;;  %314 = vperm.xlu0 %1257, %v300_v16   ;;  %v1193_v35 = vld [vmem:[%s1329_s19 + $0x70] sm:$0xff]  ;;  %v306_v36 = vld [vmem:[%s1546_s2 + $0x38] sm:$0xff]  ;;  %v1192_v42 = vld [vmem:[%s1329_s19 + $0x68] sm:$0xff] }
  0x18   : > { %v1213_v39 = vld [vmem:[%s1329_s19 + $0x110] sm:$0xff]  ;;  %v1212_v43 = vld [vmem:[%s1329_s19 + $0x108] sm:$0xff]  ;;  %v1199_v44 = vld [vmem:[%s1329_s19 + $0xa0] sm:$0xff] }
  0x19   : > { %1219 = vmatpush.bf16.msra.mxu1 %v1184_v4  ;;  %1220 = vmatpush.bf16.msra.mxu2 %v1184_v4  ;;  %v305_v40 = vld [vmem:[%s1546_s2 + $0x30] sm:$0xff]  ;;  %v1191_v45 = vld [vmem:[%s1329_s19 + $0x60] sm:$0xff]  ;;  %v1198_v49 = vld [vmem:[%s1329_s19 + $0x98] sm:$0xff] }
  0x1a   : > { %678 = vmatpush.bf16.msra.mxu0 %v1184_v4  ;;  %765 = vmatpush.bf16.msra.mxu3 %v1208_v5  ;;  %v970_v46 = vld [vmem:[%s1545_s1 + $0x50] sm:$0xf]  ;;  %v1171_v47 = vld [vmem:[%s1545_s1 + $0x60] sm:$0xf0]  ;;  %v1190_v50 = vld [vmem:[%s1329_s19 + $0x58] sm:$0xff] }
  0x1b   : > { %v1211_v48 = vld [vmem:[%s1329_s19 + $0x100] sm:$0xff]  ;;  %v946_v51 = vld [vmem:[%s1545_s1 + $0x10] sm:$0xf]  ;;  %v971_v52 = vor.u32 %v1171_v47, %v970_v46  ;;  %v1165_v54 = vld [vmem:[%s1545_s1 + $0x34] sm:$0xf] }
  0x1c   : > { %v1163_v53 = vld [vmem:[%s1545_s1 + $0x20] sm:$0xf0]  ;;  %v960_v55 = vld [vmem:[%s1545_s1 + $0x44] sm:$0xf0]  ;;  %v1197_v56 = vld [vmem:[%s1329_s19 + $0x90] sm:$0xff] }
  0x1d   : > { %1221 = vmatpush.bf16.msra.mxu1 %v1183_v7  ;;  %1222 = vmatpush.bf16.msra.mxu2 %v1183_v7  ;;  %v1189_v57 = vld [vmem:[%s1329_s19 + $0x50] sm:$0xff]  ;;  %v947_v58 = vor.u32 %v1163_v53, %v946_v51  ;;  %v963_v59 = vor.u32 %v1165_v54, %v960_v55  ;;  %v303_v60 = vld [vmem:[%s1546_s2 + $0x20] sm:$0xff]  ;;  %v1196_v61 = vld [vmem:[%s1329_s19 + $0x88] sm:$0xff] }
  0x1e   : > { %679 = vmatpush.bf16.msra.mxu0 %v1183_v7  ;;  %766 = vmatpush.bf16.msra.mxu3 %v1207_v9  ;;  %v1188_v62 = vld [vmem:[%s1329_s19 + $0x48] sm:$0xff]  ;;  %v1195_v63 = vld [vmem:[%s1329_s19 + $0x80] sm:$0xff]  ;;  %v1162_v2 = vld [vmem:[%s1545_s1 + $0x18] sm:$0xf0] }
  0x1f   : > { %344 = vperm.xlu1 %1258, %v306_v36   ;;  %339 = vperm.xlu0 %1257, %v305_v40   ;;  %v1187_v0 = vld [vmem:[%s1329_s19 + $0x40] sm:$0xff]  ;;  %v938_v1 = vld [vmem:[%s1545_s1 + $0x8] sm:$0xf]  ;;  %v932_v6 = vld [vmem:[%s1545_s1 + $0x14] sm:$0xf0]  ;;  %s1158_s19 = sshll.u32 %s1553_s12, 6 }
  0x20   : > { %329 = vperm.xlu2 %1259, %v303_v60   ;;  %v304_v3 = vld [vmem:[%s1546_s2 + $0x28] sm:$0xff]  ;;  %v939_v4 = vor.u32 %v1162_v2, %v938_v1  ;;  %v1159_v5 = vld [vmem:[%s1545_s1 + $0x4] sm:$0xf]  ;;  %v966_v7 = vld [vmem:[%s1545_s1 + $0x38] sm:$0xf]  ;;  %s1523_s28 = scalar_lea.vmem %s1547_s3, %s1158_s19 }
  0x21   : > { %1223 = vmatpush.bf16.msra.mxu1 %v1182_v11  ;;  %1224 = vmatpush.bf16.msra.mxu2 %v1182_v11  ;;  %v935_v8 = vor.u32 %v1159_v5, %v932_v6  ;;  %v1168_v9 = vld [vmem:[%s1545_s1 + $0x48] sm:$0xf0]  ;;  %v1170_v10 = vld [vmem:[%s1545_s1 + $0x5c] sm:$0xf]  ;;  %v958_v14 = vld [vmem:[%s1545_s1 + $0x30] sm:$0xf] }
  0x22   : > { %680 = vmatpush.bf16.msra.mxu0 %v1182_v11  ;;  %767 = vmatpush.bf16.msra.mxu3 %v1206_v12  ;;  %v980_v11 = vld [vmem:[%s1545_s1 + $0x6c] sm:$0xf0]  ;;  %v967_v12 = vor.u32 %v1168_v9, %v966_v7  ;;  %v986_v19 = vld [vmem:[%s1545_s1 + $0x60] sm:$0xf]  ;;  %v1175_v22 = vld [vmem:[%s1545_s1 + $0x84] sm:$0xf] }
  0x23   : > { %v1000_v23 = vld [vmem:[%s1545_s1 + $0x94] sm:$0xf0]  ;;  %v972_v30 = vld [vmem:[%s1545_s1 + $0x64] sm:$0xf0]  ;;  %v1177_v36 = vld [vmem:[%s1545_s1 + $0x90] sm:$0xf0] }
  0x24   : > { %v978_v26 = vld [vmem:[%s1545_s1 + $0x58] sm:$0xf]  ;;  %v1006_v32 = vld [vmem:[%s1545_s1 + $0x88] sm:$0xf] }
  0x25   : > { %1225 = vmatpush.bf16.msra.mxu1 %v1181_v13  ;;  %1226 = vmatpush.bf16.msra.mxu2 %v1181_v13 }
  0x26   : > { %681 = vmatpush.bf16.msra.mxu0 %v1181_v13  ;;  %768 = vmatpush.bf16.msra.mxu3 %v1205_v15  ;;  %v983_v13 = vor.u32 %v1170_v10, %v980_v11  ;;  %v1167_v15 = vld [vmem:[%s1545_s1 + $0x40] sm:$0xf0] }
  0x27   : > { %v959_v16 = vor.u32 %v1167_v15, %v958_v14 }
  0x28   : > { %334 = vperm.xlu2 %1259, %v304_v3  }
  0x29   : > { %1227 = vmatpush.bf16.msra.mxu1 %v1180_v17  ;;  %1228 = vmatpush.bf16.msra.mxu2 %v1180_v17 }
  0x2a   : > { %682 = vmatpush.bf16.msra.mxu0 %v1180_v17  ;;  %769 = vmatpush.bf16.msra.mxu3 %v1204_v18  ;;  %v1164_v17 = vld [vmem:[%s1545_s1 + $0x2c] sm:$0xf]  ;;  %v952_v18 = vld [vmem:[%s1545_s1 + $0x3c] sm:$0xf0] }
  0x2b   : > { %v955_v20 = vor.u32 %v1164_v17, %v952_v18 }
  0x2d   : > { %1229 = vmatpush.bf16.msra.mxu1 %v1179_v21  ;;  %1230 = vmatpush.bf16.msra.mxu2 %v1179_v21 }
  0x2e   : > { %683 = vmatpush.bf16.msra.mxu0 %v1179_v21  ;;  %770 = vmatpush.bf16.msra.mxu3 %v1203_v27  ;;  %v1173_v21 = vld [vmem:[%s1545_s1 + $0x70] sm:$0xf0]  ;;  %v1172_v27 = vld [vmem:[%s1545_s1 + $0x68] sm:$0xf0] }
  0x30   : > { %689 = vmatmul.bf16.vlgmr.msra.gmra.mxu1 %v951_v28  ;;  %699 = vmatmul.bf16.vlgmr.msra.gmra.mxu2 %v991_v29  ;;  %v979_v28 = vor.u32 %v1172_v27, %v978_v26  ;;  %v1169_v29 = vld [vmem:[%s1545_s1 + $0x54] sm:$0xf] }
  0x31   : > { %734 = vmatpush.bf16.msrb.mxu2 %v1202_v24  ;;  %705 = vmatpush.bf16.msrb.mxu1 %v1194_v25  ;;  %v987_v24 = vor.u32 %v1173_v21, %v986_v19  ;;  %v1003_v25 = vor.u32 %v1175_v22, %v1000_v23  ;;  %v975_v31 = vor.u32 %v1169_v29, %v972_v30 }
  0x32   : > { %796 = vmatpush.bf16.msrb.mxu0 %v1214_v33  ;;  %771 = vmatmul.bf16.vlgmr.msra.gmra.mxu3 %v943_v38  ;;  %v1178_v33 = vld [vmem:[%s1545_s1 + $0x98] sm:$0xf0] }
  0x33   : > { %684 = vmatmul.bf16.vlgmr.msra.gmra.mxu0 %v931_v37  ;;  %v1174_v38 = vld [vmem:[%s1545_s1 + $0x7c] sm:$0xf] }
  0x35   : > { %735 = vmatpush.bf16.msrb.mxu2 %v1201_v34  ;;  %706 = vmatpush.bf16.msrb.mxu1 %v1193_v35  ;;  %v1007_v34 = vor.u32 %v1178_v33, %v1006_v32  ;;  %v998_v35 = vld [vmem:[%s1545_s1 + $0x80] sm:$0xf] }
  0x36   : > { %797 = vmatpush.bf16.msrb.mxu0 %v1213_v39  ;;  %v999_v37 = vor.u32 %v1177_v36, %v998_v35  ;;  %v992_v39 = vld [vmem:[%s1545_s1 + $0x8c] sm:$0xf0] }
  0x37   : > { %v995_v40 = vor.u32 %v1174_v38, %v992_v39 }
  0x39   : > { %736 = vmatpush.bf16.msrb.mxu2 %v1200_v41  ;;  %707 = vmatpush.bf16.msrb.mxu1 %v1192_v42 }
  0x3a   : > { %798 = vmatpush.bf16.msrb.mxu0 %v1212_v43 }
  0x3d   : > { %737 = vmatpush.bf16.msrb.mxu2 %v1199_v44  ;;  %708 = vmatpush.bf16.msrb.mxu1 %v1191_v45 }
  0x3e   : > { %799 = vmatpush.bf16.msrb.mxu0 %v1211_v48 }
  0x40   : > { %694 = vmatmul.bf16.gmra.mxu1 %v971_v52 }
  0x41   : > { %738 = vmatpush.bf16.msrb.mxu2 %v1198_v49  ;;  %709 = vmatpush.bf16.msrb.mxu1 %v1190_v50 }
  0x42   : > { %776 = vmatmul.bf16.gmra.mxu3 %v963_v59 }
  0x43   : > { %1152 = vmatmul.msk.bf16.vlgmr.msrb.gmra.mxu0 %vm663_vm0, %v947_v58 }
  0x45   : > { %739 = vmatpush.bf16.msrb.mxu2 %v1197_v56  ;;  %710 = vmatpush.bf16.msrb.mxu1 %v1189_v57 }
  0x49   : > { %740 = vmatpush.bf16.msrb.mxu2 %v1196_v61  ;;  %711 = vmatpush.bf16.msrb.mxu1 %v1188_v62 }
  0x4d   : > { %741 = vmatpush.bf16.msrb.mxu2 %v1195_v63  ;;  %712 = vmatpush.bf16.msrb.mxu1 %v1187_v0 }
  0x50   : > { %742 = vmatmul.bf16.vlgmr.msrb.gmra.mxu2 %v939_v4  ;;  %713 = vmatmul.bf16.vlgmr.msrb.gmra.mxu1 %v935_v8 }
  0x52   : > { %781 = vmatmul.bf16.gmra.mxu3 %v983_v13 }
  0x53   : > { %1153 = vmatmul.msk.bf16.gmra.mxu0 %vm663_vm0, %v967_v12 }
  0x60   : > { %747 = vmatmul.bf16.gmra.mxu2 %v959_v16  ;;  %718 = vmatmul.bf16.gmra.mxu1 %v955_v20 }
  0x62   : > { %786 = vmatmul.bf16.gmra.mxu3 %v1003_v25 }
  0x63   : > { %1154 = vmatmul.msk.bf16.gmra.mxu0 %vm663_vm0, %v987_v24 }
  0x70   : > { %752 = vmatmul.bf16.gmra.mxu2 %v979_v28  ;;  %723 = vmatmul.bf16.gmra.mxu1 %v975_v31 }
  0x73   : > { %1155 = vmatmul.msk.bf16.gmra.mxu0 %vm663_vm0, %v1007_v34 }
  0x7a   : > { %v330_v23 = vpop.permute.xlu2 %329 }
  0x80   : > { %757 = vmatmul.bf16.gmra.mxu2 %v999_v37  ;;  %728 = vmatmul.bf16.gmra.mxu1 %v995_v40  ;;  %v320_v1 = vpop.permute.xlu1 %319 }
  0x81   : > { %v310_v51 = vpop.permute.xlu0 %309 }
  0x82   : > { %v335_v36 = vpop.permute.xlu2 %334 }
  0x89   : > { %v315_v59 = vpop.permute.xlu0 %314  ;;  %v325_v14 = vpop.permute.xlu1 %324 }
  0xad   : > { %v690_v41 = vpop.f32.mrf.mxu1 }
  0xae   : > { %v691_v8 = vadd.f32 %v690_v41, %v320_v1 }
  0xb0   : > { %v685_v42 = vpop.f32.mrf.mxu0 }
  0xb1   : > { %v686_v52 = vadd.f32 %v685_v42, %v310_v51 }
  0xb3   : > { %v1515_v46 = vpop.f32.mrf.mxu2 }
  0xb5   : > { %v692_v43 = vpop.f32.mrf.mxu1  ;;  %v772_v47 = vpop.f32.mrf.mxu3 }
  0xb6   : > { %v693_v18 = vadd.f32 %v692_v43, %v325_v14 }
  0xb8   : > { %v687_v44 = vpop.f32.mrf.mxu0 }
  0xb9   : > { %v688_v61 = vadd.f32 %v687_v44, %v315_v59  ;;  %v345_v59 = vpop.permute.xlu1 %344 }
  0xbb   : > { %v1517_v50 = vpop.f32.mrf.mxu2 }
  0xbd   : > { %v695_v45 = vpop.f32.mrf.mxu1  ;;  %v774_v55 = vpop.f32.mrf.mxu3 }
  0xbe   : > { %v696_v28 = vadd.f32 %v695_v45, %v330_v23 }
  0xc0   : > { %v801_v49 = vpop.f32.mrf.mxu0 }
  0xc5   : > { %v697_v48 = vpop.f32.mrf.mxu1  ;;  %v777_v4 = vpop.f32.mrf.mxu3 }
  0xc6   : > { %v698_v39 = vadd.f32 %v697_v48, %v335_v36 }
  0xc8   : > { %v803_v57 = vpop.f32.mrf.mxu0 }
  0xcd   : > { %v714_v53 = vpop.f32.mrf.mxu1  ;;  %v779_v16 = vpop.f32.mrf.mxu3 }
  0xce   : > { %v715_v54 = vadd.f32 %v714_v53, %v686_v52 }
  0xd0   : > { %v806_v6 = vpop.f32.mrf.mxu0 }
  0xd3   : > { %v743_v56 = vpop.f32.mrf.mxu2 }
  0xd4   : > { %v744_v58 = vadd.f32 %v743_v56, %v715_v54 }
  0xd5   : > { %v716_v63 = vpop.f32.mrf.mxu1  ;;  %v782_v29 = vpop.f32.mrf.mxu3 }
  0xd6   : > { %v773_v60 = vadd.f32 %v772_v47, %v744_v58  ;;  %v717_v0 = vadd.f32 %v716_v63, %v688_v61  ;;  %v703_v63 = vadd.f32 %v1517_v50, %v345_v59 }
  0xd8   : > { %v802_v62 = vadd.f32 %v801_v49, %v773_v60  ;;  %v808_v19 = vpop.f32.mrf.mxu0  ;;  %v340_v49 = vpop.permute.xlu0 %339 }
  0xd9   : > { %v701_v53 = vadd.f32 %v1515_v46, %v340_v49 }
  0xda   : > { %v821_v2 = vmax.f32 %v802_v62, 0.0 }
  0xdb   : > { %v745_v3 = vpop.f32.mrf.mxu2 }
  0xdc   : > { %829 = vst [vmem:[%s1523_s28] sm:$0xff] %v821_v2  ;;  %v746_v5 = vadd.f32 %v745_v3, %v717_v0 }
  0xdd   : > { %v719_v10 = vpop.f32.mrf.mxu1  ;;  %v784_v42 = vpop.f32.mrf.mxu3 }
  0xde   : > { %v775_v7 = vadd.f32 %v774_v55, %v746_v5  ;;  %v720_v11 = vadd.f32 %v719_v10, %v691_v8 }
  0xe0   : > { %v804_v9 = vadd.f32 %v803_v57, %v775_v7  ;;  %v811_v32 = vpop.f32.mrf.mxu0 }
  0xe2   : > { %v822_v12 = vmax.f32 %v804_v9, 0.0 }
  0xe3   : > { %v748_v13 = vpop.f32.mrf.mxu2 }
  0xe4   : > { %830 = vst [vmem:[%s1523_s28 + $0x8] sm:$0xff] %v822_v12  ;;  %v749_v15 = vadd.f32 %v748_v13, %v720_v11 }
  0xe5   : > { %v721_v21 = vpop.f32.mrf.mxu1  ;;  %v787_v48 = vpop.f32.mrf.mxu3 }
  0xe6   : > { %v778_v17 = vadd.f32 %v777_v4, %v749_v15  ;;  %v722_v22 = vadd.f32 %v721_v21, %v693_v18 }
  0xe8   : > { %v807_v20 = vadd.f32 %v806_v6, %v778_v17  ;;  %v813_v45 = vpop.f32.mrf.mxu0 }
  0xea   : > { %v823_v24 = vmax.f32 %v807_v20, 0.0 }
  0xeb   : > { %v750_v25 = vpop.f32.mrf.mxu2 }
  0xec   : > { %831 = vst [vmem:[%s1523_s28 + $0x10] sm:$0xff] %v823_v24  ;;  %v751_v26 = vadd.f32 %v750_v25, %v722_v22 }
  0xed   : > { %v724_v31 = vpop.f32.mrf.mxu1  ;;  %v789_v5 = vpop.f32.mrf.mxu3 }
  0xee   : > { %v780_v27 = vadd.f32 %v779_v16, %v751_v26  ;;  %v725_v33 = vadd.f32 %v724_v31, %v696_v28 }
  0xf0   : > { %v809_v30 = vadd.f32 %v808_v19, %v780_v27  ;;  %v816_v61 = vpop.f32.mrf.mxu0 }
  0xf2   : > { %v824_v34 = vmax.f32 %v809_v30, 0.0 }
  0xf3   : > { %v753_v35 = vpop.f32.mrf.mxu2 }
  0xf4   : > { %832 = vst [vmem:[%s1523_s28 + $0x18] sm:$0xff] %v824_v34  ;;  %v754_v37 = vadd.f32 %v753_v35, %v725_v33 }
  0xf5   : > { %v726_v41 = vpop.f32.mrf.mxu1 }
  0xf6   : > { %v783_v38 = vadd.f32 %v782_v29, %v754_v37  ;;  %v727_v43 = vadd.f32 %v726_v41, %v698_v39 }
  0xf8   : > { %v812_v40 = vadd.f32 %v811_v32, %v783_v38  ;;  %v818_v7 = vpop.f32.mrf.mxu0 }
  0xfa   : > { %v825_v44 = vmax.f32 %v812_v40, 0.0 }
  0xfb   : > { %v755_v47 = vpop.f32.mrf.mxu2 }
  0xfc   : > { %833 = vst [vmem:[%s1523_s28 + $0x20] sm:$0xff] %v825_v44  ;;  %v756_v51 = vadd.f32 %v755_v47, %v727_v43 }
  0xfd   : > { %v729_v55 = vpop.f32.mrf.mxu1 }
  0xfe   : > { %v785_v52 = vadd.f32 %v784_v42, %v756_v51  ;;  %v730_v56 = vadd.f32 %v729_v55, %v701_v53 }
 0x100   : > { %v814_v54 = vadd.f32 %v813_v45, %v785_v52 }
 0x102   : > { %v826_v57 = vmax.f32 %v814_v54, 0.0 }
 0x103   : > { %v758_v58 = vpop.f32.mrf.mxu2 }
 0x104   : > { %834 = vst [vmem:[%s1523_s28 + $0x28] sm:$0xff] %v826_v57  ;;  %v759_v60 = vadd.f32 %v758_v58, %v730_v56 }
 0x105   : > { %v731_v1 = vpop.f32.mrf.mxu1 }
 0x106   : > { %v788_v62 = vadd.f32 %v787_v48, %v759_v60  ;;  %v732_v2 = vadd.f32 %v731_v1, %v703_v63 }
 0x108   : > { %v817_v0 = vadd.f32 %v816_v61, %v788_v62 }
 0x10a   : > { %v827_v3 = vmax.f32 %v817_v0, 0.0 }
 0x10b   : > { %v760_v46 = vpop.f32.mrf.mxu2 }
 0x10c   : > { %835 = vst [vmem:[%s1523_s28 + $0x30] sm:$0xff] %v827_v3  ;;  %v761_v4 = vadd.f32 %v760_v46, %v732_v2 }
 0x10e   : > { %v790_v6 = vadd.f32 %v789_v5, %v761_v4 }
 0x110   : > { %v819_v8 = vadd.f32 %v818_v7, %v790_v6 }
 0x112   : > { %v828_v9 = vmax.f32 %v819_v8, 0.0 }
 0x114   : > { %836 = vst [vmem:[%s1523_s28 + $0x38] sm:$0xff] %v828_v9 }
 0x115 PF: > { %s13_s14 = sadd.s32 1, %s1282_s14   ;;  %s1548_s12 = smov %s1278_s13 }
 0x116   : > { %p10_p5 = scmp.ge.s32.totalorder %s13_s14, 4   ;;  %s1549_s13 = smov %s1551_s15 }
 0x118   :  { %12 = sbr.rel (!%p10_p5) target bundleno = 2 (0x2), region = 62 }

</bundles_post_ra>
